<compile_context>
chip_gen: v7x
topology: tpu7x:2x2x1
jax: 0.10.0
libtpu: 0.0.40
codegen_flags: <defaults>
</compile_context>

<pallas_src>
import functools

import jax
import jax.numpy as jnp
from jax.experimental import pallas as pl
from jax.experimental.pallas import tpu as pltpu


# ---------------------------------------------------------------------------
# Fused ResBlock kernel
# ---------------------------------------------------------------------------
def _resblock_kernel(x_ref, w1_ref, b1_ref, w2_ref, b2_ref, *rest,
                     th, nt, has_skip):
    """One (batch, row-tile) grid point.

    x_ref : (H+4, W*Cin) bf16        per-batch input, rows zero-padded by 2 top/bottom
    w1_ref: (3, W*Cin, (W+2)*Cout)   width-folded conv1 (one matrix per row tap dy), bf16
    w2_ref: (3, (W+2)*Cout, W*Cout)  width-folded conv2, width-halo rows pre-zeroed, bf16
    ws_ref: (3, W*Cin, W*Cout)       width-folded skip conv, bf16 (only when has_skip)
    b*_ref: (1, N) f32               lane-broadcast biases
    o_ref : (TH, W*Cout) f32
    """
    if has_skip:
        ws_ref, bs_ref, o_ref = rest
    else:
        (o_ref,) = rest

    # TH output rows need TH+4 padded input rows starting at t*TH (sliced in VMEM; the
    # slab is resident for the whole batch, so no halo-duplicated HBM traffic).
    if nt == 1:
        xt = x_ref[...]                                     # static path (demo sizes)
    else:
        t = pl.program_id(1)
        r0 = pl.multiple_of(t * th, th & (-th))
        xt = x_ref[pl.ds(r0, th + 4), :]                    # (TH+4, W*Cin) bf16

    def mm(a, b):
        return jnp.dot(a, b, preferred_element_type=jnp.float32)

    # ---- r = conv1(relu(x)): 3 row taps, dy shift on the bf16 LHS, one f32 accumulator.
    rx = jnp.maximum(xt, jnp.zeros_like(xt))                # relu; relu(0)=0 keeps row pad valid
    r = mm(rx[0:th + 2], w1_ref[0])
    r = r + mm(rx[1:th + 3], w1_ref[1])
    r = r + mm(rx[2:th + 4], w1_ref[2])
    r = r + b1_ref[...]                                     # (TH+2, (W+2)*Cout) f32

    # relu(r) fused with zeroing the out-of-image halo row of the first / last tile.
    # (r's width-halo columns are killed by the zeroed rows of the folded w2 -> no lane mask.)
    row = jax.lax.broadcasted_iota(jnp.int32, (th + 2, 1), 0)
    if nt == 1:
        drop = (row == 0) | (row == th + 1)
    else:
        t = pl.program_id(1)
        drop = ((row == 0) & (t == 0)) | ((row == th + 1) & (t == nt - 1))
    rr = jnp.where(drop, 0.0, jnp.maximum(r, 0.0)).astype(jnp.bfloat16)

    # ---- out = conv2(relu(r)) + bias
    out = mm(rr[0:th], w2_ref[0])
    out = out + mm(rr[1:th + 1], w2_ref[1])
    out = out + mm(rr[2:th + 2], w2_ref[2])
    out = out + b2_ref[...]                                 # (TH, W*Cout) f32

    # ---- skip path + residual add
    if has_skip:
        s = mm(xt[1:th + 1], ws_ref[0])
        s = s + mm(xt[2:th + 2], ws_ref[1])
        s = s + mm(xt[3:th + 3], ws_ref[2])
        out = out + s + bs_ref[...]
    else:
        # identity skip (Cin == Cout): lane-aligned centre rows, full lane width
        out = out + xt[2:th + 2, :].astype(jnp.float32)

    o_ref[...] = out.astype(o_ref.dtype)


# ---------------------------------------------------------------------------
# Host-side helpers: width-folded weights, device info, tiling / VMEM budgeting
# ---------------------------------------------------------------------------
def _fold_conv_width(w_oihw, win_pos, wout_pos, offset):
    """PyTorch (Cout, Cin, 3, 3) -> (3, win_pos*Cin, wout_pos*Cout) bf16 block-banded fold.

    For row tap dy:  M[dy][wi*Cin+ci, wo*Cout+co] = W[co, ci, dy, wi-wo-offset]
    when 0 <= wi-wo-offset <= 2, else 0.  Out-of-range wi (SAME zero padding along width)
    simply fall outside the band, so the input needs no width padding in HBM."""
    cout, cin = int(w_oihw.shape[0]), int(w_oihw.shape[1])
    wi = jnp.arange(win_pos)[:, None]
    wo = jnp.arange(wout_pos)[None, :]
    dx = wi - wo - offset
    valid = ((dx >= 0) & (dx <= 2)).astype(w_oihw.dtype)[:, :, None, None]
    mats = []
    for dy in range(3):
        w_taps = jnp.transpose(w_oihw[:, :, dy, :], (2, 1, 0))        # (3[dx], Cin, Cout)
        blocks = w_taps[jnp.clip(dx, 0, 2)] * valid                   # (win, wout, Cin, Cout)
        mats.append(jnp.transpose(blocks, (0, 2, 1, 3)).reshape(win_pos * cin,
                                                                wout_pos * cout))
    return jnp.stack(mats, axis=0).astype(jnp.bfloat16)


@functools.lru_cache(maxsize=1)
def _tpu_vmem_and_cores():
    """(VMEM bytes per TensorCore, TensorCores per chip) with conservative fallbacks."""
    vmem, cores = None, None
    try:
        info = pltpu.get_tpu_info()
        for name in ("vmem_capacity_bytes", "vmem_bytes", "vmem_size_bytes"):
            try:
                v = int(getattr(info, name))
            except (AttributeError, TypeError, ValueError):
                continue
            if v >= (32 << 20):
                vmem = v
                break
        for name in ("num_cores", "core_count", "num_tensorcores", "tensorcores_per_chip"):
            try:
                c = int(getattr(info, name))
            except (AttributeError, TypeError, ValueError):
                continue
            if 1 <= c <= 8:
                cores = c
                break
    except Exception:
        pass
    if vmem is None:
        kind = ""
        try:
            kind = jax.devices()[0].device_kind.lower()
        except Exception:
            pass
        if ("v5 lite" in kind) or ("v5e" in kind) or ("v5litepod" in kind) or ("v6" in kind):
            vmem = 128 << 20                       # v5e / v6e: 128 MiB VMEM, single TC
            cores = 1 if cores is None else cores
        else:
            vmem = 64 << 20                        # v7x per-TC (also safe for unknown parts)
    if cores is None:
        cores = 2 if vmem <= (64 << 20) else 1
    return vmem, cores


def _vmem_estimate(th, h, w, cin, cout, has_skip):
    """Per-grid-step VMEM bytes: double-buffered pipeline operands + live in-kernel temps."""
    lx, n1, n2 = w * cin, (w + 2) * cout, w * cout
    x_slab = (h + 4) * lx * 2                                   # bf16 per-batch slab
    wts = (3 * lx * n1 + 3 * n1 * n2 + (3 * lx * n2 if has_skip else 0)) * 2
    bias = (n1 + 2 * n2) * 4
    out_blk = th * n2 * 4
    # NOTE: grid-invariant weights are still double-buffered by the default pipeline.
    # TODO(synk): pipeline_mode=pl.Buffered(1) on the weight/bias specs would free half of wts.
    pipeline = 2 * (x_slab + wts + bias + out_blk)
    live = ((th + 4) * lx * 2 * 3              # relu'd tile + shifted bf16 LHS copies
            + (th + 2) * n1 * (4 + 2)          # r (f32) + rr (bf16)
            + th * n2 * 4 * 2                  # f32 output accumulators
            + (th + 2) * max(lx, n1) * 2 * 2)  # slack for relayouts
    return pipeline + live


def _pick_th(h, n_batch, w, cin, cout, has_skip, budget_bytes, cores):
    """Largest row-tile height dividing H (multiple of 8, or full H) that fits the budget.
    Only prefer >=2 total grid steps when a second TensorCore would otherwise sit idle."""
    divs = [d for d in range(1, h + 1) if h % d == 0 and (d % 8 == 0 or d == h)]
    fitting = [d for d in divs
               if _vmem_estimate(d, h, w, cin, cout, has_skip) <= budget_bytes]
    if not fitting:
        # TODO(synk): the per-batch slab alone blew the budget -> switch to manual row-halo
        # DMA (memory_space=pl.ANY + make_async_copy) for very large images.
        return min(divs)
    if cores >= 2 and n_batch < 2:
        multi = [d for d in fitting if h // d >= 2]
        if multi:
            return max(multi)
    return max(fitting)


# ---------------------------------------------------------------------------
# ResBlock forward (single fused pallas_call)
# ---------------------------------------------------------------------------
def res_block_forward(params, x_nhwc):
    """x_nhwc: (N, H, W, Cin).  Returns (N, H, W, Cout) f32."""
    N, H, W, Cin = x_nhwc.shape
    Cout = int(params["conv1_w"].shape[0])
    has_skip = params["skip_w"] is not None

    Lx = W * Cin
    N1 = (W + 2) * Cout
    N2 = W * Cout

    # Only a 2-row top/bottom zero pad is materialised in HBM (bf16); width SAME padding
    # lives in the banded folded weights, and (W, C) is flattened into the lane dim.
    # TODO(synk): fold this pad (and the upstream upsample/concat) into the kernel via a
    # zeroed VMEM tile + interior DMA to remove the last pre-kernel HBM round trip.
    xp = jnp.pad(x_nhwc.astype(jnp.bfloat16), ((0, 0), (2, 2), (0, 0), (0, 0)))
    xp = xp.reshape(N, H + 4, Lx)

    vmem_cap, cores = _tpu_vmem_and_cores()
    budget = int(0.70 * vmem_cap)                    # ~45 MiB on v7x, ~90 MiB on v5e/v6e
    TH = _pick_th(H, N, W, Cin, Cout, has_skip, budget, cores)
    nT = H // TH

    # Width-folded weights (bf16) and lane-broadcast biases (f32).
    # TODO(synk): for v5e, pad the folded N dims to multiples of 128 (MXU granule).
    w1 = _fold_conv_width(params["conv1_w"], W, W + 2, -2)   # x (W) -> r (W+2, 1-col halo)
    w2 = _fold_conv_width(params["conv2_w"], W + 2, W, 0)    # r (W+2) -> out (W)
    # SAME width padding for conv2: r's halo columns must contribute nothing -> zero those
    # rows of the folded w2 host-side (replaces the old per-step in-kernel lane mask).
    w2 = w2.at[:, :Cout, :].set(0).at[:, (W + 1) * Cout:, :].set(0)
    b1 = jnp.tile(params["conv1_b"].astype(jnp.float32), W + 2)[None, :]
    b2 = jnp.tile(params["conv2_b"].astype(jnp.float32), W)[None, :]

    args = [xp, w1, b1, w2, b2]
    in_specs = [
        # whole padded per-batch slab; constant index along the row-tile axis so it is
        # DMA'd once per batch and tiles slice their 2-row halo in VMEM.
        pl.BlockSpec((None, H + 4, Lx), lambda n, t: (n, 0, 0)),
        pl.BlockSpec(w1.shape, lambda n, t: (0, 0, 0)),
        pl.BlockSpec(b1.shape, lambda n, t: (0, 0)),
        pl.BlockSpec(w2.shape, lambda n, t: (0, 0, 0)),
        pl.BlockSpec(b2.shape, lambda n, t: (0, 0)),
    ]
    if has_skip:
        ws = _fold_conv_width(params["skip_w"], W, W, -1)
        bs = jnp.tile(params["skip_b"].astype(jnp.float32), W)[None, :]
        args += [ws, bs]
        in_specs += [pl.BlockSpec(ws.shape, lambda n, t: (0, 0, 0)),
                     pl.BlockSpec(bs.shape, lambda n, t: (0, 0))]

    kernel = functools.partial(_resblock_kernel, th=TH, nt=nT, has_skip=has_skip)
    est = _vmem_estimate(TH, H, W, Cin, Cout, has_skip)
    # leave headroom below physical VMEM (v7x: 64 MiB per TensorCore)
    vmem_limit = int(min(max(2 * est + (8 << 20), 32 << 20), int(0.88 * vmem_cap)))

    out = pl.pallas_call(
        kernel,
        out_shape=jax.ShapeDtypeStruct((N, H, N2), jnp.float32),
        grid=(N, nT),
        in_specs=in_specs,
        out_specs=pl.BlockSpec((None, TH, N2), lambda n, t: (n, t, 0)),
        compiler_params=pltpu.CompilerParams(
            dimension_semantics=("parallel", "parallel"),
            vmem_limit_bytes=vmem_limit,
        ),
    )(*args)
    return out.reshape(N, H, W, Cout)


# ---------------------------------------------------------------------------
# JAX glue: bilinear upsample (PyTorch align_corners=False semantics)
# ---------------------------------------------------------------------------
def _bilinear_upsample_nhwc(x, scale):
    N, H, W, C = x.shape
    OH, OW = H * scale, W * scale

    def coords(insz, outsz):
        s = insz / outsz
        src = s * (jnp.arange(outsz, dtype=jnp.float32) + 0.5) - 0.5
        src = jnp.maximum(src, 0.0)
        i0 = jnp.minimum(jnp.floor(src).astype(jnp.int32), insz - 1)
        i1 = jnp.minimum(i0 + 1, insz - 1)
        w1 = src - i0.astype(jnp.float32)
        return i0, i1, 1.0 - w1, w1

    h0, h1, hw0, hw1 = coords(H, OH)
    w0, w1, ww0, ww1 = coords(W, OW)
    top = x[:, h0, :, :] * hw0[None, :, None, None] + x[:, h1, :, :] * hw1[None, :, None, None]
    out = top[:, :, w0, :] * ww0[None, None, :, None] + top[:, :, w1, :] * ww1[None, None, :, None]
    return out


# ---------------------------------------------------------------------------
# Module forward
# ---------------------------------------------------------------------------
def upsample_block_forward(params, up_f, skip_f, scale_factor=2):
    """up_f: (N, up_c, H, W) NCHW;  skip_f: (N, skip_c, H*scale, W*scale) NCHW."""
    if up_f.ndim == 5:  # (b, t, C, H, W) path of the PyTorch module
        b, t = up_f.shape[:2]
        out = upsample_block_forward(
            params,
            up_f.reshape((b * t,) + up_f.shape[2:]),
            skip_f.reshape((b * t,) + skip_f.shape[2:]),
            scale_factor,
        )
        return out.reshape((b, t) + out.shape[1:])

    up_nhwc = jnp.transpose(up_f, (0, 2, 3, 1))
    skip_nhwc = jnp.transpose(skip_f, (0, 2, 3, 1))
    up_nhwc = _bilinear_upsample_nhwc(up_nhwc, scale_factor)
    # cast to bf16 before concat so the remaining XLA copies move half the bytes
    x = jnp.concatenate([up_nhwc.astype(jnp.bfloat16),
                         skip_nhwc.astype(jnp.bfloat16)], axis=-1)
    y = res_block_forward(params, x)
    # TODO(synk): bn=True (BatchNorm2d) path not implemented; module default bn=False -> Identity.
    # TODO(synk): keep NHWC downstream / bf16 output if the consumer tolerates it; the NCHW
    # transpose is kept here only to match the PyTorch module's output layout.
    return jnp.transpose(y, (0, 3, 1, 2))


# ---------------------------------------------------------------------------
# Deterministic parameter init (PyTorch Conv2d-style uniform bounds)
# ---------------------------------------------------------------------------
def init_params(key, skip_c, up_c, out_c):
    indim = up_c + skip_c
    ks = jax.random.split(key, 6)

    def conv_init(kw, kb, cin, cout):
        bound = 1.0 / float(cin * 9) ** 0.5
        w = jax.random.uniform(kw, (cout, cin, 3, 3), jnp.float32, -bound, bound)
        b = jax.random.uniform(kb, (cout,), jnp.float32, -bound, bound)
        return w, b

    p = {}
    p["conv1_w"], p["conv1_b"] = conv_init(ks[0], ks[1], indim, out_c)
    p["conv2_w"], p["conv2_b"] = conv_init(ks[2], ks[3], out_c, out_c)
    if indim == out_c:
        p["skip_w"], p["skip_b"] = None, None
    else:
        p["skip_w"], p["skip_b"] = conv_init(ks[4], ks[5], indim, out_c)
    return p


# ---------------------------------------------------------------------------
if __name__ == "__main__":
    master = jax.random.PRNGKey(0)

    def run_case(key, N, up_c, skip_c, out_c, H, W, five_d=False):
        k1, k2, k3 = jax.random.split(key, 3)
        up_f = jax.random.normal(k1, (N, up_c, H, W), jnp.float32)
        skip_f = jax.random.normal(k2, (N, skip_c, 2 * H, 2 * W), jnp.float32)
        params = init_params(k3, skip_c, up_c, out_c)

        fwd = jax.jit(functools.partial(upsample_block_forward, scale_factor=2))
        if five_d:
            out = fwd(params, up_f.reshape(N // 2, 2, up_c, H, W),
                      skip_f.reshape(N // 2, 2, skip_c, 2 * H, 2 * W))
            out = out.reshape(N, out_c, 2 * H, 2 * W)
        else:
            out = fwd(params, up_f, skip_f)
        out = jax.block_until_ready(out)

        # --- f32 XLA reference (same math, NCHW) ---
        def ref_conv(x, w, b):
            y = jax.lax.conv_general_dilated(
                x, w, (1, 1), "SAME", dimension_numbers=("NCHW", "OIHW", "NCHW"))
            return y + b[None, :, None, None]

        up_bi = jnp.transpose(
            _bilinear_upsample_nhwc(jnp.transpose(up_f, (0, 2, 3, 1)), 2), (0, 3, 1, 2))
        xr = jnp.concatenate([up_bi, skip_f], axis=1)
        r = ref_conv(jax.nn.relu(xr), params["conv1_w"], params["conv1_b"])
        r = ref_conv(jax.nn.relu(r), params["conv2_w"], params["conv2_b"])
        xs = (ref_conv(xr, params["skip_w"], params["skip_b"])
              if params["skip_w"] is not None else xr)
        expected = xs + r

        assert out.shape == expected.shape == (N, out_c, 2 * H, 2 * W)
        diff = out - expected
        max_abs = float(jnp.max(jnp.abs(diff)))
        rel = float(jnp.linalg.norm(diff) / (jnp.linalg.norm(expected) + 1e-8))
        # bf16 activations/weights (f32 accumulation) -> loosened tolerance vs f32 reference
        assert max_abs < 1e-1, f"max abs err {max_abs}"
        assert rel < 2e-2, f"rel err {rel}"

    # conv skip path (indim != outdim)
    run_case(jax.random.fold_in(master, 0), N=2, up_c=4, skip_c=8, out_c=8, H=16, W=16)
    # identity skip path (indim == outdim) + the 5D (b, t, C, H, W) module path
    run_case(jax.random.fold_in(master, 1), N=2, up_c=4, skip_c=4, out_c=8, H=16, W=16,
             five_d=True)

    print("KERNEL_OK")
</pallas_src>

<mosaic_0001>
module attributes {stable_mosaic.version = 11 : i64} {
  func.func @_resblock_kernel(%arg0: i32, %arg1: i32, %arg2: memref<1x36x384xbf16, #tpu.memory_space<vmem>>, %arg3: memref<3x384x272xbf16, #tpu.memory_space<vmem>>, %arg4: memref<1x272xf32, #tpu.memory_space<vmem>>, %arg5: memref<3x272x256xbf16, #tpu.memory_space<vmem>>, %arg6: memref<1x256xf32, #tpu.memory_space<vmem>>, %arg7: memref<3x384x256xbf16, #tpu.memory_space<vmem>>, %arg8: memref<1x256xf32, #tpu.memory_space<vmem>>, %arg9: memref<1x32x256xf32, #tpu.memory_space<vmem>>) attributes {dimension_semantics = [#tpu.dimension_semantics<parallel>, #tpu.dimension_semantics<parallel>], iteration_bounds = array<i64: 2, 1>, scalar_prefetch = 0 : i64, scratch_operands = 0 : i64, tpu.core_type = #tpu.core_type<tc>, window_params = [{transform_indices = @transform_0, window_bounds = array<i64: 1, 36, 384>}, {pipeline_mode = #tpu.pipeline_mode<synchronous>, transform_indices = @transform_1, window_bounds = array<i64: 3, 384, 272>}, {pipeline_mode = #tpu.pipeline_mode<synchronous>, transform_indices = @transform_2, window_bounds = array<i64: 1, 272>}, {pipeline_mode = #tpu.pipeline_mode<synchronous>, transform_indices = @transform_3, window_bounds = array<i64: 3, 272, 256>}, {pipeline_mode = #tpu.pipeline_mode<synchronous>, transform_indices = @transform_4, window_bounds = array<i64: 1, 256>}, {pipeline_mode = #tpu.pipeline_mode<synchronous>, transform_indices = @transform_5, window_bounds = array<i64: 3, 384, 256>}, {pipeline_mode = #tpu.pipeline_mode<synchronous>, transform_indices = @transform_6, window_bounds = array<i64: 1, 256>}, {transform_indices = @transform_7, window_bounds = array<i64: 1, 32, 256>}]} {
    %c0 = arith.constant 0 : index
    %c0_0 = arith.constant 0 : index
    %c0_1 = arith.constant 0 : index
    %0 = vector.load %arg2[%c0, %c0_0, %c0_1] : memref<1x36x384xbf16, #tpu.memory_space<vmem>>, vector<1x36x384xbf16>
    %1 = vector.shape_cast %0 : vector<1x36x384xbf16> to vector<36x384xbf16>
    %cst = arith.constant 0.000000e+00 : bf16
    %2 = vector.broadcast %cst : bf16 to vector<36x384xbf16>
    %3 = arith.maximumf %1, %2 : vector<36x384xbf16>
    %4 = vector.extract_strided_slice %3 {offsets = [0, 0], sizes = [34, 384], strides = [1, 1]} : vector<36x384xbf16> to vector<34x384xbf16>
    %c0_2 = arith.constant 0 : index
    %c0_3 = arith.constant 0 : index
    %c0_4 = arith.constant 0 : index
    %5 = vector.load %arg3[%c0_2, %c0_3, %c0_4] : memref<3x384x272xbf16, #tpu.memory_space<vmem>>, vector<1x384x272xbf16>
    %6 = vector.shape_cast %5 : vector<1x384x272xbf16> to vector<384x272xbf16>
    %cst_5 = arith.constant dense<0.000000e+00> : vector<34x272xf32>
    %7 = tpu.matmul %4, %6, %cst_5 {dimension_numbers = #tpu.dot_dimension_numbers<[1], [0], [0], [1], [0, 0, 1, 1], [], []>} : vector<34x384xbf16>, vector<384x272xbf16>, vector<34x272xf32> -> vector<34x272xf32>
    %8 = vector.extract_strided_slice %3 {offsets = [1, 0], sizes = [34, 384], strides = [1, 1]} : vector<36x384xbf16> to vector<34x384xbf16>
    %c1 = arith.constant 1 : index
    %c0_6 = arith.constant 0 : index
    %c0_7 = arith.constant 0 : index
    %9 = vector.load %arg3[%c1, %c0_6, %c0_7] : memref<3x384x272xbf16, #tpu.memory_space<vmem>>, vector<1x384x272xbf16>
    %10 = vector.shape_cast %9 : vector<1x384x272xbf16> to vector<384x272xbf16>
    %cst_8 = arith.constant dense<0.000000e+00> : vector<34x272xf32>
    %11 = tpu.matmul %8, %10, %cst_8 {dimension_numbers = #tpu.dot_dimension_numbers<[1], [0], [0], [1], [0, 0, 1, 1], [], []>} : vector<34x384xbf16>, vector<384x272xbf16>, vector<34x272xf32> -> vector<34x272xf32>
    %12 = arith.addf %7, %11 : vector<34x272xf32>
    %13 = vector.extract_strided_slice %3 {offsets = [2, 0], sizes = [34, 384], strides = [1, 1]} : vector<36x384xbf16> to vector<34x384xbf16>
    %c2 = arith.constant 2 : index
    %c0_9 = arith.constant 0 : index
    %c0_10 = arith.constant 0 : index
    %14 = vector.load %arg3[%c2, %c0_9, %c0_10] : memref<3x384x272xbf16, #tpu.memory_space<vmem>>, vector<1x384x272xbf16>
    %15 = vector.shape_cast %14 : vector<1x384x272xbf16> to vector<384x272xbf16>
    %cst_11 = arith.constant dense<0.000000e+00> : vector<34x272xf32>
    %16 = tpu.matmul %13, %15, %cst_11 {dimension_numbers = #tpu.dot_dimension_numbers<[1], [0], [0], [1], [0, 0, 1, 1], [], []>} : vector<34x384xbf16>, vector<384x272xbf16>, vector<34x272xf32> -> vector<34x272xf32>
    %17 = arith.addf %12, %16 : vector<34x272xf32>
    %c0_12 = arith.constant 0 : index
    %c0_13 = arith.constant 0 : index
    %18 = vector.load %arg4[%c0_12, %c0_13] : memref<1x272xf32, #tpu.memory_space<vmem>>, vector<1x272xf32>
    %19 = vector.broadcast %18 : vector<1x272xf32> to vector<34x272xf32>
    %20 = arith.addf %17, %19 : vector<34x272xf32>
    %21 = tpu.iota {dimensions = array<i32: 0>} : vector<34x1xi32>
    %c0_i32 = arith.constant 0 : i32
    %22 = vector.broadcast %c0_i32 : i32 to vector<34x1xi32>
    %23 = arith.cmpi eq, %21, %22 : vector<34x1xi32>
    %c33_i32 = arith.constant 33 : i32
    %24 = vector.broadcast %c33_i32 : i32 to vector<34x1xi32>
    %25 = arith.cmpi eq, %21, %24 : vector<34x1xi32>
    %26 = arith.ori %23, %25 : vector<34x1xi1>
    %cst_14 = arith.constant 0.000000e+00 : f32
    %27 = vector.broadcast %cst_14 : f32 to vector<34x272xf32>
    %28 = arith.maximumf %20, %27 : vector<34x272xf32>
    %cst_15 = arith.constant 0.000000e+00 : f32
    %29 = vector.shape_cast %26 : vector<34x1xi1> to vector<34x1xi1>
    %30 = vector.broadcast %29 : vector<34x1xi1> to vector<34x272xi1>
    %31 = vector.broadcast %cst_15 : f32 to vector<34x272xf32>
    %32 = arith.select %30, %31, %28 : vector<34x272xi1>, vector<34x272xf32>
    %33 = arith.truncf %32 : vector<34x272xf32> to vector<34x272xbf16>
    %34 = vector.extract_strided_slice %33 {offsets = [0, 0], sizes = [32, 272], strides = [1, 1]} : vector<34x272xbf16> to vector<32x272xbf16>
    %c0_16 = arith.constant 0 : index
    %c0_17 = arith.constant 0 : index
    %c0_18 = arith.constant 0 : index
    %35 = vector.load %arg5[%c0_16, %c0_17, %c0_18] : memref<3x272x256xbf16, #tpu.memory_space<vmem>>, vector<1x272x256xbf16>
    %36 = vector.shape_cast %35 : vector<1x272x256xbf16> to vector<272x256xbf16>
    %cst_19 = arith.constant dense<0.000000e+00> : vector<32x256xf32>
    %37 = tpu.matmul %34, %36, %cst_19 {dimension_numbers = #tpu.dot_dimension_numbers<[1], [0], [0], [1], [0, 0, 1, 1], [], []>} : vector<32x272xbf16>, vector<272x256xbf16>, vector<32x256xf32> -> vector<32x256xf32>
    %38 = vector.extract_strided_slice %33 {offsets = [1, 0], sizes = [32, 272], strides = [1, 1]} : vector<34x272xbf16> to vector<32x272xbf16>
    %c1_20 = arith.constant 1 : index
    %c0_21 = arith.constant 0 : index
    %c0_22 = arith.constant 0 : index
    %39 = vector.load %arg5[%c1_20, %c0_21, %c0_22] : memref<3x272x256xbf16, #tpu.memory_space<vmem>>, vector<1x272x256xbf16>
    %40 = vector.shape_cast %39 : vector<1x272x256xbf16> to vector<272x256xbf16>
    %cst_23 = arith.constant dense<0.000000e+00> : vector<32x256xf32>
    %41 = tpu.matmul %38, %40, %cst_23 {dimension_numbers = #tpu.dot_dimension_numbers<[1], [0], [0], [1], [0, 0, 1, 1], [], []>} : vector<32x272xbf16>, vector<272x256xbf16>, vector<32x256xf32> -> vector<32x256xf32>
    %42 = arith.addf %37, %41 : vector<32x256xf32>
    %43 = vector.extract_strided_slice %33 {offsets = [2, 0], sizes = [32, 272], strides = [1, 1]} : vector<34x272xbf16> to vector<32x272xbf16>
    %c2_24 = arith.constant 2 : index
    %c0_25 = arith.constant 0 : index
    %c0_26 = arith.constant 0 : index
    %44 = vector.load %arg5[%c2_24, %c0_25, %c0_26] : memref<3x272x256xbf16, #tpu.memory_space<vmem>>, vector<1x272x256xbf16>
    %45 = vector.shape_cast %44 : vector<1x272x256xbf16> to vector<272x256xbf16>
    %cst_27 = arith.constant dense<0.000000e+00> : vector<32x256xf32>
    %46 = tpu.matmul %43, %45, %cst_27 {dimension_numbers = #tpu.dot_dimension_numbers<[1], [0], [0], [1], [0, 0, 1, 1], [], []>} : vector<32x272xbf16>, vector<272x256xbf16>, vector<32x256xf32> -> vector<32x256xf32>
    %47 = arith.addf %42, %46 : vector<32x256xf32>
    %c0_28 = arith.constant 0 : index
    %c0_29 = arith.constant 0 : index
    %48 = vector.load %arg6[%c0_28, %c0_29] : memref<1x256xf32, #tpu.memory_space<vmem>>, vector<1x256xf32>
    %49 = vector.broadcast %48 : vector<1x256xf32> to vector<32x256xf32>
    %50 = arith.addf %47, %49 : vector<32x256xf32>
    %51 = vector.extract_strided_slice %1 {offsets = [1, 0], sizes = [32, 384], strides = [1, 1]} : vector<36x384xbf16> to vector<32x384xbf16>
    %c0_30 = arith.constant 0 : index
    %c0_31 = arith.constant 0 : index
    %c0_32 = arith.constant 0 : index
    %52 = vector.load %arg7[%c0_30, %c0_31, %c0_32] : memref<3x384x256xbf16, #tpu.memory_space<vmem>>, vector<1x384x256xbf16>
    %53 = vector.shape_cast %52 : vector<1x384x256xbf16> to vector<384x256xbf16>
    %cst_33 = arith.constant dense<0.000000e+00> : vector<32x256xf32>
    %54 = tpu.matmul %51, %53, %cst_33 {dimension_numbers = #tpu.dot_dimension_numbers<[1], [0], [0], [1], [0, 0, 1, 1], [], []>} : vector<32x384xbf16>, vector<384x256xbf16>, vector<32x256xf32> -> vector<32x256xf32>
    %55 = vector.extract_strided_slice %1 {offsets = [2, 0], sizes = [32, 384], strides = [1, 1]} : vector<36x384xbf16> to vector<32x384xbf16>
    %c1_34 = arith.constant 1 : index
    %c0_35 = arith.constant 0 : index
    %c0_36 = arith.constant 0 : index
    %56 = vector.load %arg7[%c1_34, %c0_35, %c0_36] : memref<3x384x256xbf16, #tpu.memory_space<vmem>>, vector<1x384x256xbf16>
    %57 = vector.shape_cast %56 : vector<1x384x256xbf16> to vector<384x256xbf16>
    %cst_37 = arith.constant dense<0.000000e+00> : vector<32x256xf32>
    %58 = tpu.matmul %55, %57, %cst_37 {dimension_numbers = #tpu.dot_dimension_numbers<[1], [0], [0], [1], [0, 0, 1, 1], [], []>} : vector<32x384xbf16>, vector<384x256xbf16>, vector<32x256xf32> -> vector<32x256xf32>
    %59 = arith.addf %54, %58 : vector<32x256xf32>
    %60 = vector.extract_strided_slice %1 {offsets = [3, 0], sizes = [32, 384], strides = [1, 1]} : vector<36x384xbf16> to vector<32x384xbf16>
    %c2_38 = arith.constant 2 : index
    %c0_39 = arith.constant 0 : index
    %c0_40 = arith.constant 0 : index
    %61 = vector.load %arg7[%c2_38, %c0_39, %c0_40] : memref<3x384x256xbf16, #tpu.memory_space<vmem>>, vector<1x384x256xbf16>
    %62 = vector.shape_cast %61 : vector<1x384x256xbf16> to vector<384x256xbf16>
    %cst_41 = arith.constant dense<0.000000e+00> : vector<32x256xf32>
    %63 = tpu.matmul %60, %62, %cst_41 {dimension_numbers = #tpu.dot_dimension_numbers<[1], [0], [0], [1], [0, 0, 1, 1], [], []>} : vector<32x384xbf16>, vector<384x256xbf16>, vector<32x256xf32> -> vector<32x256xf32>
    %64 = arith.addf %59, %63 : vector<32x256xf32>
    %65 = arith.addf %50, %64 : vector<32x256xf32>
    %c0_42 = arith.constant 0 : index
    %c0_43 = arith.constant 0 : index
    %66 = vector.load %arg8[%c0_42, %c0_43] : memref<1x256xf32, #tpu.memory_space<vmem>>, vector<1x256xf32>
    %67 = vector.broadcast %66 : vector<1x256xf32> to vector<32x256xf32>
    %68 = arith.addf %65, %67 : vector<32x256xf32>
    %c0_44 = arith.constant 0 : index
    %c0_45 = arith.constant 0 : index
    %c0_46 = arith.constant 0 : index
    %69 = vector.load %arg9[%c0_44, %c0_45, %c0_46] : memref<1x32x256xf32, #tpu.memory_space<vmem>>, vector<1x32x256xf32>
    %70 = vector.shape_cast %69 : vector<1x32x256xf32> to vector<32x256xf32>
    %71 = vector.shape_cast %68 : vector<32x256xf32> to vector<1x32x256xf32>
    tpu.vector_store %arg9[%c0_44, %c0_45, %c0_46], %71 {strides = array<i32>} : memref<1x32x256xf32, #tpu.memory_space<vmem>>, vector<1x32x256xf32>,
    return
  }
  func.func @transform_0(%arg0: i32, %arg1: i32) -> (i32, i32, i32) {
    %c0_i32 = arith.constant 0 : i32
    %c0_i32_0 = arith.constant 0 : i32
    %c0_i32_1 = arith.constant 0 : i32
    return %arg0, %c0_i32, %c0_i32_0 : i32, i32, i32
  }
  func.func @transform_1(%arg0: i32, %arg1: i32) -> (i32, i32, i32) {
    %c0_i32 = arith.constant 0 : i32
    %c0_i32_0 = arith.constant 0 : i32
    %c0_i32_1 = arith.constant 0 : i32
    %c0_i32_2 = arith.constant 0 : i32
    return %c0_i32, %c0_i32_0, %c0_i32_1 : i32, i32, i32
  }
  func.func @transform_2(%arg0: i32, %arg1: i32) -> (i32, i32) {
    %c0_i32 = arith.constant 0 : i32
    %c0_i32_0 = arith.constant 0 : i32
    %c0_i32_1 = arith.constant 0 : i32
    return %c0_i32, %c0_i32_0 : i32, i32
  }
  func.func @transform_3(%arg0: i32, %arg1: i32) -> (i32, i32, i32) {
    %c0_i32 = arith.constant 0 : i32
    %c0_i32_0 = arith.constant 0 : i32
    %c0_i32_1 = arith.constant 0 : i32
    %c0_i32_2 = arith.constant 0 : i32
    return %c0_i32, %c0_i32_0, %c0_i32_1 : i32, i32, i32
  }
  func.func @transform_4(%arg0: i32, %arg1: i32) -> (i32, i32) {
    %c0_i32 = arith.constant 0 : i32
    %c0_i32_0 = arith.constant 0 : i32
    %c0_i32_1 = arith.constant 0 : i32
    return %c0_i32, %c0_i32_0 : i32, i32
  }
  func.func @transform_5(%arg0: i32, %arg1: i32) -> (i32, i32, i32) {
    %c0_i32 = arith.constant 0 : i32
    %c0_i32_0 = arith.constant 0 : i32
    %c0_i32_1 = arith.constant 0 : i32
    %c0_i32_2 = arith.constant 0 : i32
    return %c0_i32, %c0_i32_0, %c0_i32_1 : i32, i32, i32
  }
  func.func @transform_6(%arg0: i32, %arg1: i32) -> (i32, i32) {
    %c0_i32 = arith.constant 0 : i32
    %c0_i32_0 = arith.constant 0 : i32
    %c0_i32_1 = arith.constant 0 : i32
    return %c0_i32, %c0_i32_0 : i32, i32
  }
  func.func @transform_7(%arg0: i32, %arg1: i32) -> (i32, i32, i32) {
    %c0_i32 = arith.constant 0 : i32
    %c0_i32_0 = arith.constant 0 : i32
    return %arg0, %arg1, %c0_i32 : i32, i32, i32
  }
}

</mosaic_0001>

<bundles_post_ra>
// kernel: tile.18
= control target key start
LH: loop header
LB: loop body
LE: loop exit
PB: predicated region body
PF: predicated region fallthrough
CT: control target
= control target key end

     0   :  { %s46_s0 = inlined_call_operand.vmem [shape: f32[8], index: 0, kind: input, shape index: {}]   ;;  %s47_s1 = inlined_call_operand.vmem [shape: f32[34,8], index: 1, kind: output, shape index: {}]  }
   0x1   :  { %v4_v0 = vld [vmem:[%s46_s0] ss:$0 sm:$0xff] }
   0x2   :  { %5 = vst [vmem:[%s47_s1] sm:$0xff] %v4_v0  ;;  %14 = vst [vmem:[%s47_s1 + $0x8] sm:$0xff] %v4_v0 }
   0x3   :  { %15 = vst [vmem:[%s47_s1 + $0x10] sm:$0xff] %v4_v0  ;;  %16 = vst [vmem:[%s47_s1 + $0x18] sm:$0xff] %v4_v0 }
   0x4   :  { %17 = vst [vmem:[%s47_s1 + $0x20] sm:$0xff] %v4_v0 }

// kernel: tile.19
= control target key start
LH: loop header
LB: loop body
LE: loop exit
PB: predicated region body
PF: predicated region fallthrough
CT: control target
= control target key end

     0   :  { %s11_s6 = smov 3  ;;  %s25_s9 = smov 3  ;;  %vm6_vm0 = vcmask 1042434   ;;  %vm8_vm1 = vcmask 64512   ;;  %vm15_vm2 = vcmask 1048512   ;;  %vm22_vm3 = vcmask 982912   ;;  %s261_s0 = inlined_call_operand.vmem [shape: f32[34,8], index: 0, kind: input, shape index: {}]   ;;  %s262_s1 = inlined_call_operand.vmem [shape: f32[1,272], index: 1, kind: output, shape index: {}]  }
   0x1   :  { %v138_v0 = vld [vmem:[%s261_s0 + $0xf] ss:$16 sm:%s11_s6]   ;;  %s171_s10 = smov 120   ;;  %v140_v1 = vld [vmem:[%s261_s0 + $0xd] ss:$16 sm:%s25_s9]   ;;  %s18_s13 = smov 3 }
   0x2   :  { %13 = vrot.lane.b32.xlu0 %v138_v0, %s171_s10  ;;  %s172_s14 = smov 104   ;;  %v139_v2 = vld [vmem:[%s261_s0 + $0xe] ss:$16 sm:%s18_s13]   ;;  %s32_s17 = smov 3  ;;  %v137_v8 = vld [vmem:[%s261_s0 + $0x1e] sm:$0x4]  }
   0x3   :  { %27 = vrot.lane.b32.xlu1 %v140_v1, %s172_s14  ;;  %v141_v3 = vld [vmem:[%s261_s0 + $0xc] ss:$16 sm:%s32_s17]   ;;  %s39_s20 = smov 3  ;;  %s46_s21 = smov 3  ;;  %v153_v16 = vld [vmem:[%s261_s0 + $0x1f] sm:$0x4]  }
   0x4   :  { %s173_s22 = smov 112   ;;  %s174_s23 = smov 96   ;;  %v142_v4 = vld [vmem:[%s261_s0 + $0xb] ss:$16 sm:%s39_s20]   ;;  %v143_v5 = vld [vmem:[%s261_s0 + $0xa] ss:$16 sm:%s46_s21]  }
   0x5   :  { %s53_s28 = smov 3  ;;  %s60_s29 = smov 3  ;;  %vm29_vm4 = vcmask 917312   ;;  %vm36_vm5 = vcmask 851712   ;;  %vm43_vm6 = vcmask 786112   ;;  %vm50_vm7 = vcmask 720512  }
   0x6   :  { %20 = vrot.lane.b32.xlu0 %v139_v2, %s173_s22  ;;  %s175_s30 = smov 88   ;;  %s176_s2 = smov 80   ;;  %v144_v6 = vld [vmem:[%s261_s0 + $0x9] ss:$16 sm:%s53_s28]   ;;  %vm57_vm8 = vcmask 654912   ;;  %vm64_vm9 = vcmask 589312  }
   0x7   :  { %34 = vrot.lane.b32.xlu1 %v141_v3, %s174_s23  ;;  %v145_v7 = vld [vmem:[%s261_s0 + $0x8] ss:$16 sm:%s60_s29]   ;;  %s67_s7 = smov 3  ;;  %s74_s8 = smov 3  ;;  %vm71_vm10 = vcmask 523712   ;;  %vm78_vm11 = vcmask 458112  }
   0x8   :  { %s177_s9 = smov 72   ;;  %s178_s12 = smov 64   ;;  %v146_v9 = vld [vmem:[%s261_s0 + $0x7] ss:$16 sm:%s67_s7]   ;;  %v147_v10 = vld [vmem:[%s261_s0 + $0x6] ss:$16 sm:%s74_s8]  }
   0x9   :  { %s2_s15 = smov 3  ;;  %s81_s18 = smov 3  ;;  %vm85_vm12 = vcmask 392512   ;;  %vm92_vm13 = vcmask 326912   ;;  %vm99_vm14 = vcmask 261312   ;;  %vm106_vm15 = vcmask 195712  }
   0xa   :  { %41 = vrot.lane.b32.xlu0 %v142_v4, %s175_s30  ;;  %v3_v11 = vld [vmem:[%s261_s0] ss:$16 sm:%s2_s15]   ;;  %s88_s21 = smov 3  ;;  %s179_s22 = smov 56  }
   0xb   :  { %48 = vrot.lane.b32.xlu1 %v143_v5, %s176_s2  ;;  %v7_v12 = vsel %vm6_vm0, %v137_v8, %v3_v11  ;;  %s180_s23 = smov 48   ;;  %v148_v13 = vld [vmem:[%s261_s0 + $0x5] ss:$16 sm:%s81_s18]   ;;  %s95_s28 = smov 3 }
   0xc   :  { %9 = vst.msk [vmem:[#allocation0] ss:$8 sm:$0x7] %vm8_vm1, %v7_v12   ;;  %v149_v14 = vld [vmem:[%s261_s0 + $0x4] ss:$16 sm:%s88_s21]   ;;  %s102_s29 = smov 3 }
   0xd   :  { %s109_s30 = smov 3  ;;  %s181_s2 = smov 40   ;;  %v150_v15 = vld [vmem:[%s261_s0 + $0x3] ss:$16 sm:%s95_s28]   ;;  %v151_v17 = vld [vmem:[%s261_s0 + $0x2] ss:$16 sm:%s102_s29]  }
   0xe   :  { %55 = vrot.lane.b32.xlu0 %v144_v6, %s177_s9  ;;  %s182_s3 = smov 32   ;;  %v152_v18 = vld [vmem:[%s261_s0 + $0x1] ss:$16 sm:%s109_s30]   ;;  %s183_s0 = smov 24  }
   0xf   :  { %62 = vrot.lane.b32.xlu1 %v145_v7, %s178_s12  ;;  %s184_s12 = smov 16   ;;  %v114_v19 = vsel %vm6_vm0, %v153_v16, %v152_v18  ;;  %s185_s13 = smov 8   ;;  %vm117_vm0 = vcmask 130112  }
  0x12   :  { %69 = vrot.lane.b32.xlu0 %v146_v9, %s179_s22 }
  0x13   :  { %76 = vrot.lane.b32.xlu1 %v147_v10, %s180_s23 }
  0x16   :  { %83 = vrot.lane.b32.xlu0 %v148_v13, %s181_s2 }
  0x17   :  { %90 = vrot.lane.b32.xlu1 %v149_v14, %s182_s3 }
  0x1a   :  { %97 = vrot.lane.b32.xlu0 %v150_v15, %s183_s0 }
  0x1b   :  { %104 = vrot.lane.b32.xlu1 %v151_v17, %s184_s12 }
  0x1e   :  { %115 = vrot.lane.b32.xlu0 %v114_v19, %s185_s13 }
  0x74   :  { %v14_v20 = vpop.permute.xlu0 %13  }
  0x75   :  { %16 = vst.msk [vmem:[#allocation0] ss:$8 sm:$0x3] %vm15_vm2, %v14_v20   ;;  %v28_v21 = vpop.permute.xlu1 %27  }
  0x78   :  { %v21_v22 = vpop.permute.xlu0 %20  }
  0x79   :  { %23 = vst.msk [vmem:[#allocation0] ss:$8 sm:$0x3] %vm22_vm3, %v21_v22   ;;  %v35_v23 = vpop.permute.xlu1 %34  }
  0x7a   :  { %30 = vst.msk [vmem:[#allocation0] ss:$8 sm:$0x3] %vm29_vm4, %v28_v21  }
  0x7b   :  { %37 = vst.msk [vmem:[#allocation0] ss:$8 sm:$0x3] %vm36_vm5, %v35_v23  }
  0x7c   :  { %v42_v24 = vpop.permute.xlu0 %41  }
  0x7d   :  { %44 = vst.msk [vmem:[#allocation0] ss:$8 sm:$0x3] %vm43_vm6, %v42_v24   ;;  %v49_v25 = vpop.permute.xlu1 %48  }
  0x7e   :  { %51 = vst.msk [vmem:[#allocation0] ss:$8 sm:$0x3] %vm50_vm7, %v49_v25  }
  0x80   :  { %v56_v26 = vpop.permute.xlu0 %55  }
  0x81   :  { %58 = vst.msk [vmem:[#allocation0] ss:$8 sm:$0x3] %vm57_vm8, %v56_v26   ;;  %v63_v27 = vpop.permute.xlu1 %62  }
  0x82   :  { %65 = vst.msk [vmem:[#allocation0] ss:$8 sm:$0x3] %vm64_vm9, %v63_v27  }
  0x84   :  { %v70_v28 = vpop.permute.xlu0 %69  }
  0x85   :  { %72 = vst.msk [vmem:[#allocation0] ss:$8 sm:$0x3] %vm71_vm10, %v70_v28   ;;  %v77_v29 = vpop.permute.xlu1 %76  }
  0x86   :  { %79 = vst.msk [vmem:[#allocation0] ss:$8 sm:$0x3] %vm78_vm11, %v77_v29  }
  0x88   :  { %v84_v30 = vpop.permute.xlu0 %83  }
  0x89   :  { %86 = vst.msk [vmem:[#allocation0] ss:$8 sm:$0x3] %vm85_vm12, %v84_v30   ;;  %v91_v31 = vpop.permute.xlu1 %90  }
  0x8a   :  { %93 = vst.msk [vmem:[#allocation0] ss:$8 sm:$0x3] %vm92_vm13, %v91_v31  }
  0x8c   :  { %v98_v32 = vpop.permute.xlu0 %97  }
  0x8d   :  { %100 = vst.msk [vmem:[#allocation0] ss:$8 sm:$0x3] %vm99_vm14, %v98_v32   ;;  %v105_v33 = vpop.permute.xlu1 %104  }
  0x8e   :  { %107 = vst.msk [vmem:[#allocation0] ss:$8 sm:$0x3] %vm106_vm15, %v105_v33  }
  0x90   :  { %v116_v34 = vpop.permute.xlu0 %115  }
  0x91   :  { %118 = vst.msk [vmem:[#allocation0] ss:$8 sm:$0x7] %vm117_vm0, %v116_v34  }
  0x98   :  { %v122_v35 = vld [vmem:[#allocation0] sm:$0x1]  ;;  %v126_v36 = vld [vmem:[#allocation0 + $0x8] sm:$0x1]  ;;  %v131_v37 = vld [vmem:[#allocation0 + $0x10] sm:$0x1] }
  0x99   :  { %124 = vst [vmem:[%s262_s1] sm:$0x1] %v122_v35  ;;  %154 = vst [vmem:[%s262_s1 + $0x1] sm:$0x1] %v126_v36 }
  0x9a   :  { %155 = vst [vmem:[%s262_s1 + $0x2] sm:$0x1] %v131_v37 }

// kernel: tile.23
= control target key start
LH: loop header
LB: loop body
LE: loop exit
PB: predicated region body
PF: predicated region fallthrough
CT: control target
= control target key end

     0   :  { %s40_s0 = inlined_call_operand.vmem [shape: f32[8], index: 0, kind: input, shape index: {}]   ;;  %s41_s1 = inlined_call_operand.vmem [shape: f32[32,8], index: 1, kind: output, shape index: {}]  }
   0x1   :  { %v4_v0 = vld [vmem:[%s40_s0] ss:$0 sm:$0xff] }
   0x2   :  { %5 = vst [vmem:[%s41_s1] sm:$0xff] %v4_v0  ;;  %12 = vst [vmem:[%s41_s1 + $0x8] sm:$0xff] %v4_v0 }
   0x3   :  { %13 = vst [vmem:[%s41_s1 + $0x10] sm:$0xff] %v4_v0  ;;  %14 = vst [vmem:[%s41_s1 + $0x18] sm:$0xff] %v4_v0 }

// kernel: tile.24
= control target key start
LH: loop header
LB: loop body
LE: loop exit
PB: predicated region body
PF: predicated region fallthrough
CT: control target
= control target key end

     0   :  { %s7_s6 = smov 3  ;;  %s21_s9 = smov 3  ;;  %vm4_vm0 = vcmask 64512   ;;  %vm11_vm1 = vcmask 1048512   ;;  %vm18_vm2 = vcmask 982912   ;;  %vm25_vm3 = vcmask 917312   ;;  %s232_s0 = inlined_call_operand.vmem [shape: f32[32,8], index: 0, kind: input, shape index: {}]   ;;  %s233_s1 = inlined_call_operand.vmem [shape: f32[1,256], index: 1, kind: output, shape index: {}]  }
   0x1   :  { %v122_v0 = vld [vmem:[%s232_s0 + $0xf] ss:$16 sm:%s7_s6]   ;;  %s153_s10 = smov 120   ;;  %v124_v1 = vld [vmem:[%s232_s0 + $0xd] ss:$16 sm:%s21_s9]   ;;  %s14_s13 = smov 3 }
   0x2   :  { %9 = vrot.lane.b32.xlu0 %v122_v0, %s153_s10  ;;  %s154_s14 = smov 104   ;;  %v123_v2 = vld [vmem:[%s232_s0 + $0xe] ss:$16 sm:%s14_s13]   ;;  %s28_s17 = smov 3  ;;  %vm32_vm4 = vcmask 851712   ;;  %vm39_vm5 = vcmask 786112  }
   0x3   :  { %23 = vrot.lane.b32.xlu1 %v124_v1, %s154_s14  ;;  %v125_v3 = vld [vmem:[%s232_s0 + $0xc] ss:$16 sm:%s28_s17]   ;;  %s35_s20 = smov 3  ;;  %s42_s21 = smov 3  ;;  %vm46_vm6 = vcmask 720512   ;;  %vm53_vm7 = vcmask 654912  }
   0x4   :  { %s155_s22 = smov 112   ;;  %s156_s23 = smov 96   ;;  %v126_v4 = vld [vmem:[%s232_s0 + $0xb] ss:$16 sm:%s35_s20]   ;;  %v127_v5 = vld [vmem:[%s232_s0 + $0xa] ss:$16 sm:%s42_s21]  }
   0x5   :  { %s49_s28 = smov 3  ;;  %s56_s29 = smov 3  ;;  %vm60_vm8 = vcmask 589312   ;;  %vm67_vm9 = vcmask 523712   ;;  %vm74_vm10 = vcmask 458112   ;;  %vm81_vm11 = vcmask 392512  }
   0x6   :  { %16 = vrot.lane.b32.xlu0 %v123_v2, %s155_s22  ;;  %s157_s30 = smov 88   ;;  %s158_s2 = smov 80   ;;  %v128_v6 = vld [vmem:[%s232_s0 + $0x9] ss:$16 sm:%s49_s28]   ;;  %vm88_vm12 = vcmask 326912   ;;  %vm95_vm13 = vcmask 261312  }
   0x7   :  { %30 = vrot.lane.b32.xlu1 %v125_v3, %s156_s23  ;;  %v129_v7 = vld [vmem:[%s232_s0 + $0x8] ss:$16 sm:%s56_s29]   ;;  %s63_s7 = smov 3  ;;  %s70_s8 = smov 3  ;;  %vm102_vm14 = vcmask 195712   ;;  %vm109_vm15 = vcmask 130112  }
   0x8   :  { %s159_s9 = smov 72   ;;  %s160_s10 = smov 64   ;;  %v130_v8 = vld [vmem:[%s232_s0 + $0x7] ss:$16 sm:%s63_s7]   ;;  %v131_v9 = vld [vmem:[%s232_s0 + $0x6] ss:$16 sm:%s70_s8]  }
   0x9   :  { %s2_s13 = smov 3  ;;  %s77_s16 = smov 3 }
   0xa   :  { %37 = vrot.lane.b32.xlu0 %v126_v4, %s157_s30  ;;  %v3_v10 = vld [vmem:[%s232_s0] ss:$16 sm:%s2_s13]   ;;  %s84_s19 = smov 3  ;;  %s161_s20 = smov 56  }
   0xb   :  { %44 = vrot.lane.b32.xlu1 %v127_v5, %s158_s2  ;;  %5 = vst.msk [vmem:[#allocation0] ss:$8 sm:$0x3] %vm4_vm0, %v3_v10   ;;  %s162_s21 = smov 48   ;;  %v132_v11 = vld [vmem:[%s232_s0 + $0x5] ss:$16 sm:%s77_s16]  }
   0xc   :  { %v133_v12 = vld [vmem:[%s232_s0 + $0x4] ss:$16 sm:%s84_s19]   ;;  %s91_s26 = smov 3  ;;  %s98_s27 = smov 3 }
   0xd   :  { %s163_s28 = smov 40   ;;  %s164_s29 = smov 32   ;;  %v134_v13 = vld [vmem:[%s232_s0 + $0x3] ss:$16 sm:%s91_s26]   ;;  %v135_v14 = vld [vmem:[%s232_s0 + $0x2] ss:$16 sm:%s98_s27]  }
   0xe   :  { %51 = vrot.lane.b32.xlu0 %v128_v6, %s159_s9  ;;  %s105_s5 = smov 3  ;;  %s165_s6 = smov 24  }
   0xf   :  { %58 = vrot.lane.b32.xlu1 %v129_v7, %s160_s10  ;;  %s166_s7 = smov 16   ;;  %v136_v15 = vld [vmem:[%s232_s0 + $0x1] ss:$16 sm:%s105_s5]   ;;  %s167_s0 = smov 8  }
  0x12   :  { %65 = vrot.lane.b32.xlu0 %v130_v8, %s161_s20 }
  0x13   :  { %72 = vrot.lane.b32.xlu1 %v131_v9, %s162_s21 }
  0x16   :  { %79 = vrot.lane.b32.xlu0 %v132_v11, %s163_s28 }
  0x17   :  { %86 = vrot.lane.b32.xlu1 %v133_v12, %s164_s29 }
  0x1a   :  { %93 = vrot.lane.b32.xlu0 %v134_v13, %s165_s6 }
  0x1b   :  { %100 = vrot.lane.b32.xlu1 %v135_v14, %s166_s7 }
  0x1e   :  { %107 = vrot.lane.b32.xlu0 %v136_v15, %s167_s0 }
  0x74   :  { %v10_v16 = vpop.permute.xlu0 %9  }
  0x75   :  { %12 = vst.msk [vmem:[#allocation0] ss:$8 sm:$0x3] %vm11_vm1, %v10_v16   ;;  %v24_v17 = vpop.permute.xlu1 %23  }
  0x78   :  { %v17_v18 = vpop.permute.xlu0 %16  }
  0x79   :  { %19 = vst.msk [vmem:[#allocation0] ss:$8 sm:$0x3] %vm18_vm2, %v17_v18   ;;  %v31_v19 = vpop.permute.xlu1 %30  }
  0x7a   :  { %26 = vst.msk [vmem:[#allocation0] ss:$8 sm:$0x3] %vm25_vm3, %v24_v17  }
  0x7b   :  { %33 = vst.msk [vmem:[#allocation0] ss:$8 sm:$0x3] %vm32_vm4, %v31_v19  }
  0x7c   :  { %v38_v20 = vpop.permute.xlu0 %37  }
  0x7d   :  { %40 = vst.msk [vmem:[#allocation0] ss:$8 sm:$0x3] %vm39_vm5, %v38_v20   ;;  %v45_v21 = vpop.permute.xlu1 %44  }
  0x7e   :  { %47 = vst.msk [vmem:[#allocation0] ss:$8 sm:$0x3] %vm46_vm6, %v45_v21  }
  0x80   :  { %v52_v22 = vpop.permute.xlu0 %51  }
  0x81   :  { %54 = vst.msk [vmem:[#allocation0] ss:$8 sm:$0x3] %vm53_vm7, %v52_v22   ;;  %v59_v23 = vpop.permute.xlu1 %58  }
  0x82   :  { %61 = vst.msk [vmem:[#allocation0] ss:$8 sm:$0x3] %vm60_vm8, %v59_v23  }
  0x84   :  { %v66_v24 = vpop.permute.xlu0 %65  }
  0x85   :  { %68 = vst.msk [vmem:[#allocation0] ss:$8 sm:$0x3] %vm67_vm9, %v66_v24   ;;  %v73_v25 = vpop.permute.xlu1 %72  }
  0x86   :  { %75 = vst.msk [vmem:[#allocation0] ss:$8 sm:$0x3] %vm74_vm10, %v73_v25  }
  0x88   :  { %v80_v26 = vpop.permute.xlu0 %79  }
  0x89   :  { %82 = vst.msk [vmem:[#allocation0] ss:$8 sm:$0x3] %vm81_vm11, %v80_v26   ;;  %v87_v27 = vpop.permute.xlu1 %86  }
  0x8a   :  { %89 = vst.msk [vmem:[#allocation0] ss:$8 sm:$0x3] %vm88_vm12, %v87_v27  }
  0x8c   :  { %v94_v28 = vpop.permute.xlu0 %93  }
  0x8d   :  { %96 = vst.msk [vmem:[#allocation0] ss:$8 sm:$0x3] %vm95_vm13, %v94_v28   ;;  %v101_v29 = vpop.permute.xlu1 %100  }
  0x8e   :  { %103 = vst.msk [vmem:[#allocation0] ss:$8 sm:$0x3] %vm102_vm14, %v101_v29  }
  0x90   :  { %v108_v30 = vpop.permute.xlu0 %107  }
  0x91   :  { %110 = vst.msk [vmem:[#allocation0] ss:$8 sm:$0x3] %vm109_vm15, %v108_v30  }
  0x98   :  { %v114_v31 = vld [vmem:[#allocation0] sm:$0x1]  ;;  %v118_v32 = vld [vmem:[#allocation0 + $0x8] sm:$0x1] }
  0x99   :  { %116 = vst [vmem:[%s233_s1] sm:$0x1] %v114_v31  ;;  %137 = vst [vmem:[%s233_s1 + $0x1] sm:$0x1] %v118_v32 }

// kernel: upsample_block_forward.1
= control target key start
LH: loop header
LB: loop body
LE: loop exit
PB: predicated region body
PF: predicated region fallthrough
CT: control target
= control target key end

     0   :  { %s7273_s24 = smov 0   ;;  %s7275_s25 = smov 0   ;;  %s9296_s0 = inlined_call_operand.vmem [shape: bf16[2,36,384], index: 0, kind: input, shape index: {}]   ;;  %s9297_s1 = inlined_call_operand.vmem [shape: bf16[3,384,272], index: 1, kind: input, shape index: {}]   ;;  %s9298_s2 = inlined_call_operand.vmem [shape: f32[1,272], index: 2, kind: input, shape index: {}]   ;;  %s9299_s3 = inlined_call_operand.vmem [shape: bf16[3,272,256], index: 3, kind: input, shape index: {}]   ;;  %s9300_s4 = inlined_call_operand.vmem [shape: f32[1,256], index: 4, kind: input, shape index: {}]   ;;  %s9301_s5 = inlined_call_operand.vmem [shape: bf16[3,384,256], index: 5, kind: input, shape index: {}]   ;;  %s9302_s6 = inlined_call_operand.vmem [shape: f32[1,256], index: 6, kind: input, shape index: {}]   ;;  %s9303_s7 = inlined_call_operand.vmem [shape: f32[2,32,256], index: 7, kind: output, shape index: {}]  }
   0x1   :  { %s7277_s26 = smov 0  }
   0x2 LB: > { %s29_s27 = sadd.s32 1, %s7223_s25  ;;  %p5288_p0 = scmp.ge.s32.totalorder %s7227_s26, 1  ;;  %s7227_s26 = sphi %s7277_s26, %s17_s26   ;;  %s7223_s25 = sphi %s7275_s25, %s9305_s25   ;;  %s7219_s24 = sphi %s7273_s24, %s9304_s24  }
   0x3   : > { %p31_p1 = scmp.ge.s32.totalorder %s29_s27, 2  ;;  %p251_p2 = scmp.lt.s32.totalorder %s7227_s26, 3 }
   0x5   : > { %s9307_s27 = smov (%p31_p1, %s29_s27), 0  ;;  %p252_p3 = pnand %p5288_p0, %p251_p2 }
   0x6   : > { %v6529_v0 = vld [vmem:[%s9297_s1 + $0x244] ss:$12 sps:$4 sm:$0xff] (!%p252_p3)   ;;  %v7229_v1 = vmov (!%p252_p3), 0.0   ;;  %v6531_v2 = vld [vmem:[%s9297_s1 + $0x3c8] ss:$12 sps:$4 sm:$0xff] (!%p252_p3)   ;;  %vm7230_vm0 = vmmov (!%p252_p3), 0  }
   0x7   : > { %255 = sbr.rel (%p252_p3) target bundleno = 1067 (0x42b), region = 48  ;;  %6280 = vmatprep.subr.bf16.mxu1 (!%p252_p3), %v7229_v1  ;;  %6296 = vmatprep.mubr.msk.bf16.mxu1 (!%p252_p3), %vm7230_vm0, %v7229_v1  ;;  %v6532_v3 = vld [vmem:[%s9297_s1 + $0x240] ss:$12 sps:$4 sm:$0xff] (!%p252_p3)   ;;  %v6533_v4 = vld [vmem:[%s9297_s1 + $0x25c] ss:$12 sps:$4 sm:$0xff] (!%p252_p3)   ;;  %p288_p4 = scmp.lt.s32.totalorder (!%p252_p3), %s7219_s24, 1 }
   0x8   : > { %1015 = vmatprep.subr.bf16.mxu0 (!%p252_p3), %v6529_v0  ;;  %6281 = vmatpush3.bf16.msra.mxu1 (!%p252_p3), %v6531_v2  ;;  %v6535_v5 = vld [vmem:[%s9297_s1 + $0x3e0] ss:$12 sps:$4 sm:$0xff] (!%p252_p3)   ;;  %v6536_v6 = vld [vmem:[%s9297_s1 + $0x258] ss:$12 sps:$4 sm:$0xff] (!%p252_p3)   ;;  %v6540_v9 = vld [vmem:[%s9297_s1 + $0x270] ss:$12 sps:$4 sm:$0xff] (!%p252_p3)  }
   0x9   : > { %1016 = vmatpush1.bf16.msra.mxu0 (!%p252_p3), %v6532_v3  ;;  %6282 = vmatprep.subr.bf16.mxu1 (!%p252_p3), %v7229_v1  ;;  %v6537_v7 = vld [vmem:[%s9297_s1 + $0x274] ss:$12 sps:$4 sm:$0xff] (!%p252_p3)   ;;  %v6539_v8 = vld [vmem:[%s9297_s1 + $0x3f8] ss:$12 sps:$4 sm:$0xff] (!%p252_p3)   ;;  %v6543_v11 = vld [vmem:[%s9297_s1 + $0x410] ss:$12 sps:$4 sm:$0xff] (!%p252_p3)  }
   0xa   : > { %1017 = vmatprep.subr.bf16.mxu0 (!%p252_p3), %v6533_v4  ;;  %v6541_v10 = vld [vmem:[%s9297_s1 + $0x28c] ss:$12 sps:$4 sm:$0xff] (!%p252_p3)   ;;  %v6544_v12 = vld [vmem:[%s9297_s1 + $0x288] ss:$12 sps:$4 sm:$0xff] (!%p252_p3)   ;;  %v6545_v13 = vld [vmem:[%s9297_s1 + $0x2a4] ss:$12 sps:$4 sm:$0xff] (!%p252_p3)  }
   0xb   : > { %v6547_v14 = vld [vmem:[%s9297_s1 + $0x428] ss:$12 sps:$4 sm:$0xff] (!%p252_p3)   ;;  %v6548_v15 = vld [vmem:[%s9297_s1 + $0x2a0] ss:$12 sps:$4 sm:$0xff] (!%p252_p3)   ;;  %v6552_v18 = vld [vmem:[%s9297_s1 + $0x2b8] ss:$12 sps:$4 sm:$0xff] (!%p252_p3)  }
   0xc   : > { %6283 = vmatpush3.bf16.msra.mxu1 (!%p252_p3), %v6535_v5  ;;  %v6549_v16 = vld [vmem:[%s9297_s1 + $0x2bc] ss:$12 sps:$4 sm:$0xff] (!%p252_p3)   ;;  %v6551_v17 = vld [vmem:[%s9297_s1 + $0x440] ss:$12 sps:$4 sm:$0xff] (!%p252_p3)   ;;  %v7231_v24 = vmov (!%p252_p3), 0   ;;  %vm1973_vm2 = vcmask (!%p252_p3), 1046528  }
   0xd   : > { %1018 = vmatpush1.bf16.msra.mxu0 (!%p252_p3), %v6536_v6  ;;  %6284 = vmatprep.subr.bf16.mxu1 (!%p252_p3), %v7229_v1  ;;  %v6553_v19 = vld [vmem:[%s9297_s1 + $0x2d4] ss:$12 sps:$4 sm:$0xff] (!%p252_p3)   ;;  %v6555_v29 = vld [vmem:[%s9297_s1 + $0x458] ss:$12 sps:$4 sm:$0xff] (!%p252_p3)   ;;  %v6556_v30 = vld [vmem:[%s9297_s1 + $0x2d0] ss:$12 sps:$4 sm:$0xff] (!%p252_p3)  }
   0xe   : > { %1019 = vmatprep.subr.bf16.mxu0 %v6537_v7  ;;  %s9309_s24 = smov (!%p288_p4, %s7219_s24), 1  ;;  %vm552_vm1 = vsmask.f32 7424  ;;  %v6557_v33 = vld [vmem:[%s9297_s1 + $0x2ec] ss:$12 sps:$4 sm:$0xff]   ;;  %vm7232_vm6 = vmmov 1  }
   0xf   : > { %s6500_s12 = smul.u32 60, %s9309_s24  ;;  %v6559_v34 = vld [vmem:[%s9297_s1 + $0x470] ss:$12 sps:$4 sm:$0xff]   ;;  %v6560_v38 = vld [vmem:[%s9297_s1 + $0x2e8] ss:$12 sps:$4 sm:$0xff]   ;;  %vm3036_vm8 = vcmask 130048  }
  0x10   : > { %6285 = vmatpush3.bf16.msra.mxu1 %v6539_v8  ;;  %v6561_v39 = vld [vmem:[%s9297_s1 + $0xc8] ss:$12 sps:$4 sm:$0xff]   ;;  %v6562_v42 = vld [vmem:[%s9297_s1 + $0x304] ss:$12 sps:$4 sm:$0xff]   ;;  %v6565_v45 = vld [vmem:[%s9297_s1 + $0x300] ss:$12 sps:$4 sm:$0xff]  }
  0x11   : > { %1020 = vmatpush1.bf16.msra.mxu0 %v6540_v9  ;;  %6286 = vmatprep.subr.bf16.mxu1 %v7229_v1  ;;  %s7356_s21 = scalar_lea.vmem %s9296_s0, %s6500_s12  ;;  %v6564_v44 = vld [vmem:[%s9297_s1 + $0x8] ss:$12 sps:$4 sm:$0xff]   ;;  %v6566_v47 = vld [vmem:[%s9297_s1 + $0xe0] ss:$12 sps:$4 sm:$0xff]   ;;  %v6570_v50 = vld [vmem:[%s9297_s1 + $0x318] ss:$12 sps:$4 sm:$0xff]  }
  0x12   : > { %1021 = vmatprep.subr.bf16.mxu0 %v6541_v10  ;;  %v306_v20 = vld [vmem:[%s7356_s21 + $0x8] sm:$0xf]  ;;  %v308_v21 = vld [vmem:[%s7356_s21 + $0x14] sm:$0xf]  ;;  %v310_v22 = vld [vmem:[%s7356_s21 + $0x20] sm:$0xf] }
  0x13   : > { %v312_v23 = vld [vmem:[%s7356_s21 + $0x2c] sm:$0xf]  ;;  %v316_v25 = vmax.bf16 %v7231_v24, %v306_v20  ;;  %v318_v26 = vmax.bf16 %v7231_v24, %v308_v21  ;;  %v320_v27 = vmax.bf16 %v7231_v24, %v310_v22  ;;  %v6567_v48 = vld [vmem:[%s9297_s1 + $0x31c] ss:$12 sps:$4 sm:$0xff]   ;;  %v6571_v51 = vld [vmem:[%s9297_s1 + $0xf8] ss:$12 sps:$4 sm:$0xff]  }
  0x14   : > { %6287 = vmatpush3.bf16.msra.mxu1 %v6543_v11  ;;  %v322_v28 = vmax.bf16 %v7231_v24, %v312_v23  ;;  %v6569_v49 = vld [vmem:[%s9297_s1 + $0x20] ss:$12 sps:$4 sm:$0xff]   ;;  %v314_v52 = vld [vmem:[%s7356_s21 + $0x38] sm:$0x3]  ;;  %v6575_v58 = vld [vmem:[%s9297_s1 + $0x330] ss:$12 sps:$4 sm:$0xff]  }
  0x15   : > { %1022 = vmatpush1.bf16.msra.mxu0 %v6544_v12  ;;  %6288 = vmatprep.subr.bf16.mxu1 %v7229_v1  ;;  %v7383_v31 = vcombine.low %v316_v25, %v318_v26  ;;  %v324_v53 = vmax.bf16 %v7231_v24, %v314_v52  ;;  %v6572_v55 = vld [vmem:[%s9297_s1 + $0x334] ss:$12 sps:$4 sm:$0xff]   ;;  %v6574_v57 = vld [vmem:[%s9297_s1 + $0x38] ss:$12 sps:$4 sm:$0xff]   ;;  %v6576_v59 = vld [vmem:[%s9297_s1 + $0x110] ss:$12 sps:$4 sm:$0xff]  }
  0x16   : > { %1023 = vmatprep.subr.bf16.mxu0 %v6545_v13  ;;  %v7385_v32 = vcombine.low %v320_v27, %v322_v28  ;;  %v6577_v62 = vld [vmem:[%s9297_s1 + $0x34c] ss:$12 sps:$4 sm:$0xff]   ;;  %v6579_v63 = vld [vmem:[%s9297_s1 + $0x50] ss:$12 sps:$4 sm:$0xff]   ;;  %v6580_v2 = vld [vmem:[%s9297_s1 + $0x348] ss:$12 sps:$4 sm:$0xff]  }
  0x17   : > { %v578_v35 = vshrl.u32 %v7383_v31, 16  ;;  %v580_v36 = vshll.u32 %v7383_v31, 16  ;;  %v7439_v56 = vcombine.low %v324_v53, %v324_v53  ;;  %v6581_v3 = vld [vmem:[%s9297_s1 + $0x128] ss:$12 sps:$4 sm:$0xff]   ;;  %v6582_v5 = vld [vmem:[%s9297_s1 + $0x364] ss:$12 sps:$4 sm:$0xff]  }
  0x18   : > { %6289 = vmatpush3.bf16.msra.mxu1 %v6547_v14  ;;  %v585_v37 = vshll.u32 %v7385_v32, 16  ;;  %v605_v54 = vshrl.u32 %v7385_v32, 16  ;;  %v6584_v6 = vld [vmem:[%s9297_s1 + $0x68] ss:$12 sps:$4 sm:$0xff]   ;;  %v6585_v8 = vld [vmem:[%s9297_s1 + $0x360] ss:$12 sps:$4 sm:$0xff]  }
  0x19   : > { %1024 = vmatpush1.bf16.msra.mxu0 %v6548_v15  ;;  %6290 = vmatprep.subr.bf16.mxu1 %v7229_v1  ;;  %v582_v40 = vrot.slane %v580_v36, 1  ;;  %v609_v61 = vshll.u32 %v7439_v56, 16  ;;  %v619_v7 = vshrl.u32 %v7439_v56, 16  ;;  %v6586_v9 = vld [vmem:[%s9297_s1 + $0x140] ss:$12 sps:$4 sm:$0xff]   ;;  %v309_v14 = vld [vmem:[%s7356_s21 + $0x18] sm:$0xff] }
  0x1a   : > { %1025 = vmatprep.subr.bf16.mxu0 %v6549_v16  ;;  %v587_v41 = vrot.slane %v585_v37, 1  ;;  %v305_v10 = vld [vmem:[%s7356_s21] sm:$0xff]  ;;  %v307_v11 = vld [vmem:[%s7356_s21 + $0xc] sm:$0xff]  ;;  %v6587_v16 = vld [vmem:[%s9297_s1 + $0x37c] ss:$12 sps:$4 sm:$0xff]   ;;  %s6144_s10 = sshll.u32 %s9309_s24, 6 }
  0x1b   : > { %v583_v43 = vor.u32 %v582_v40, %v578_v35  ;;  %v611_v0 = vrot.slane %v609_v61, 1  ;;  %v315_v12 = vmax.bf16 %v7231_v24, %v305_v10  ;;  %v317_v13 = vmax.bf16 %v7231_v24, %v307_v11  ;;  %v311_v15 = vld [vmem:[%s7356_s21 + $0x24] sm:$0xff]  ;;  %v6592_v27 = vld [vmem:[%s9297_s1 + $0x394] ss:$12 sps:$4 sm:$0xff]   ;;  %v6595_v37 = vld [vmem:[%s9297_s1 + $0x390] ss:$12 sps:$4 sm:$0xff]   ;;  %s302_s13 = scalar_lea.vmem %s9303_s7, %s6144_s10 }
  0x1c   : > { %6291 = vmatpush3.bf16.msra.mxu1 %v6551_v17  ;;  %v607_v60 = vor.u32 %v605_v54, %v587_v41  ;;  %v6589_v17 = vld [vmem:[%s9297_s1 + $0x80] ss:$12 sps:$4 sm:$0xff]   ;;  %v321_v20 = vmax.bf16 %v7231_v24, %v311_v15  ;;  %v6590_v21 = vld [vmem:[%s9297_s1 + $0x378] ss:$12 sps:$4 sm:$0xff]   ;;  %vm4761_vm9 = vsmask.f32 6400 }
  0x1d   : > { %1026 = vmatpush1.bf16.msra.mxu0 %v6552_v18  ;;  %6292 = vmatprep.subr.bf16.mxu1 %v7229_v1  ;;  %v7413_v46 = vsel %vm552_vm1, %v583_v43, %v587_v41  ;;  %v7494_v18 = vor.u32 %v619_v7, %v611_v0  ;;  %v7501_v22 = vcombine.high %v315_v12, %v317_v13  ;;  %v6591_v25 = vld [vmem:[%s9297_s1 + $0x158] ss:$12 sps:$4 sm:$0xff]   ;;  %v6611_v7 = vld [vmem:[%s9297_s1 + $0x3f4] ss:$12 sps:$4 sm:$0xff]  }
  0x1e   : > { %1027 = vmatprep.subr.bf16.mxu0 %v6553_v19  ;;  %v7464_v4 = vsel %vm552_vm1, %v607_v60, %v611_v0  ;;  %v319_v19 = vmax.bf16 %v7231_v24, %v309_v14  ;;  %v7503_v23 = vcombine.low %v315_v12, %v317_v13  ;;  %v6594_v35 = vld [vmem:[%s9297_s1 + $0x98] ss:$12 sps:$4 sm:$0xff]   ;;  %v6601_v60 = vld [vmem:[%s9297_s1 + $0x3c0] ss:$12 sps:$4 sm:$0xff]   ;;  %v6609_v13 = vld [vmem:[%s9297_s1 + $0x3f0] ss:$12 sps:$4 sm:$0xff]  }
  0x1f   : > { %v566_v28 = vshrl.u32 %v7501_v22, 16  ;;  %v6603_v54 = vld [vmem:[%s9297_s1 + $0x3c4] ss:$12 sps:$4 sm:$0xff]   ;;  %v6615_v15 = vld [vmem:[%s9297_s1 + $0x40c] ss:$12 sps:$4 sm:$0xff]  }
  0x20   : > { %6293 = vmatpush3.bf16.msra.mxu1 %v6555_v29  ;;  %v7508_v26 = vcombine.high %v319_v19, %v321_v20  ;;  %v568_v29 = vshll.u32 %v7501_v22, 16  ;;  %v554_v40 = vshrl.u32 %v7503_v23, 16  ;;  %v6612_v12 = vld [vmem:[%s9297_s1 + $0x1b8] ss:$12 sps:$4 sm:$0xff]  }
  0x21   : > { %1028 = vmatpush1.bf16.msra.mxu0 %v6556_v30  ;;  %6294 = vmatprep.subr.bf16.mxu1 %v7229_v1  ;;  %v7515_v30 = vcombine.low %v319_v19, %v321_v20  ;;  %v6613_v20 = vld [vmem:[%s9297_s1 + $0x408] ss:$12 sps:$4 sm:$0xff]  }
  0x22   : > { %1029 = vmatprep.subr.bf16.mxu0 %v6557_v33  ;;  %v556_v33 = vshll.u32 %v7503_v23, 16  ;;  %v570_v36 = vrot.slane %v568_v29, 1  ;;  %v597_v53 = vshrl.u32 %v7508_v26, 16  ;;  %v6623_v29 = vld [vmem:[%s9297_s1 + $0x43c] ss:$12 sps:$4 sm:$0xff]  }
  0x23   : > { %v561_v43 = vshll.u32 %v7515_v30, 16 }
  0x24   : > { %6295 = vmatpush3.bf16.msra.mxu1 %v6559_v34  ;;  %v573_v34 = vshll.u32 %v7508_v26, 16  ;;  %v571_v41 = vor.u32 %v570_v36, %v566_v28  ;;  %v6617_v28 = vld [vmem:[%s9297_s1 + $0x420] ss:$12 sps:$4 sm:$0xff]   ;;  %v6628_v36 = vld [vmem:[%s9297_s1 + $0x218] ss:$12 sps:$4 sm:$0xff]  }
  0x25   : > { %1030 = vmatpush1.bf16.msra.mxu0 %v6560_v38  ;;  %6190 = vmatprep.subr.bf16.mxu1 %v6561_v39  ;;  %v6596_v38 = vld [vmem:[%s9297_s1 + $0x170] ss:$12 sps:$4 sm:$0xff]  }
  0x26   : > { %1031 = vmatprep.subr.bf16.mxu0 %v6562_v42  ;;  %v575_v39 = vrot.slane %v573_v34, 1  ;;  %v558_v42 = vrot.slane %v556_v33, 1  ;;  %v6624_v33 = vld [vmem:[%s9297_s1 + $0x200] ss:$12 sps:$4 sm:$0xff]   ;;  %v6621_v34 = vld [vmem:[%s9297_s1 + $0x438] ss:$12 sps:$4 sm:$0xff]  }
  0x27   : > { %6297 = vmatmul.mubr.bf16.vlgmr.msra.gmra.mrb[0].mxu1 %v7413_v46 }
  0x28   : > { %6191 = vmatpush3.bf16.msra.mxu1 %v6564_v44  ;;  %6300 = vmatprep.mubr.msk.bf16.mxu1 %vm7230_vm0, %v7229_v1  ;;  %v6597_v44 = vld [vmem:[%s9297_s1 + $0x3ac] ss:$12 sps:$4 sm:$0xff]  }
  0x29   : > { %1032 = vmatpush1.bf16.msra.mxu0 %v6565_v45  ;;  %6192 = vmatprep.subr.bf16.mxu1 %v6566_v47  ;;  %v7536_v45 = vsel %vm552_vm1, %v571_v41, %v575_v39  ;;  %v6599_v47 = vld [vmem:[%s9297_s1 + $0xb0] ss:$12 sps:$4 sm:$0xff]   ;;  %v6633_v41 = vld [vmem:[%s9297_s1 + $0x548] ss:$12 sps:$4 sm:$0xff]  }
  0x2a   : > { %1033 = vmatprep.subr.bf16.mxu0 %v6567_v48  ;;  %1047 = vmatprep.mubr.bf16.mxu0 %v7536_v45  ;;  %v313_v48 = vld [vmem:[%s7356_s21 + $0x30] sm:$0x33] }
  0x2b   : > { %v323_v52 = vmax.bf16 %v7231_v24, %v313_v48  ;;  %v6638_v48 = vld [vmem:[%s9297_s1 + $0x320] ss:$12 sps:$4 sm:$0xff]  }
  0x2c   : > { %6193 = vmatpush3.bf16.msra.mxu1 %v6569_v49  ;;  %v6600_v49 = vld [vmem:[%s9297_s1 + $0x3a8] ss:$12 sps:$4 sm:$0xff]  }
  0x2d   : > { %1034 = vmatpush1.bf16.msra.mxu0 %v6570_v50  ;;  %6194 = vmatprep.subr.bf16.mxu1 %v6571_v51  ;;  %v559_v50 = vor.u32 %v558_v42, %v554_v40  ;;  %v563_v51 = vrot.slane %v561_v43, 1  ;;  %v6632_v40 = vld [vmem:[%s9297_s1 + $0x230] ss:$12 sps:$4 sm:$0xff]   ;;  %v6634_v42 = vld [vmem:[%s9297_s1 + $0x308] ss:$12 sps:$4 sm:$0xff]  }
  0x2e   : > { %1035 = vmatprep.subr.bf16.mxu0 %v6572_v55  ;;  %v6604_v55 = vld [vmem:[%s9297_s1 + $0x188] ss:$12 sps:$4 sm:$0xff]  }
  0x2f   : > { %6301 = vmatmul.mubr.bf16.gmra.mrb[4].mxu1 %v7464_v4  ;;  %v7564_v61 = vsel %vm552_vm1, %v559_v50, %v563_v51  ;;  %v6635_v43 = vld [vmem:[%s9297_s1 + $0x488] ss:$12 sps:$4 sm:$0xff]   ;;  %v6640_v50 = vld [vmem:[%s9297_s1 + $0x260] ss:$12 sps:$4 sm:$0xff]  }
  0x30   : > { %6195 = vmatpush3.bf16.msra.mxu1 %v6574_v57  ;;  %6304 = vmatprep.mubr.msk.bf16.mxu1 %vm7230_vm0, %v7229_v1  ;;  %v7554_v57 = vcombine.high %v323_v52, %v323_v52 }
  0x31   : > { %1036 = vmatpush1.bf16.msra.mxu0 %v6575_v58  ;;  %6196 = vmatprep.subr.bf16.mxu1 %v6576_v59  ;;  %v7556_v58 = vcombine.low %v323_v52, %v323_v52  ;;  %v589_v59 = vshrl.u32 %v7515_v30, 16  ;;  %v6642_v52 = vld [vmem:[%s9297_s1 + $0x338] ss:$12 sps:$4 sm:$0xff]  }
  0x32   : > { %1037 = vmatprep.subr.bf16.mxu0 %v6577_v62  ;;  %v599_v62 = vor.u32 %v597_v53, %v575_v39  ;;  %v616_v11 = vshrl.u32 %v7554_v57, 16  ;;  %v6629_v39 = vld [vmem:[%s9297_s1 + $0x468] ss:$12 sps:$4 sm:$0xff]   ;;  %v6644_v53 = vld [vmem:[%s9297_s1 + $0x278] ss:$12 sps:$4 sm:$0xff]  }
  0x33   : > { %v593_v0 = vshll.u32 %v7556_v58, 16  ;;  %v613_v19 = vshrl.u32 %v7556_v58, 16 }
  0x34   : > { %6197 = vmatpush3.bf16.msra.mxu1 %v6579_v63  ;;  %v601_v63 = vshll.u32 %v7554_v57, 16 }
  0x35   : > { %1038 = vmatpush1.bf16.msra.mxu0 %v6580_v2  ;;  %6198 = vmatprep.subr.bf16.mxu1 %v6581_v3  ;;  %v6607_v2 = vld [vmem:[%s9297_s1 + $0x3dc] ss:$12 sps:$4 sm:$0xff]   ;;  %v595_v10 = vrot.slane %v593_v0, 1  ;;  %v1977_v0 = vrot.slane %v7501_v22, 1 }
  0x36   : > { %1039 = vmatprep.subr.bf16.mxu0 %v6582_v5  ;;  %v603_v3 = vrot.slane %v601_v63, 1  ;;  %v6608_v5 = vld [vmem:[%s9297_s1 + $0x1a0] ss:$12 sps:$4 sm:$0xff]   ;;  %v6651_v63 = vld [vmem:[%s9297_s1 + $0x4e8] ss:$12 sps:$4 sm:$0xff]  }
  0x37   : > { %6305 = vmatmul.mubr.bf16.gmra.mrb[8].mxu1 %v7494_v18 }
  0x38   : > { %6199 = vmatpush3.bf16.msra.mxu1 %v6584_v6  ;;  %1796 = vmatprep.mubr.bf16.mxu1 %v7501_v22  ;;  %v6605_v6 = vld [vmem:[%s9297_s1 + $0x3d8] ss:$12 sps:$4 sm:$0xff]  }
  0x39   : > { %1040 = vmatpush1.bf16.msra.mxu0 %v6585_v8  ;;  %6200 = vmatprep.subr.bf16.mxu1 %v6586_v9  ;;  %v7584_v8 = vsel %vm552_vm1, %v599_v62, %v603_v3  ;;  %v591_v9 = vor.u32 %v589_v59, %v563_v51  ;;  %v6641_v51 = vld [vmem:[%s9297_s1 + $0x578] ss:$12 sps:$4 sm:$0xff]   ;;  %v6647_v59 = vld [vmem:[%s9297_s1 + $0x4d0] ss:$12 sps:$4 sm:$0xff]   ;;  %v6649_v62 = vld [vmem:[%s9297_s1 + $0x5a8] ss:$12 sps:$4 sm:$0xff]  }
  0x3a   : > { %1041 = vmatprep.subr.bf16.mxu0 %v6587_v16  ;;  %v7602_v16 = vor.u32 %v616_v11, %v603_v3  ;;  %v6652_v3 = vld [vmem:[%s9297_s1 + $0x2a8] ss:$12 sps:$4 sm:$0xff]   ;;  %v6657_v11 = vld [vmem:[%s9297_s1 + $0x5d8] ss:$12 sps:$4 sm:$0xff]  }
  0x3b   : > { %v7597_v14 = vsel %vm552_vm1, %v591_v9, %v595_v10  ;;  %v6656_v9 = vld [vmem:[%s9297_s1 + $0x2c0] ss:$12 sps:$4 sm:$0xff]  }
  0x3c   : > { %6201 = vmatpush3.bf16.msra.mxu1 %v6589_v17  ;;  %v6616_v17 = vld [vmem:[%s9297_s1 + $0x1d0] ss:$12 sps:$4 sm:$0xff]  }
  0x3d   : > { %1042 = vmatpush1.bf16.msra.mxu0 %v6590_v21  ;;  %6202 = vmatprep.subr.bf16.mxu1 %v6591_v25  ;;  %v6619_v21 = vld [vmem:[%s9297_s1 + $0x424] ss:$12 sps:$4 sm:$0xff]   ;;  %v6620_v25 = vld [vmem:[%s9297_s1 + $0x1e8] ss:$12 sps:$4 sm:$0xff]  }
  0x3e   : > { %1043 = vmatprep.subr.bf16.mxu0 %v6592_v27  ;;  %v7622_v27 = vor.u32 %v613_v19, %v595_v10  ;;  %v1974_v19 = vrot.slane %v7503_v23, 1 }
  0x40   : > { %6203 = vmatpush3.bf16.msra.mxu1 %v6594_v35  ;;  %v6627_v35 = vld [vmem:[%s9297_s1 + $0x454] ss:$12 sps:$4 sm:$0xff]  }
  0x41   : > { %1044 = vmatpush1.bf16.msra.mxu0 %v6595_v37  ;;  %6204 = vmatprep.subr.bf16.mxu1 %v6596_v38  ;;  %v6625_v37 = vld [vmem:[%s9297_s1 + $0x450] ss:$12 sps:$4 sm:$0xff]   ;;  %v6631_v38 = vld [vmem:[%s9297_s1 + $0x46c] ss:$12 sps:$4 sm:$0xff]  }
  0x42   : > { %1045 = vmatprep.subr.bf16.mxu0 %v6597_v44  ;;  %v6636_v44 = vld [vmem:[%s9297_s1 + $0x248] ss:$12 sps:$4 sm:$0xff]  }
  0x44   : > { %6205 = vmatpush3.bf16.msra.mxu1 %v6599_v47  ;;  %v6637_v47 = vld [vmem:[%s9297_s1 + $0x560] ss:$12 sps:$4 sm:$0xff]  }
  0x45   : > { %1046 = vmatpush1.bf16.msra.mxu0 %v6600_v49  ;;  %6308 = vmatprep.subr.bf16.mxu1 %v7229_v1  ;;  %v6639_v49 = vld [vmem:[%s9297_s1 + $0x4a0] ss:$12 sps:$4 sm:$0xff]  }
  0x46   : > { %1076 = vmatprep.subr.bf16.mxu0 %v6603_v54  ;;  %v6645_v54 = vld [vmem:[%s9297_s1 + $0x590] ss:$12 sps:$4 sm:$0xff]  }
  0x47   : > { %1797 = vmatmul.mubr.bf16.vlgmr.msra.gmra.mrb[12].mxu1 %v7503_v23 }
  0x48   : > { %6309 = vmatpush3.bf16.msra.mxu1 %v6604_v55  ;;  %1048 = vmatmul.mubr.bf16.vlgmr.msra.gmra.mrb[0].mxu0 %v7564_v61  ;;  %v6646_v55 = vld [vmem:[%s9297_s1 + $0x350] ss:$12 sps:$4 sm:$0xff]  }
  0x49   : > { %1077 = vmatpush1.bf16.msra.mxu0 %v6601_v60  ;;  %6310 = vmatprep.subr.bf16.mxu1 %v7229_v1  ;;  %v6648_v60 = vld [vmem:[%s9297_s1 + $0x290] ss:$12 sps:$4 sm:$0xff]  }
  0x4a   : > { %1078 = vmatprep.subr.bf16.mxu0 %v6607_v2  ;;  %1057 = vmatprep.mubr.bf16.mxu0 %v7584_v8  ;;  %v1978_v2 = vrot.slane %v7508_v26, 1 }
  0x4b   : > { %1804 = vmatprep.mubr.bf16.mxu1 %v7508_v26 }
  0x4c   : > { %6311 = vmatpush3.bf16.msra.mxu1 %v6608_v5  ;;  %v6653_v5 = vld [vmem:[%s9297_s1 + $0x5c0] ss:$12 sps:$4 sm:$0xff]   ;;  %v7750_v10 = vsel %vm1973_vm2, %v1977_v0, %v1978_v2  ;;  %v6700_v0 = vld [vmem:[%s9297_s1 + $0xd8] ss:$12 sps:$4 sm:$0xff]  }
  0x4d   : > { %1079 = vmatpush1.bf16.msra.mxu0 %v6605_v6  ;;  %6312 = vmatprep.subr.bf16.mxu1 %v7229_v1  ;;  %v6654_v6 = vld [vmem:[%s9297_s1 + $0x380] ss:$12 sps:$4 sm:$0xff]  }
  0x4e   : > { %1080 = vmatprep.subr.bf16.mxu0 %v6611_v7  ;;  %v6655_v7 = vld [vmem:[%s9297_s1 + $0x500] ss:$12 sps:$4 sm:$0xff]  }
  0x4f   : > { %1805 = vmatmul.mubr.bf16.gmra.mrb[16].mxu1 %v7515_v30 }
  0x50   : > { %6313 = vmatpush3.bf16.msra.mxu1 %v6612_v12  ;;  %1058 = vmatmul.mubr.bf16.gmra.mrb[4].mxu0 %v7597_v14  ;;  %v6658_v12 = vld [vmem:[%s9297_s1 + $0x398] ss:$12 sps:$4 sm:$0xff]  }
  0x51   : > { %1081 = vmatpush1.bf16.msra.mxu0 %v6609_v13  ;;  %6314 = vmatprep.subr.bf16.mxu1 %v7229_v1  ;;  %v6660_v13 = vld [vmem:[%s9297_s1 + $0x2d8] ss:$12 sps:$4 sm:$0xff]  }
  0x52   : > { %1082 = vmatprep.subr.bf16.mxu0 %v6615_v15  ;;  %1067 = vmatprep.mubr.bf16.mxu0 %v7602_v16  ;;  %v6661_v15 = vld [vmem:[%s9297_s1 + $0x5f0] ss:$12 sps:$4 sm:$0xff]  }
  0x53   : > { %1812 = vmatprep.mubr.bf16.mxu1 %v7554_v57 }
  0x54   : > { %6315 = vmatpush3.bf16.msra.mxu1 %v6616_v17  ;;  %v6663_v17 = vld [vmem:[%s9297_s1 + $0x530] ss:$12 sps:$4 sm:$0xff]  }
  0x55   : > { %1083 = vmatpush1.bf16.msra.mxu0 %v6613_v20  ;;  %6316 = vmatprep.subr.bf16.mxu1 %v7229_v1  ;;  %v1975_v20 = vrot.slane %v7515_v30, 1 }
  0x56   : > { %1084 = vmatprep.subr.bf16.mxu0 %v6619_v21  ;;  %v6664_v21 = vld [vmem:[%s9297_s1 + $0x2f0] ss:$12 sps:$4 sm:$0xff]  }
  0x57   : > { %1813 = vmatmul.mubr.bf16.gmra.mrb[20].mxu1 %v7556_v58 }
  0x58   : > { %6317 = vmatpush3.bf16.msra.mxu1 %v6620_v25  ;;  %1068 = vmatmul.mubr.bf16.gmra.mrb[8].mxu0 %v7622_v27  ;;  %v6667_v25 = vld [vmem:[%s9297_s1 + $0x4] ss:$12 sps:$4 sm:$0xff]  }
  0x59   : > { %1085 = vmatpush1.bf16.msra.mxu0 %v6617_v28  ;;  %6318 = vmatprep.subr.bf16.mxu1 %v7229_v1  ;;  %v7784_v28 = vrot.slane %v7554_v57, 1 }
  0x5a   : > { %1086 = vmatprep.subr.bf16.mxu0 %v6623_v29  ;;  %1108 = vmatprep.mubr.bf16.mxu0 %v7231_v24  ;;  %v7787_v29 = vsel %vm1973_vm2, %v1974_v19, %v1975_v20  ;;  %v6721_v19 = vld [vmem:[%s9297_s1 + $0x180] ss:$12 sps:$4 sm:$0xff]  }
  0x5b   : > { %6324 = vmatprep.mubr.msk.bf16.mxu1 %vm7230_vm0, %v7229_v1 }
  0x5c   : > { %6319 = vmatpush3.bf16.msra.mxu1 %v6624_v33  ;;  %v6668_v33 = vld [vmem:[%s9297_s1 + $0x608] ss:$12 sps:$4 sm:$0xff]  }
  0x5d   : > { %1087 = vmatpush1.bf16.msra.mxu0 %v6621_v34  ;;  %6320 = vmatprep.subr.bf16.mxu1 %v7229_v1  ;;  %v6665_v34 = vld [vmem:[%s9297_s1] ss:$12 sps:$4 sm:$0xff]  }
  0x5e   : > { %1088 = vmatprep.subr.bf16.mxu0 %v6627_v35  ;;  %v6671_v35 = vld [vmem:[%s9297_s1 + $0x1c] ss:$12 sps:$4 sm:$0xff]  }
  0x60   : > { %6321 = vmatpush3.bf16.msra.mxu1 %v6628_v36  ;;  %v7802_v36 = vsel %vm1973_vm2, %v1978_v2, %v7784_v28  ;;  %v6705_v2 = vld [vmem:[%s9297_s1 + $0xf4] ss:$12 sps:$4 sm:$0xff]  }
  0x61   : > { %1089 = vmatpush1.bf16.msra.mxu0 %v6625_v37  ;;  %6322 = vmatprep.subr.bf16.mxu1 %v7229_v1  ;;  %v6672_v37 = vld [vmem:[%s9297_s1 + $0x620] ss:$12 sps:$4 sm:$0xff]  }
  0x62   : > { %1090 = vmatprep.subr.bf16.mxu0 %v6631_v38  ;;  %v7809_v38 = vrot.slane %v7556_v58, 1 }
  0x64   : > { %6323 = vmatpush3.bf16.msra.mxu1 %v6632_v40  ;;  %v6676_v40 = vld [vmem:[%s9297_s1 + $0x638] ss:$12 sps:$4 sm:$0xff]  }
  0x65   : > { %1091 = vmatpush1.bf16.msra.mxu0 %v6629_v39  ;;  %6235 = vmatprep.subr.bf16.mxu1 %v6633_v41  ;;  %v6669_v39 = vld [vmem:[%s9297_s1 + $0x18] ss:$12 sps:$4 sm:$0xff]   ;;  %v7825_v41 = vsel %vm1973_vm2, %v1975_v20, %v7809_v38  ;;  %v6726_v20 = vld [vmem:[%s9297_s1 + $0x19c] ss:$12 sps:$4 sm:$0xff]  }
  0x66   : > { %6145 = vmatprep.subr.bf16.mxu0 %v6634_v42  ;;  %v6673_v42 = vld [vmem:[%s9297_s1 + $0x30] ss:$12 sps:$4 sm:$0xff]  }
  0x67   : > { %6325 = vmatmul.mubr.bf16.vlgmr.msra.gmra.mrb[24].mxu1 %v7383_v31 }
  0x68   : > { %1109 = vmatmul.mubr.bf16.vlgmr.msra.gmra.mrb[0].mxu0 %v7413_v46  ;;  %6236 = vmatpush3.bf16.msra.mxu1 %v6635_v43  ;;  %v6643_v46 = vld [vmem:[%s9297_s1 + $0x4b8] ss:$12 sps:$4 sm:$0xff]   ;;  %v6680_v43 = vld [vmem:[%s9297_s1 + $0x650] ss:$12 sps:$4 sm:$0xff]  }
  0x69   : > { %6146 = vmatpush3.bf16.msra.mxu0 %v6636_v44  ;;  %6237 = vmatprep.subr.bf16.mxu1 %v6637_v47  ;;  %v6677_v44 = vld [vmem:[%s9297_s1 + $0x48] ss:$12 sps:$4 sm:$0xff]   ;;  %v6683_v47 = vld [vmem:[%s9297_s1 + $0x64] ss:$12 sps:$4 sm:$0xff]  }
  0x6a   : > { %6147 = vmatprep.subr.bf16.mxu0 %v6638_v48  ;;  %1118 = vmatprep.mubr.bf16.mxu0 %v7231_v24  ;;  %v6684_v48 = vld [vmem:[%s9297_s1 + $0x668] ss:$12 sps:$4 sm:$0xff]  }
  0x6b   : > { %6328 = vmatprep.mubr.msk.bf16.mxu1 %vm7230_vm0, %v7229_v1 }
  0x6c   : > { %6238 = vmatpush3.bf16.msra.mxu1 %v6639_v49  ;;  %v6681_v49 = vld [vmem:[%s9297_s1 + $0x60] ss:$12 sps:$4 sm:$0xff]  }
  0x6d   : > { %6148 = vmatpush3.bf16.msra.mxu0 %v6640_v50  ;;  %6239 = vmatprep.subr.bf16.mxu1 %v6641_v51  ;;  %v6687_v50 = vld [vmem:[%s9297_s1 + $0x7c] ss:$12 sps:$4 sm:$0xff]   ;;  %v6691_v51 = vld [vmem:[%s9297_s1 + $0x94] ss:$12 sps:$4 sm:$0xff]  }
  0x6e   : > { %6149 = vmatprep.subr.bf16.mxu0 %v6642_v52  ;;  %v6692_v52 = vld [vmem:[%s9297_s1 + $0x698] ss:$12 sps:$4 sm:$0xff]  }
  0x6f   : > { %6329 = vmatmul.mubr.bf16.gmra.mrb[28].mxu1 %v7385_v32 }
  0x70   : > { %1119 = vmatmul.mubr.bf16.gmra.mrb[4].mxu0 %v7464_v4  ;;  %6240 = vmatpush3.bf16.msra.mxu1 %v6643_v46  ;;  %v6650_v4 = vld [vmem:[%s9297_s1 + $0x368] ss:$12 sps:$4 sm:$0xff]   ;;  %v6689_v46 = vld [vmem:[%s9297_s1 + $0x90] ss:$12 sps:$4 sm:$0xff]  }
  0x71   : > { %6150 = vmatpush3.bf16.msra.mxu0 %v6644_v53  ;;  %6241 = vmatprep.subr.bf16.mxu1 %v6645_v54  ;;  %v6695_v53 = vld [vmem:[%s9297_s1 + $0xac] ss:$12 sps:$4 sm:$0xff]   ;;  %v1981_v54 = vrot.slane %v7385_v32, 1 }
  0x72   : > { %6151 = vmatprep.subr.bf16.mxu0 %v6646_v55  ;;  %1128 = vmatprep.mubr.bf16.mxu0 %v7231_v24  ;;  %v6693_v55 = vld [vmem:[%s9297_s1 + $0xa8] ss:$12 sps:$4 sm:$0xff]  }
  0x73   : > { %6332 = vmatprep.mubr.msk.bf16.mxu1 %vm7230_vm0, %v7229_v1 }
  0x74   : > { %6242 = vmatpush3.bf16.msra.mxu1 %v6647_v59  ;;  %v6699_v59 = vld [vmem:[%s9297_s1 + $0xc4] ss:$12 sps:$4 sm:$0xff]  }
  0x75   : > { %6152 = vmatpush3.bf16.msra.mxu0 %v6648_v60  ;;  %6243 = vmatprep.subr.bf16.mxu1 %v6649_v62  ;;  %v6697_v62 = vld [vmem:[%s9297_s1 + $0xc0] ss:$12 sps:$4 sm:$0xff]  }
  0x76   : > { %6153 = vmatprep.subr.bf16.mxu0 %v6650_v4  ;;  %v6702_v4 = vld [vmem:[%s9297_s1 + $0xdc] ss:$12 sps:$4 sm:$0xff]  }
  0x77   : > { %6333 = vmatmul.mubr.bf16.gmra.mrb[32].mxu1 %v7439_v56 }
  0x78   : > { %1129 = vmatmul.mubr.bf16.gmra.mrb[12].mxu0 %v7494_v18  ;;  %6244 = vmatpush3.bf16.msra.mxu1 %v6651_v63  ;;  %v6659_v18 = vld [vmem:[%s9297_s1 + $0x518] ss:$12 sps:$4 sm:$0xff]   ;;  %v7908_v63 = vrot.slane %v7439_v56, 1 }
  0x79   : > { %6154 = vmatpush3.bf16.msra.mxu0 %v6652_v3  ;;  %6245 = vmatprep.subr.bf16.mxu1 %v6653_v5  ;;  %v6703_v5 = vld [vmem:[%s9297_s1 + $0xf0] ss:$12 sps:$4 sm:$0xff]  }
  0x7a   : > { %6155 = vmatprep.subr.bf16.mxu0 %v6654_v6  ;;  %1169 = vmatprep.mubr.bf16.mxu0 %v7536_v45  ;;  %v6662_v45 = vld [vmem:[%s9297_s1 + $0x3b0] ss:$12 sps:$4 sm:$0xff]   ;;  %v7918_v3 = vsel %vm1973_vm2, %v1981_v54, %v7908_v63  ;;  %v6708_v6 = vld [vmem:[%s9297_s1 + $0x10c] ss:$12 sps:$4 sm:$0xff]  }
  0x7b   : > { %2536 = vmatprep.mubr.bf16.mxu1 %v7750_v10 }
  0x7c   : > { %6246 = vmatpush3.bf16.msra.mxu1 %v6655_v7  ;;  %v6706_v7 = vld [vmem:[%s9297_s1 + $0x108] ss:$12 sps:$4 sm:$0xff]  }
  0x7d   : > { %6156 = vmatpush3.bf16.msra.mxu0 %v6656_v9  ;;  %6247 = vmatprep.subr.bf16.mxu1 %v6657_v11  ;;  %v6711_v9 = vld [vmem:[%s9297_s1 + $0x124] ss:$12 sps:$4 sm:$0xff]   ;;  %v6709_v11 = vld [vmem:[%s9297_s1 + $0x120] ss:$12 sps:$4 sm:$0xff]  }
  0x7e   : > { %6157 = vmatprep.subr.bf16.mxu0 %v6658_v12  ;;  %v6714_v12 = vld [vmem:[%s9297_s1 + $0x13c] ss:$12 sps:$4 sm:$0xff]  }
  0x80   : > { %6248 = vmatpush3.bf16.msra.mxu1 %v6659_v18  ;;  %v6717_v18 = vld [vmem:[%s9297_s1 + $0x154] ss:$12 sps:$4 sm:$0xff]  }
  0x81   : > { %6158 = vmatpush3.bf16.msra.mxu0 %v6660_v13  ;;  %6249 = vmatprep.subr.bf16.mxu1 %v6661_v15  ;;  %v6715_v13 = vld [vmem:[%s9297_s1 + $0x150] ss:$12 sps:$4 sm:$0xff]   ;;  %v6720_v15 = vld [vmem:[%s9297_s1 + $0x16c] ss:$12 sps:$4 sm:$0xff]  }
  0x82   : > { %6159 = vmatprep.subr.bf16.mxu0 %v6662_v45  ;;  %v6718_v45 = vld [vmem:[%s9297_s1 + $0x168] ss:$12 sps:$4 sm:$0xff]  }
  0x84   : > { %6250 = vmatpush3.bf16.msra.mxu1 %v6663_v17  ;;  %v6723_v17 = vld [vmem:[%s9297_s1 + $0x184] ss:$12 sps:$4 sm:$0xff]  }
  0x85   : > { %6160 = vmatpush3.bf16.msra.mxu0 %v6664_v21  ;;  %6336 = vmatprep.subr.bf16.mxu1 %v7229_v1  ;;  %v6724_v21 = vld [vmem:[%s9297_s1 + $0x198] ss:$12 sps:$4 sm:$0xff]  }
  0x86   : > { %1642 = vmatprep.subr.bf16.mxu0 %v6667_v25  ;;  %v6729_v25 = vld [vmem:[%s9297_s1 + $0x1b4] ss:$12 sps:$4 sm:$0xff]  }
  0x87   : > { %2537 = vmatmul.mubr.bf16.vlgmr.msra.gmra.mrb[36].mxu1 %v7787_v29 }
  0x88   : > { %1170 = vmatmul.mubr.bf16.vlgmr.msra.gmra.mrb[16].mxu0 %v7564_v61  ;;  %6337 = vmatpush3.bf16.msra.mxu1 %v6668_v33  ;;  %v6675_v61 = vld [vmem:[%s9297_s1 + $0x34] ss:$12 sps:$4 sm:$0xff]   ;;  %v6727_v33 = vld [vmem:[%s9297_s1 + $0x1b0] ss:$12 sps:$4 sm:$0xff]  }
  0x89   : > { %1643 = vmatpush1.bf16.msra.mxu0 %v6665_v34  ;;  %6338 = vmatprep.subr.bf16.mxu1 %v7229_v1  ;;  %v6732_v34 = vld [vmem:[%s9297_s1 + $0x1cc] ss:$12 sps:$4 sm:$0xff]  }
  0x8a   : > { %1644 = vmatprep.subr.bf16.mxu0 %v6671_v35  ;;  %2544 = vmatprep.mubr.bf16.mxu1 %v7802_v36  ;;  %v6733_v35 = vld [vmem:[%s9297_s1 + $0x1e0] ss:$12 sps:$4 sm:$0xff]  }
  0x8b   : > { %1177 = vmatprep.mubr.bf16.mxu0 %v7584_v8  ;;  %v6679_v8 = vld [vmem:[%s9297_s1 + $0x4c] ss:$12 sps:$4 sm:$0xff]  }
  0x8c   : > { %6339 = vmatpush3.bf16.msra.mxu1 %v6672_v37  ;;  %v6738_v37 = vld [vmem:[%s9297_s1 + $0x1fc] ss:$12 sps:$4 sm:$0xff]  }
  0x8d   : > { %1645 = vmatpush1.bf16.msra.mxu0 %v6669_v39  ;;  %6340 = vmatprep.subr.bf16.mxu1 %v7229_v1  ;;  %v6739_v39 = vld [vmem:[%s9297_s1 + $0x210] ss:$12 sps:$4 sm:$0xff]  }
  0x8e   : > { %1646 = vmatprep.subr.bf16.mxu0 %v6675_v61  ;;  %v6744_v61 = vld [vmem:[%s9297_s1 + $0x22c] ss:$12 sps:$4 sm:$0xff]  }
  0x8f   : > { %2545 = vmatmul.mubr.bf16.gmra.mrb[40].mxu1 %v7825_v41 }
  0x90   : > { %6341 = vmatpush3.bf16.msra.mxu1 %v6676_v40  ;;  %2552 = vmatprep.mubr.bf16.mxu1 %v7784_v28  ;;  %v6747_v40 = vld [vmem:[%s9297_s1 + $0x484] ss:$12 sps:$4 sm:$0xff]  }
  0x91   : > { %1647 = vmatpush1.bf16.msra.mxu0 %v6673_v42  ;;  %6342 = vmatprep.subr.bf16.mxu1 %v7229_v1  ;;  %v6745_v42 = vld [vmem:[%s9297_s1 + $0x480] ss:$12 sps:$4 sm:$0xff]  }
  0x92   : > { %1648 = vmatprep.subr.bf16.mxu0 %v6679_v8  ;;  %1178 = vmatmul.mubr.bf16.gmra.mrb[20].mxu0 %v7597_v14  ;;  %v6688_v14 = vld [vmem:[%s9297_s1 + $0x680] ss:$12 sps:$4 sm:$0xff]   ;;  %v6750_v8 = vld [vmem:[%s9297_s1 + $0x49c] ss:$12 sps:$4 sm:$0xff]  }
  0x93   : > { %1185 = vmatprep.mubr.bf16.mxu0 %v7602_v16  ;;  %v6685_v16 = vld [vmem:[%s9297_s1 + $0x78] ss:$12 sps:$4 sm:$0xff]  }
  0x94   : > { %6343 = vmatpush3.bf16.msra.mxu1 %v6680_v43  ;;  %v6748_v43 = vld [vmem:[%s9297_s1 + $0x498] ss:$12 sps:$4 sm:$0xff]  }
  0x95   : > { %1649 = vmatpush1.bf16.msra.mxu0 %v6677_v44  ;;  %6344 = vmatprep.subr.bf16.mxu1 %v7229_v1  ;;  %v6753_v44 = vld [vmem:[%s9297_s1 + $0x4b4] ss:$12 sps:$4 sm:$0xff]  }
  0x96   : > { %1650 = vmatprep.subr.bf16.mxu0 %v6683_v47  ;;  %v6751_v47 = vld [vmem:[%s9297_s1 + $0x4b0] ss:$12 sps:$4 sm:$0xff]  }
  0x97   : > { %2553 = vmatmul.mubr.bf16.gmra.mrb[44].mxu1 %v7809_v38 }
  0x98   : > { %6345 = vmatpush3.bf16.msra.mxu1 %v6684_v48  ;;  %6352 = vmatprep.mubr.msk.bf16.mxu1 %vm7230_vm0, %v7229_v1  ;;  %v6756_v48 = vld [vmem:[%s9297_s1 + $0x4cc] ss:$12 sps:$4 sm:$0xff]  }
  0x99   : > { %1651 = vmatpush1.bf16.msra.mxu0 %v6681_v49  ;;  %6346 = vmatprep.subr.bf16.mxu1 %v7229_v1  ;;  %v6759_v49 = vld [vmem:[%s9297_s1 + $0x4e4] ss:$12 sps:$4 sm:$0xff]  }
  0x9a   : > { %1652 = vmatprep.subr.bf16.mxu0 %v6687_v50  ;;  %1186 = vmatmul.mubr.bf16.gmra.mrb[24].mxu0 %v7622_v27  ;;  %v1980_v27 = vrot.slane %v7383_v31, 1  ;;  %v6757_v50 = vld [vmem:[%s9297_s1 + $0x4e0] ss:$12 sps:$4 sm:$0xff]  }
  0x9b   : > { %1674 = vmatprep.mubr.bf16.mxu0 %v7501_v22  ;;  %v6696_v22 = vld [vmem:[%s9297_s1 + $0x6b0] ss:$12 sps:$4 sm:$0xff]  }
  0x9c   : > { %6347 = vmatpush3.bf16.msra.mxu1 %v6688_v14  ;;  %v7896_v60 = vsel %vm1973_vm2, %v1980_v27, %v1981_v54  ;;  %v6762_v14 = vld [vmem:[%s9297_s1 + $0x4fc] ss:$12 sps:$4 sm:$0xff]   ;;  %v6771_v27 = vld [vmem:[%s9297_s1 + $0x544] ss:$12 sps:$4 sm:$0xff]   ;;  %v6769_v54 = vld [vmem:[%s9297_s1 + $0x540] ss:$12 sps:$4 sm:$0xff]  }
  0x9d   : > { %1653 = vmatpush1.bf16.msra.mxu0 %v6685_v16  ;;  %6348 = vmatprep.subr.bf16.mxu1 %v7229_v1  ;;  %v6765_v16 = vld [vmem:[%s9297_s1 + $0x514] ss:$12 sps:$4 sm:$0xff]  }
  0x9e   : > { %1654 = vmatprep.subr.bf16.mxu0 %v6691_v51 }
  0xa0   : > { %6349 = vmatpush3.bf16.msra.mxu1 %v6692_v52  ;;  %v6763_v52 = vld [vmem:[%s9297_s1 + $0x510] ss:$12 sps:$4 sm:$0xff]  }
  0xa1   : > { %1655 = vmatpush1.bf16.msra.mxu0 %v6689_v46  ;;  %6350 = vmatprep.subr.bf16.mxu1 %v7229_v1 }
  0xa2   : > { %1656 = vmatprep.subr.bf16.mxu0 %v6695_v53  ;;  %v6768_v53 = vld [vmem:[%s9297_s1 + $0x52c] ss:$12 sps:$4 sm:$0xff]  }
  0xa4   : > { %6351 = vmatpush3.bf16.msra.mxu1 %v6696_v22 }
  0xa5   : > { %1657 = vmatpush1.bf16.msra.mxu0 %v6693_v55 }
  0xa6   : > { %1658 = vmatprep.subr.bf16.mxu0 %v6699_v59  ;;  %v6774_v59 = vld [vmem:[%s9297_s1 + $0x55c] ss:$12 sps:$4 sm:$0xff]  }
  0xa7   : > { %6353 = vmatmul.mubr.bf16.vlgmr.msra.gmra.mrb[48].mxu1 %v7896_v60 }
  0xa8   : > { %6356 = vmatprep.mubr.msk.bf16.mxu1 %vm7230_vm0, %v7229_v1 }
  0xa9   : > { %1659 = vmatpush1.bf16.msra.mxu0 %v6697_v62 }
  0xaa   : > { %1660 = vmatprep.subr.bf16.mxu0 %v6702_v4 }
  0xad   : > { %1661 = vmatpush1.bf16.msra.mxu0 %v6700_v0 }
  0xae   : > { %1662 = vmatprep.subr.bf16.mxu0 %v6705_v2  ;;  %v6772_v2 = vld [vmem:[%s9297_s1 + $0x558] ss:$12 sps:$4 sm:$0xff]  }
  0xaf   : > { %6357 = vmatmul.mubr.bf16.gmra.mrb[52].mxu1 %v7918_v3 }
  0xb0   : > { %6360 = vmatprep.mubr.msk.bf16.mxu1 %vm7230_vm0, %v7229_v1  ;;  %v6712_v1 = vld [vmem:[%s9297_s1 + $0x138] ss:$12 sps:$4 sm:$0xff]  }
  0xb1   : > { %1663 = vmatpush1.bf16.msra.mxu0 %v6703_v5  ;;  %v6777_v5 = vld [vmem:[%s9297_s1 + $0x574] ss:$12 sps:$4 sm:$0xff]  }
  0xb2   : > { %1664 = vmatprep.subr.bf16.mxu0 %v6708_v6  ;;  %v6775_v6 = vld [vmem:[%s9297_s1 + $0x570] ss:$12 sps:$4 sm:$0xff]  }
  0xb5   : > { %1665 = vmatpush1.bf16.msra.mxu0 %v6706_v7 }
  0xb6   : > { %1666 = vmatprep.subr.bf16.mxu0 %v6711_v9  ;;  %v6780_v9 = vld [vmem:[%s9297_s1 + $0x58c] ss:$12 sps:$4 sm:$0xff]  }
  0xb7   : > { %6361 = vmatmul.mubr.bf16.gmra.mrb[56].mxu1 %v7908_v63 }
  0xb9   : > { %1667 = vmatpush1.bf16.msra.mxu0 %v6709_v11 }
  0xba   : > { %1668 = vmatprep.subr.bf16.mxu0 %v6714_v12 }
  0xbd   : > { %1669 = vmatpush1.bf16.msra.mxu0 %v6712_v1 }
  0xbe   : > { %1670 = vmatprep.subr.bf16.mxu0 %v6717_v18  ;;  %v6778_v18 = vld [vmem:[%s9297_s1 + $0x588] ss:$12 sps:$4 sm:$0xff]  }
  0xc1   : > { %1671 = vmatpush1.bf16.msra.mxu0 %v6715_v13  ;;  %v6783_v13 = vld [vmem:[%s9297_s1 + $0x5a4] ss:$12 sps:$4 sm:$0xff]  }
  0xc2   : > { %1672 = vmatprep.subr.bf16.mxu0 %v6720_v15  ;;  %v6781_v15 = vld [vmem:[%s9297_s1 + $0x5a0] ss:$12 sps:$4 sm:$0xff]  }
  0xc5   : > { %1673 = vmatpush1.bf16.msra.mxu0 %v6718_v45  ;;  %v6786_v45 = vld [vmem:[%s9297_s1 + $0x5bc] ss:$12 sps:$4 sm:$0xff]  }
  0xc6   : > { %1703 = vmatprep.subr.bf16.mxu0 %v6723_v17  ;;  %v6784_v17 = vld [vmem:[%s9297_s1 + $0x5b8] ss:$12 sps:$4 sm:$0xff]  }
  0xc8   : > { %1675 = vmatmul.mubr.bf16.vlgmr.msra.gmra.mrb[0].mxu0 %v7503_v23  ;;  %v6730_v23 = vld [vmem:[%s9297_s1 + $0x1c8] ss:$12 sps:$4 sm:$0xff]  }
  0xc9   : > { %1704 = vmatpush1.bf16.msra.mxu0 %v6721_v19  ;;  %1684 = vmatprep.mubr.bf16.mxu0 %v7508_v26  ;;  %v6735_v26 = vld [vmem:[%s9297_s1 + $0x1e4] ss:$12 sps:$4 sm:$0xff]   ;;  %v6789_v19 = vld [vmem:[%s9297_s1 + $0x5d4] ss:$12 sps:$4 sm:$0xff]  }
  0xca   : > { %1705 = vmatprep.subr.bf16.mxu0 %v6726_v20 }
  0xcd   : > { %1706 = vmatpush1.bf16.msra.mxu0 %v6724_v21 }
  0xce   : > { %1707 = vmatprep.subr.bf16.mxu0 %v6729_v25 }
  0xd0   : > { %1685 = vmatmul.mubr.bf16.gmra.mrb[4].mxu0 %v7515_v30  ;;  %v6736_v30 = vld [vmem:[%s9297_s1 + $0x1f8] ss:$12 sps:$4 sm:$0xff]  }
  0xd1   : > { %1708 = vmatpush1.bf16.msra.mxu0 %v6727_v33  ;;  %1694 = vmatprep.mubr.bf16.mxu0 %v7554_v57  ;;  %v6741_v57 = vld [vmem:[%s9297_s1 + $0x214] ss:$12 sps:$4 sm:$0xff]  }
  0xd2   : > { %1709 = vmatprep.subr.bf16.mxu0 %v6732_v34  ;;  %v6787_v34 = vld [vmem:[%s9297_s1 + $0x5d0] ss:$12 sps:$4 sm:$0xff]  }
  0xd5   : > { %1710 = vmatpush1.bf16.msra.mxu0 %v6730_v23 }
  0xd6   : > { %1711 = vmatprep.subr.bf16.mxu0 %v6735_v26  ;;  %v6792_v26 = vld [vmem:[%s9297_s1 + $0x5ec] ss:$12 sps:$4 sm:$0xff]  }
  0xd8   : > { %1695 = vmatmul.mubr.bf16.gmra.mrb[28].mxu0 %v7556_v58  ;;  %v6742_v58 = vld [vmem:[%s9297_s1 + $0x228] ss:$12 sps:$4 sm:$0xff]  }
  0xd9   : > { %1712 = vmatpush1.bf16.msra.mxu0 %v6733_v35  ;;  %1735 = vmatprep.mubr.bf16.mxu0 %v7231_v24 }
  0xda   : > { %1713 = vmatprep.subr.bf16.mxu0 %v6738_v37  ;;  %v6790_v37 = vld [vmem:[%s9297_s1 + $0x5e8] ss:$12 sps:$4 sm:$0xff]  }
  0xdd   : > { %1714 = vmatpush1.bf16.msra.mxu0 %v6736_v30  ;;  %v6795_v30 = vld [vmem:[%s9297_s1 + $0x604] ss:$12 sps:$4 sm:$0xff]  }
  0xde   : > { %1715 = vmatprep.subr.bf16.mxu0 %v6741_v57 }
  0xe1   : > { %1716 = vmatpush1.bf16.msra.mxu0 %v6739_v39 }
  0xe2   : > { %1717 = vmatprep.subr.bf16.mxu0 %v6744_v61 }
  0xe5   : > { %1718 = vmatpush1.bf16.msra.mxu0 %v6742_v58 }
  0xe6   : > { %2382 = vmatprep.subr.bf16.mxu0 %v6747_v40  ;;  %v6793_v40 = vld [vmem:[%s9297_s1 + $0x600] ss:$12 sps:$4 sm:$0xff]  }
  0xe8   : > { %1736 = vmatmul.mubr.bf16.vlgmr.msra.gmra.mrb[0].mxu0 %v7383_v31  ;;  %v6754_v31 = vld [vmem:[%s9297_s1 + $0x4c8] ss:$12 sps:$4 sm:$0xff]  }
  0xe9   : > { %2383 = vmatpush1.bf16.msra.mxu0 %v6745_v42  ;;  %1745 = vmatprep.mubr.bf16.mxu0 %v7231_v24 }
  0xea   : > { %2384 = vmatprep.subr.bf16.mxu0 %v6750_v8  ;;  %v6798_v8 = vld [vmem:[%s9297_s1 + $0x61c] ss:$12 sps:$4 sm:$0xff]  }
  0xed   : > { %2385 = vmatpush1.bf16.msra.mxu0 %v6748_v43 }
  0xee   : > { %2386 = vmatprep.subr.bf16.mxu0 %v6753_v44  ;;  %v6796_v44 = vld [vmem:[%s9297_s1 + $0x618] ss:$12 sps:$4 sm:$0xff]  }
  0xf0   : > { %1746 = vmatmul.mubr.bf16.gmra.mrb[4].mxu0 %v7385_v32  ;;  %v6760_v32 = vld [vmem:[%s9297_s1 + $0x4f8] ss:$12 sps:$4 sm:$0xff]  }
  0xf1   : > { %2387 = vmatpush1.bf16.msra.mxu0 %v6751_v47  ;;  %1755 = vmatprep.mubr.bf16.mxu0 %v7231_v24  ;;  %v6801_v47 = vld [vmem:[%s9297_s1 + $0x634] ss:$12 sps:$4 sm:$0xff]  }
  0xf2   : > { %2388 = vmatprep.subr.bf16.mxu0 %v6756_v48 }
  0xf5   : > { %2389 = vmatpush1.bf16.msra.mxu0 %v6754_v31 }
  0xf6   : > { %2390 = vmatprep.subr.bf16.mxu0 %v6759_v49 }
  0xf8   : > { %1756 = vmatmul.mubr.bf16.gmra.mrb[32].mxu0 %v7439_v56 }
  0xf9   : > { %2391 = vmatpush1.bf16.msra.mxu0 %v6757_v50  ;;  %2414 = vmatprep.mubr.bf16.mxu0 %v7750_v10  ;;  %v6766_v10 = vld [vmem:[%s9297_s1 + $0x528] ss:$12 sps:$4 sm:$0xff]  }
  0xfa   : > { %2392 = vmatprep.subr.bf16.mxu0 %v6762_v14  ;;  %v8056_v51 = vpop.f32.mrb[0].mxu1 }
  0xfb   : > { %v6298_v46 = vpop.f32.mrb[1].mxu1 }
  0xfc   : > { %v8064_v56 = vpop.f32.mrb[2].mxu1  ;;  %v6804_v46 = vld [vmem:[%s9297_s1 + $0x64c] ss:$12 sps:$4 sm:$0xff]  }
  0xfd   : > { %2393 = vmatpush1.bf16.msra.mxu0 %v6760_v32  ;;  %v6299_v22 = vpop.f32.mrb[3].mxu1 }
  0xfe   : > { %2394 = vmatprep.subr.bf16.mxu0 %v6765_v16  ;;  %v6807_v22 = vld [vmem:[%s9297_s1 + $0x664] ss:$12 sps:$4 sm:$0xff]  }
 0x101   : > { %2395 = vmatpush1.bf16.msra.mxu0 %v6763_v52 }
 0x102   : > { %2396 = vmatprep.subr.bf16.mxu0 %v6768_v53  ;;  %v8075_v55 = vpop.f32.mrb[4].mxu1  ;;  %v6802_v53 = vld [vmem:[%s9297_s1 + $0x648] ss:$12 sps:$4 sm:$0xff]  }
 0x103   : > { %v6302_v62 = vpop.f32.mrb[5].mxu1 }
 0x104   : > { %v8080_v4 = vpop.f32.mrb[6].mxu1 }
 0x105   : > { %2397 = vmatpush1.bf16.msra.mxu0 %v6766_v10  ;;  %v6303_v0 = vpop.f32.mrb[7].mxu1  ;;  %v6805_v10 = vld [vmem:[%s9297_s1 + $0x660] ss:$12 sps:$4 sm:$0xff]  }
 0x106   : > { %2398 = vmatprep.subr.bf16.mxu0 %v6771_v27  ;;  %v6813_v27 = vld [vmem:[%s9297_s1 + $0x694] ss:$12 sps:$4 sm:$0xff]  }
 0x109   : > { %2399 = vmatpush1.bf16.msra.mxu0 %v6769_v54 }
 0x10a   : > { %2400 = vmatprep.subr.bf16.mxu0 %v6774_v59  ;;  %v8091_v7 = vpop.f32.mrb[8].mxu1 }
 0x10b   : > { %v6306_v11 = vpop.f32.mrb[9].mxu1 }
 0x10c   : > { %v1246_v12 = vpop.f32.mrb[10].mxu1 }
 0x10d   : > { %2401 = vmatpush1.bf16.msra.mxu0 %v6772_v2  ;;  %v6307_v1 = vpop.f32.mrb[11].mxu1  ;;  %v6816_v2 = vld [vmem:[%s9297_s1 + $0x6ac] ss:$12 sps:$4 sm:$0xff]  }
 0x10e   : > { %2402 = vmatprep.subr.bf16.mxu0 %v6777_v5  ;;  %v6814_v5 = vld [vmem:[%s9297_s1 + $0x6a8] ss:$12 sps:$4 sm:$0xff]  }
 0x111   : > { %2403 = vmatpush1.bf16.msra.mxu0 %v6775_v6 }
 0x112   : > { %2404 = vmatprep.subr.bf16.mxu0 %v6780_v9 }
 0x115   : > { %2405 = vmatpush1.bf16.msra.mxu0 %v6778_v18 }
 0x116   : > { %2406 = vmatprep.subr.bf16.mxu0 %v6783_v13 }
 0x119   : > { %2407 = vmatpush1.bf16.msra.mxu0 %v6781_v15 }
 0x11a   : > { %2408 = vmatprep.subr.bf16.mxu0 %v6786_v45  ;;  %v6206_v20 = vpop.f32.mrb[12].mxu1 }
 0x11b   : > { %v6207_v21 = vpop.f32.mrb[13].mxu1 }
 0x11c   : > { %v8114_v25 = vadd.f32 %v6207_v21, %v6206_v20  ;;  %v6209_v33 = vpop.f32.mrb[14].mxu1 }
 0x11d   : > { %2409 = vmatpush1.bf16.msra.mxu0 %v6784_v17  ;;  %v6210_v23 = vpop.f32.mrb[15].mxu1 }
 0x11e   : > { %2410 = vmatprep.subr.bf16.mxu0 %v6789_v19  ;;  %v8122_v35 = vadd.f32 %v6210_v23, %v6209_v33  ;;  %v6817_v33 = vld [vmem:[%s9299_s3] ss:$8 sps:$4 sm:$0xff]   ;;  %v6822_v23 = vld [vmem:[%s9299_s3 + $0x14] ss:$8 sps:$4 sm:$0xff]  }
 0x121   : > { %2411 = vmatpush1.bf16.msra.mxu0 %v6787_v34 }
 0x122   : > { %2412 = vmatprep.subr.bf16.mxu0 %v6792_v26  ;;  %v6212_v57 = vpop.f32.mrb[16].mxu1  ;;  %v6829_v26 = vld [vmem:[%s9299_s3 + $0x110] ss:$8 sps:$4 sm:$0xff]  }
 0x123   : > { %v6213_v39 = vpop.f32.mrb[17].mxu1 }
 0x124   : > { %v8130_v61 = vadd.f32 %v6213_v39, %v6212_v57  ;;  %v6215_v58 = vpop.f32.mrb[18].mxu1  ;;  %v6837_v57 = vld [vmem:[%s9299_s3 + $0x124] ss:$8 sps:$4 sm:$0xff]   ;;  %v6835_v39 = vld [vmem:[%s9299_s3 + $0x120] ss:$8 sps:$4 sm:$0xff]  }
 0x125   : > { %2413 = vmatpush1.bf16.msra.mxu0 %v6790_v37  ;;  %v6216_v42 = vpop.f32.mrb[19].mxu1  ;;  %v6831_v37 = vld [vmem:[%s9299_s3 + $0x114] ss:$8 sps:$4 sm:$0xff]  }
 0x126   : > { %2443 = vmatprep.subr.bf16.mxu0 %v6795_v30  ;;  %v8138_v43 = vadd.f32 %v6216_v42, %v6215_v58  ;;  %v6820_v30 = vld [vmem:[%s9299_s3 + $0x10] ss:$8 sps:$4 sm:$0xff]   ;;  %3043 = vmatprep.subr.bf16.mxu1 %v6831_v37  ;;  %v6843_v58 = vld [vmem:[%s9299_s3 + $0x134] ss:$8 sps:$4 sm:$0xff]  }
 0x127   : > { %3044 = vmatpush1.bf16.msra.mxu1 %v6829_v26  ;;  %v6828_v42 = vld [vmem:[%s9299_s3 + $0x34] ss:$8 sps:$4 sm:$0xff]  }
 0x128   : > { %2415 = vmatmul.mubr.bf16.vlgmr.msra.gmra.mrb[0].mxu0 %v7787_v29  ;;  %v6799_v29 = vld [vmem:[%s9297_s1 + $0x630] ss:$12 sps:$4 sm:$0xff]   ;;  %3045 = vmatprep.subr.bf16.mxu1 %v6837_v57 }
 0x129   : > { %2444 = vmatpush1.bf16.msra.mxu0 %v6793_v40  ;;  %2424 = vmatprep.mubr.bf16.mxu0 %v7802_v36  ;;  %v6823_v40 = vld [vmem:[%s9299_s3 + $0x20] ss:$8 sps:$4 sm:$0xff]  }
 0x12a   : > { %2445 = vmatprep.subr.bf16.mxu0 %v6798_v8  ;;  %v6218_v48 = vpop.f32.mrb[20].mxu1  ;;  %v6841_v8 = vld [vmem:[%s9299_s3 + $0x130] ss:$8 sps:$4 sm:$0xff]  }
 0x12b   : > { %v1069_v31 = vpop.f32.mrb[8].mxu0  ;;  %v6219_v49 = vpop.f32.mrb[21].mxu1  ;;  %3046 = vmatpush1.bf16.msra.mxu1 %v6835_v39 }
 0x12c   : > { %v1071_v50 = vpop.f32.mrb[9].mxu0  ;;  %v8148_v14 = vadd.f32 %v6219_v49, %v6218_v48  ;;  %v6221_v32 = vpop.f32.mrb[22].mxu1  ;;  %3047 = vmatprep.subr.bf16.mxu1 %v6843_v58  ;;  %v6850_v58 = vld [vmem:[%s9299_s3 + $0x70] ss:$8 sps:$4 sm:$0xff]  }
 0x12d   : > { %2446 = vmatpush1.bf16.msra.mxu0 %v6796_v44  ;;  %v1073_v16 = vpop.f32.mrb[10].mxu0  ;;  %v6222_v52 = vpop.f32.mrb[23].mxu1  ;;  %v6849_v44 = vld [vmem:[%s9299_s3 + $0x144] ss:$8 sps:$4 sm:$0xff]  }
 0x12e   : > { %2447 = vmatprep.subr.bf16.mxu0 %v6801_v47  ;;  %v1074_v36 = vpop.f32.mrb[11].mxu0  ;;  %v6826_v47 = vld [vmem:[%s9299_s3 + $0x30] ss:$8 sps:$4 sm:$0xff]   ;;  %v6855_v52 = vld [vmem:[%s9299_s3 + $0x154] ss:$8 sps:$4 sm:$0xff]  }
 0x12f   : > { %3048 = vmatpush1.bf16.msra.mxu1 %v6841_v8 }
 0x130   : > { %2425 = vmatmul.mubr.bf16.gmra.mrb[4].mxu0 %v7825_v41  ;;  %v6810_v41 = vld [vmem:[%s9297_s1 + $0x67c] ss:$12 sps:$4 sm:$0xff]   ;;  %3049 = vmatprep.subr.bf16.mxu1 %v6849_v44 }
 0x131   : > { %2448 = vmatpush1.bf16.msra.mxu0 %v6799_v29  ;;  %2434 = vmatprep.mubr.bf16.mxu0 %v7784_v28  ;;  %v6808_v28 = vld [vmem:[%s9297_s1 + $0x678] ss:$12 sps:$4 sm:$0xff]  }
 0x132   : > { %2449 = vmatprep.subr.bf16.mxu0 %v6804_v46 }
 0x135   : > { %2450 = vmatpush1.bf16.msra.mxu0 %v6802_v53 }
 0x136   : > { %2451 = vmatprep.subr.bf16.mxu0 %v6807_v22  ;;  %v6832_v22 = vld [vmem:[%s9299_s3 + $0x40] ss:$8 sps:$4 sm:$0xff]  }
 0x138   : > { %2435 = vmatmul.mubr.bf16.gmra.mrb[36].mxu0 %v7809_v38  ;;  %v6811_v38 = vld [vmem:[%s9297_s1 + $0x690] ss:$12 sps:$4 sm:$0xff]  }
 0x139   : > { %2452 = vmatpush1.bf16.msra.mxu0 %v6805_v10  ;;  %2475 = vmatprep.mubr.bf16.mxu0 %v7231_v24 }
 0x13a   : > { %2453 = vmatprep.subr.bf16.mxu0 %v6810_v41  ;;  %v8178_v54 = vpop.f32.mrb[24].mxu1 }
 0x13b   : > { %v6326_v59 = vpop.f32.mrb[25].mxu1 }
 0x13c   : > { %v8180_v62 = vpop.f32.mrb[26].mxu1 }
 0x13d   : > { %2454 = vmatpush1.bf16.msra.mxu0 %v6808_v28  ;;  %v6327_v0 = vpop.f32.mrb[27].mxu1  ;;  %v6840_v28 = vld [vmem:[%s9299_s3 + $0x54] ss:$8 sps:$4 sm:$0xff]  }
 0x13e   : > { %2455 = vmatprep.subr.bf16.mxu0 %v6813_v27  ;;  %v6861_v0 = vld [vmem:[%s9299_s3 + $0x164] ss:$8 sps:$4 sm:$0xff]  }
 0x141   : > { %2456 = vmatpush1.bf16.msra.mxu0 %v6811_v38  ;;  %v6853_v38 = vld [vmem:[%s9299_s3 + $0x150] ss:$8 sps:$4 sm:$0xff]  }
 0x142   : > { %2457 = vmatprep.subr.bf16.mxu0 %v6816_v2  ;;  %v8191_v6 = vpop.f32.mrb[28].mxu1 }
 0x143   : > { %v6330_v9 = vpop.f32.mrb[29].mxu1 }
 0x144   : > { %v8193_v11 = vpop.f32.mrb[30].mxu1 }
 0x145   : > { %2458 = vmatpush1.bf16.msra.mxu0 %v6814_v5  ;;  %v6331_v12 = vpop.f32.mrb[31].mxu1 }
 0x146   : > { %v6846_v12 = vld [vmem:[%s9299_s3 + $0x64] ss:$8 sps:$4 sm:$0xff]  }
 0x148   : > { %2476 = vmatmul.mubr.bf16.vlgmr.msra.gmra.mrb[0].mxu0 %v7896_v60  ;;  %v6819_v60 = vld [vmem:[%s9299_s3 + $0x4] ss:$8 sps:$4 sm:$0xff]  }
 0x149   : > { %2485 = vmatprep.mubr.bf16.mxu0 %v7231_v24  ;;  %3323 = vmatprep.subr.bf16.mxu0 %v6819_v60 }
 0x14a   : > { %v8197_v1 = vpop.f32.mrb[32].mxu1  ;;  %3324 = vmatpush1.bf16.msra.mxu0 %v6817_v33 }
 0x14b   : > { %v1130_v18 = vpop.f32.mrb[12].mxu0  ;;  %v6334_v13 = vpop.f32.mrb[33].mxu1  ;;  %3325 = vmatprep.subr.bf16.mxu0 %v6822_v23  ;;  %v6852_v23 = vld [vmem:[%s9299_s3 + $0x74] ss:$8 sps:$4 sm:$0xff]  }
 0x14c   : > { %v8199_v15 = vadd.f32 %v1130_v18, %v1069_v31  ;;  %v1132_v45 = vpop.f32.mrb[13].mxu0  ;;  %v1873_v17 = vpop.f32.mrb[34].mxu1  ;;  %v6834_v31 = vld [vmem:[%s9299_s3 + $0x44] ss:$8 sps:$4 sm:$0xff]  }
 0x14d   : > { %v8201_v19 = vadd.f32 %v1132_v45, %v1071_v50  ;;  %v1134_v20 = vpop.f32.mrb[14].mxu0  ;;  %v6335_v21 = vpop.f32.mrb[35].mxu1 }
 0x14e   : > { %v1135_v34 = vpop.f32.mrb[15].mxu0  ;;  %3326 = vmatpush1.bf16.msra.mxu0 %v6820_v30  ;;  %v6867_v20 = vld [vmem:[%s9299_s3 + $0x174] ss:$8 sps:$4 sm:$0xff]  }
 0x150   : > { %2486 = vmatmul.mubr.bf16.gmra.mrb[4].mxu0 %v7918_v3  ;;  %v6825_v3 = vld [vmem:[%s9299_s3 + $0x24] ss:$8 sps:$4 sm:$0xff]  }
 0x151   : > { %2495 = vmatprep.mubr.bf16.mxu0 %v7231_v24  ;;  %3327 = vmatprep.subr.bf16.mxu0 %v6825_v3  ;;  %v6873_v3 = vld [vmem:[%s9299_s3 + $0x184] ss:$8 sps:$4 sm:$0xff]  }
 0x152   : > { %3328 = vmatpush1.bf16.msra.mxu0 %v6823_v40 }
 0x153   : > { %3329 = vmatprep.subr.bf16.mxu0 %v6828_v42  ;;  %v6858_v42 = vld [vmem:[%s9299_s3 + $0x84] ss:$8 sps:$4 sm:$0xff]  }
 0x156   : > { %3330 = vmatpush1.bf16.msra.mxu0 %v6826_v47 }
 0x157   : > { %3331 = vmatprep.subr.bf16.mxu0 %v6834_v31 }
 0x158   : > { %2496 = vmatmul.mubr.bf16.gmra.mrb[40].mxu0 %v7908_v63  ;;  %v6847_v63 = vld [vmem:[%s9299_s3 + $0x140] ss:$8 sps:$4 sm:$0xff]  }
 0x159   : > { %3050 = vmatpush1.bf16.msra.mxu1 %v6847_v63 }
 0x15a   : > { %v6251_v48 = vpop.f32.mrb[36].mxu1  ;;  %3051 = vmatprep.subr.bf16.mxu1 %v6855_v52  ;;  %3332 = vmatpush1.bf16.msra.mxu0 %v6832_v22  ;;  %v2633_v52 = vlaneseq  ;;  %v6862_v22 = vld [vmem:[%s9299_s3 + $0x90] ss:$8 sps:$4 sm:$0xff]  }
 0x15b   : > { %v6161_v49 = vpop.f32.mrb[16].mxu0  ;;  %v6252_v50 = vpop.f32.mrb[37].mxu1  ;;  %3333 = vmatprep.subr.bf16.mxu0 %v6840_v28 }
 0x15c   : > { %v6162_v32 = vpop.f32.mrb[17].mxu0  ;;  %v8257_v29 = vadd.f32 %v6252_v50, %v6251_v48  ;;  %v6254_v16 = vpop.f32.mrb[38].mxu1  ;;  %v8342_v28 = vshrl.u32 %v2633_v52, 7 }
 0x15d   : > { %v6163_v36 = vadd.f32 %v6162_v32, %v6161_v49  ;;  %v6164_v46 = vpop.f32.mrb[18].mxu0  ;;  %v6255_v53 = vpop.f32.mrb[39].mxu1  ;;  %3052 = vmatpush1.bf16.msra.mxu1 %v6853_v38  ;;  %v8353_v38 = vld [vmem:[%s9298_s2] sm:$0x7] }
 0x15e   : > { %v6165_v10 = vpop.f32.mrb[19].mxu0  ;;  %v8265_v41 = vadd.f32 %v6255_v53, %v6254_v16  ;;  %3053 = vmatprep.subr.bf16.mxu1 %v6861_v0  ;;  %v6864_v16 = vld [vmem:[%s9299_s3 + $0x94] ss:$8 sps:$4 sm:$0xff]   ;;  %vm2669_vm3 = vcmp.eq.s32.totalorder %v8342_v28, 0 }
 0x15f   : > { %v1228_v27 = vadd.f32 %v6163_v36, %v8056_v51  ;;  %v6166_v59 = vadd.f32 %v6165_v10, %v6164_v46  ;;  %v6838_v51 = vld [vmem:[%s9299_s3 + $0x50] ss:$8 sps:$4 sm:$0xff]   ;;  %v6870_v10 = vld [vmem:[%s9299_s3 + $0xa4] ss:$8 sps:$4 sm:$0xff]   ;;  %vm5813_vm5 = vmneg %vm2669_vm3 }
 0x160   : > { %3334 = vmatpush1.bf16.msra.mxu0 %v6838_v51  ;;  %vm5814_vm7 = vmpackc.low %vm7232_vm6, %vm5813_vm5 }
 0x161   : > { %v1231_v2 = vadd.f32 %v6166_v59, %v8064_v56  ;;  %v1799_v5 = vadd.f32 %v8114_v25, %v1228_v27  ;;  %v6859_v56 = vld [vmem:[%s9299_s3 + $0x160] ss:$8 sps:$4 sm:$0xff]   ;;  %3335 = vmatprep.subr.bf16.mxu0 %v6846_v12  ;;  %v2643_v59 = vsub.s32 2, %v8342_v28 }
 0x162   : > { %v6257_v9 = vpop.f32.mrb[40].mxu1  ;;  %3054 = vmatpush1.bf16.msra.mxu1 %v6859_v56 }
 0x163   : > { %v8286_v18 = vadd.f32 %v8178_v54, %v1799_v5  ;;  %v1802_v13 = vadd.f32 %v8122_v35, %v1231_v2  ;;  %v6258_v45 = vpop.f32.mrb[41].mxu1  ;;  %v6844_v35 = vld [vmem:[%s9299_s3 + $0x60] ss:$8 sps:$4 sm:$0xff]   ;;  %3055 = vmatprep.subr.bf16.mxu1 %v6867_v20 }
 0x164   : > { %v8292_v25 = vadd.f32 %v6258_v45, %v6257_v9  ;;  %v6260_v17 = vpop.f32.mrb[42].mxu1  ;;  %3336 = vmatpush1.bf16.msra.mxu0 %v6844_v35 }
 0x165   : > { %v8298_v21 = vadd.f32 %v8180_v62, %v1802_v13  ;;  %v6261_v54 = vpop.f32.mrb[43].mxu1  ;;  %v6167_v33 = vpop.f32.mrb[20].mxu0  ;;  %v6865_v62 = vld [vmem:[%s9299_s3 + $0x170] ss:$8 sps:$4 sm:$0xff]   ;;  %3337 = vmatprep.subr.bf16.mxu0 %v6852_v23 }
 0x166   : > { %v8303_v60 = vadd.f32 %v6261_v54, %v6260_v17  ;;  %v6168_v34 = vpop.f32.mrb[21].mxu0  ;;  %3056 = vmatpush1.bf16.msra.mxu1 %v6865_v62 }
 0x167   : > { %v6169_v26 = vadd.f32 %v6168_v34, %v6167_v33  ;;  %v6170_v37 = vpop.f32.mrb[22].mxu0  ;;  %3057 = vmatprep.subr.bf16.mxu1 %v6873_v3 }
 0x168   : > { %v6171_v30 = vpop.f32.mrb[23].mxu0  ;;  %3338 = vmatpush1.bf16.msra.mxu0 %v6850_v58 }
 0x169   : > { %v1236_v57 = vadd.f32 %v6169_v26, %v8075_v55  ;;  %v6172_v39 = vadd.f32 %v6171_v30, %v6170_v37  ;;  %v6871_v55 = vld [vmem:[%s9299_s3 + $0x180] ss:$8 sps:$4 sm:$0xff]   ;;  %3339 = vmatprep.subr.bf16.mxu0 %v6858_v42  ;;  %v6874_v42 = vld [vmem:[%s9299_s3 + $0xb0] ss:$8 sps:$4 sm:$0xff]  }
 0x16a   : > { %v6263_v40 = vpop.f32.mrb[44].mxu1  ;;  %3058 = vmatpush1.bf16.msra.mxu1 %v6871_v55 }
 0x16b   : > { %v6264_v8 = vpop.f32.mrb[45].mxu1  ;;  %v1807_v44 = vadd.f32 %v8130_v61, %v1236_v57  ;;  %v1239_v47 = vadd.f32 %v6172_v39, %v8080_v4  ;;  %v6856_v61 = vld [vmem:[%s9299_s3 + $0x80] ss:$8 sps:$4 sm:$0xff]  }
 0x16c   : > { %v6265_v48 = vadd.f32 %v6264_v8, %v6263_v40  ;;  %v6266_v31 = vpop.f32.mrb[46].mxu1  ;;  %3340 = vmatpush1.bf16.msra.mxu0 %v6856_v61  ;;  %v6885_v61 = vld [vmem:[%s9299_s3 + $0x1a4] ss:$8 sps:$4 sm:$0xff]  }
 0x16d   : > { %v6267_v49 = vpop.f32.mrb[47].mxu1  ;;  %v1810_v50 = vadd.f32 %v8138_v43, %v1239_v47  ;;  %v1863_v63 = vadd.f32 %v8191_v6, %v1807_v44  ;;  %v6173_v32 = vpop.f32.mrb[24].mxu0  ;;  %3341 = vmatprep.subr.bf16.mxu0 %v6864_v16  ;;  %v6879_v31 = vld [vmem:[%s9299_s3 + $0x194] ss:$8 sps:$4 sm:$0xff]  }
 0x16e   : > { %v6174_v4 = vpop.f32.mrb[25].mxu0  ;;  %3059 = vmatprep.subr.bf16.mxu1 %v6879_v31 }
 0x16f   : > { %v1866_v36 = vadd.f32 %v8193_v11, %v1810_v50  ;;  %v6175_v46 = vadd.f32 %v6174_v4, %v6173_v32  ;;  %v6176_v53 = vpop.f32.mrb[26].mxu0  ;;  %v6882_v32 = vld [vmem:[%s9299_s3 + $0xc4] ss:$8 sps:$4 sm:$0xff]   ;;  %v6888_v4 = vld [vmem:[%s9299_s3 + $0xd4] ss:$8 sps:$4 sm:$0xff]  }
 0x170   : > { %v6177_v43 = vpop.f32.mrb[27].mxu0  ;;  %3342 = vmatpush1.bf16.msra.mxu0 %v6862_v22 }
 0x171   : > { %v1244_v6 = vadd.f32 %v6175_v46, %v8091_v7  ;;  %v6868_v7 = vld [vmem:[%s9299_s3 + $0xa0] ss:$8 sps:$4 sm:$0xff]   ;;  %3343 = vmatprep.subr.bf16.mxu0 %v6870_v10 }
 0x172   : > { %v6883_v46 = vld [vmem:[%s9299_s3 + $0x1a0] ss:$8 sps:$4 sm:$0xff]  }
 0x173   : > { %v1815_v11 = vadd.f32 %v8148_v14, %v1244_v6  ;;  %v2644_v14 = vrot.slane %v8353_v38, %v2643_v59 }
 0x174   : > { %3344 = vmatpush1.bf16.msra.mxu0 %v6868_v7 }
 0x175   : > { %v1871_v27 = vadd.f32 %v8197_v1, %v1815_v11 }
 0x17a   : > { %v2594_v0 = vpop.f32.mrb[48].mxu1 }
 0x17b   : > { %v2595_v2 = vadd.f32 %v8257_v29, %v2594_v0  ;;  %v6354_v1 = vpop.f32.mrb[49].mxu1 }
 0x17c   : > { %v2597_v5 = vpop.f32.mrb[50].mxu1 }
 0x17d   : > { %v2618_v51 = vadd.f32 %v2595_v2, %v8286_v18  ;;  %v2598_v9 = vadd.f32 %v8265_v41, %v2597_v5  ;;  %v6355_v12 = vpop.f32.mrb[51].mxu1 }
 0x17e   : > { %v6889_v12 = vld [vmem:[%s9299_s3 + $0x1b0] ss:$8 sps:$4 sm:$0xff]  }
 0x17f   : > { %v2650_v13 = vadd.f32 %v2644_v14, %v2618_v51  ;;  %v2621_v45 = vadd.f32 %v2598_v9, %v8298_v21  ;;  %v6891_v9 = vld [vmem:[%s9299_s3 + $0x1b4] ss:$8 sps:$4 sm:$0xff]  }
 0x181   : > { %v2686_v56 = vmax.f32 %v2650_v13, 0.0  ;;  %v2653_v17 = vadd.f32 %v2644_v14, %v2621_v45  ;;  %v6894_v45 = vld [vmem:[%s9299_s3 + $0xe4] ss:$8 sps:$4 sm:$0xff]  }
 0x182   : > { %v2602_v20 = vpop.f32.mrb[52].mxu1 }
 0x183   : > { %v2711_v29 = vsel %vm2669_vm3, 0.0, %v2686_v56  ;;  %v2689_v54 = vmax.f32 %v2653_v17, 0.0  ;;  %v2603_v33 = vadd.f32 %v8292_v25, %v2602_v20  ;;  %v6358_v35 = vpop.f32.mrb[53].mxu1  ;;  %v8369_v25 = vadd.s32 32, %v8342_v28  ;;  %v6892_v56 = vld [vmem:[%s9299_s3 + $0xe0] ss:$8 sps:$4 sm:$0xff]  }
 0x184   : > { %v2605_v34 = vpop.f32.mrb[54].mxu1  ;;  %v6897_v17 = vld [vmem:[%s9299_s3 + $0x1c4] ss:$8 sps:$4 sm:$0xff]   ;;  %v6895_v20 = vld [vmem:[%s9299_s3 + $0x1c0] ss:$8 sps:$4 sm:$0xff]  }
 0x185   : > { %v8364_v18 = vpack.c.bf16 %v2689_v54, %v2711_v29  ;;  %v2624_v41 = vadd.f32 %v2603_v33, %v1863_v63  ;;  %v2606_v23 = vadd.f32 %v8303_v60, %v2605_v34  ;;  %v6359_v26 = vpop.f32.mrb[55].mxu1  ;;  %v6876_v60 = vld [vmem:[%s9299_s3 + $0xb4] ss:$8 sps:$4 sm:$0xff]   ;;  %v6880_v63 = vld [vmem:[%s9299_s3 + $0xc0] ss:$8 sps:$4 sm:$0xff]   ;;  %vm2678_vm4 = vcmp.eq.s32.totalorder %v8369_v25, 33 }
 0x186   : > { %3345 = vmatprep.subr.bf16.mxu0 %v6876_v60  ;;  %v6900_v29 = vld [vmem:[%s9299_s3 + $0xf4] ss:$8 sps:$4 sm:$0xff]   ;;  %v6898_v54 = vld [vmem:[%s9299_s3 + $0xf0] ss:$8 sps:$4 sm:$0xff]   ;;  %v6906_v34 = vld [vmem:[%s9299_s3 + $0x224] ss:$8 sps:$4 sm:$0xff]  }
 0x187   : > { %v2656_v21 = vadd.f32 %v2644_v14, %v2624_v41  ;;  %v2627_v37 = vadd.f32 %v2606_v23, %v1866_v36  ;;  %v2829_v3 = vshll.u32 %v8364_v18, 16  ;;  %3346 = vmatpush1.bf16.msra.mxu0 %v6874_v42  ;;  %v2827_v16 = vshrl.u32 %v8364_v18, 16  ;;  %v6903_v33 = vld [vmem:[%s9299_s3 + $0x1d4] ss:$8 sps:$4 sm:$0xff]   ;;  %v6901_v35 = vld [vmem:[%s9299_s3 + $0x1d0] ss:$8 sps:$4 sm:$0xff]  }
 0x188   : > { %3347 = vmatprep.subr.bf16.mxu0 %v6882_v32  ;;  %v3479_v53 = vrot.slane %v8364_v18, 1  ;;  %v6909_v41 = vld [vmem:[%s9299_s3 + $0x1e4] ss:$8 sps:$4 sm:$0xff]   ;;  %v6907_v23 = vld [vmem:[%s9299_s3 + $0x1e0] ss:$8 sps:$4 sm:$0xff]   ;;  %v8489_v32 = vsub.s32 1, %v8342_v28 }
 0x189   : > { %v2692_v62 = vmax.f32 %v2656_v21, 0.0  ;;  %v2659_v30 = vadd.f32 %v2644_v14, %v2627_v37  ;;  %v2831_v49 = vrot.slane %v2829_v3, 1  ;;  %v6915_v26 = vld [vmem:[%s9299_s3 + $0x1f4] ss:$8 sps:$4 sm:$0xff]   ;;  %v6913_v37 = vld [vmem:[%s9299_s3 + $0x1f0] ss:$8 sps:$4 sm:$0xff]  }
 0x18a   : > { %v2610_v57 = vpop.f32.mrb[56].mxu1  ;;  %v6936_v25 = vld [vmem:[%s9299_s3 + $0x284] ss:$8 sps:$4 sm:$0xff]  }
 0x18b   : > { %v2695_v39 = vmax.f32 %v2659_v30, 0.0  ;;  %v2611_v58 = vadd.f32 %v6265_v48, %v2610_v57  ;;  %v6362_v40 = vpop.f32.mrb[57].mxu1  ;;  %v6877_v48 = vld [vmem:[%s9299_s3 + $0x190] ss:$8 sps:$4 sm:$0xff]   ;;  %v2832_v6 = vor.u32 %v2831_v49, %v2827_v16  ;;  %3348 = vmatpush1.bf16.msra.mxu0 %v6880_v63  ;;  %v8486_v63 = vsub.s32 0, %v8342_v28 }
 0x18c   : > { %v2613_v8 = vpop.f32.mrb[58].mxu1  ;;  %3060 = vmatpush1.bf16.msra.mxu1 %v6877_v48  ;;  %3349 = vmatprep.subr.bf16.mxu0 %v6888_v4  ;;  %v6919_v40 = vld [vmem:[%s9299_s3 + $0x200] ss:$8 sps:$4 sm:$0xff]   ;;  %v8497_v4 = vrot.slane %v8353_v38, %v8489_v32  ;;  %v6912_v28 = vld [vmem:[%s9299_s3 + $0x234] ss:$8 sps:$4 sm:$0xff]  }
 0x18d   : > { %v8377_v44 = vpack.c.bf16 %v2695_v39, %v2692_v62  ;;  %v2630_v47 = vadd.f32 %v2611_v58, %v1871_v27  ;;  %v6363_v55 = vpop.f32.mrb[59].mxu1  ;;  %3061 = vmatprep.subr.bf16.mxu1 %v6885_v61  ;;  %v6886_v27 = vld [vmem:[%s9299_s3 + $0xd0] ss:$8 sps:$4 sm:$0xff]   ;;  %v6921_v58 = vld [vmem:[%s9299_s3 + $0x204] ss:$8 sps:$4 sm:$0xff]   ;;  %v8493_v61 = vrot.slane %v8353_v38, %v8486_v63 }
 0x18f   : > { %v2662_v50 = vadd.f32 %v2644_v14, %v2630_v47  ;;  %v2834_v52 = vshll.u32 %v8377_v44, 16  ;;  %v3480_v43 = vrot.slane %v8377_v44, 1  ;;  %v2854_v10 = vshrl.u32 %v8377_v44, 16  ;;  %3350 = vmatpush1.bf16.msra.mxu0 %v6886_v27 }
 0x190   : > { %3062 = vmatpush1.bf16.msra.mxu1 %v6883_v46  ;;  %3351 = vmatprep.subr.bf16.mxu0 %v6894_v45  ;;  %v6904_v45 = vld [vmem:[%s9299_s3 + $0x220] ss:$8 sps:$4 sm:$0xff]  }
 0x191   : > { %v2698_v36 = vmax.f32 %v2662_v50, 0.0  ;;  %v2836_v22 = vrot.slane %v2834_v52, 1  ;;  %v8412_v7 = vsel %vm1973_vm2, %v3479_v53, %v3480_v43  ;;  %3063 = vmatprep.subr.bf16.mxu1 %v6891_v9 }
 0x193   : > { %v2723_v11 = vsel %vm2678_vm4, 0.0, %v2698_v36  ;;  %v8415_v0 = vsel %vm552_vm1, %v2832_v6, %v2836_v22  ;;  %v2856_v2 = vor.u32 %v2854_v10, %v2836_v22  ;;  %3352 = vmatpush1.bf16.msra.mxu0 %v6892_v56 }
 0x194   : > { %v2732_v59 = vpack.c.bf16 %v2723_v11, %v2723_v11  ;;  %3064 = vmatpush1.bf16.msra.mxu1 %v6889_v12  ;;  %3353 = vmatprep.subr.bf16.mxu0 %v6900_v29 }
 0x195   : > { %3065 = vmatprep.subr.bf16.mxu1 %v6897_v17 }
 0x196   : > { %v2858_v14 = vshll.u32 %v2732_v59, 16  ;;  %v3486_v1 = vrot.slane %v2732_v59, 1 }
 0x197   : > { %3354 = vmatpush1.bf16.msra.mxu0 %v6898_v54 }
 0x198   : > { %v2860_v5 = vrot.slane %v2858_v14, 1  ;;  %v8418_v51 = vsel %vm1973_vm2, %v3480_v43, %v3486_v1  ;;  %3066 = vmatpush1.bf16.msra.mxu1 %v6895_v20  ;;  %3668 = vmatprep.subr.bf16.mxu0 %v6906_v34 }
 0x199   : > { %3067 = vmatprep.subr.bf16.mxu1 %v6903_v33 }
 0x19a   : > { %v8427_v13 = vsel %vm552_vm1, %v2856_v2, %v2860_v5 }
 0x19c   : > { %3068 = vmatpush1.bf16.msra.mxu1 %v6901_v35 }
 0x19d   : > { %3069 = vmatprep.subr.bf16.mxu1 %v6909_v41 }
 0x1a0   : > { %3070 = vmatpush1.bf16.msra.mxu1 %v6907_v23  ;;  %v6910_v23 = vld [vmem:[%s9299_s3 + $0x230] ss:$8 sps:$4 sm:$0xff]  }
 0x1a1   : > { %3071 = vmatprep.subr.bf16.mxu1 %v6915_v26 }
 0x1a4   : > { %3072 = vmatpush1.bf16.msra.mxu1 %v6913_v37  ;;  %v6918_v37 = vld [vmem:[%s9299_s3 + $0x244] ss:$8 sps:$4 sm:$0xff]  }
 0x1a5   : > { %3073 = vmatprep.subr.bf16.mxu1 %v6921_v58 }
 0x1a8   : > { %3074 = vmatpush1.bf16.msra.mxu1 %v6919_v40 }
 0x1ab   : > { %v1696_v21 = vpop.f32.mrb[28].mxu0 }
 0x1ac   : > { %v1697_v62 = vadd.f32 %v1696_v21, %v8199_v15  ;;  %v1698_v30 = vpop.f32.mrb[29].mxu0  ;;  %v6927_v15 = vld [vmem:[%s9299_s3 + $0x214] ss:$8 sps:$4 sm:$0xff]  }
 0x1ad   : > { %v1699_v3 = vadd.f32 %v1698_v30, %v8201_v19  ;;  %v1700_v57 = vpop.f32.mrb[30].mxu0  ;;  %3096 = vmatprep.subr.bf16.mxu1 %v6927_v15 }
 0x1ae   : > { %v1701_v39 = vpop.f32.mrb[31].mxu0 }
 0x1cb   : > { %v1757_v42 = vpop.f32.mrb[32].mxu0 }
 0x1cc   : > { %v8479_v19 = vadd.f32 %v1757_v42, %v1697_v62  ;;  %v1759_v60 = vpop.f32.mrb[33].mxu0 }
 0x1cd   : > { %v8481_v8 = vadd.f32 %v1759_v60, %v1699_v3  ;;  %v1761_v47 = vpop.f32.mrb[34].mxu0  ;;  %v6916_v60 = vld [vmem:[%s9299_s3 + $0x240] ss:$8 sps:$4 sm:$0xff]  }
 0x1ce   : > { %v1762_v55 = vpop.f32.mrb[35].mxu0 }
 0x20b   : > { %v2436_v48 = vpop.f32.mrb[36].mxu0 }
 0x20c   : > { %v8483_v31 = vpop.f32.mrb[37].mxu0 }
 0x20d   : > { %v2440_v49 = vpop.f32.mrb[38].mxu0 }
 0x20e   : > { %v2441_v50 = vpop.f32.mrb[39].mxu0 }
 0x20f   : > { %v6924_v50 = vld [vmem:[%s9299_s3 + $0x254] ss:$8 sps:$4 sm:$0xff]  }
 0x21b   : > { %v2477_v16 = vpop.f32.mrb[0].mxu0 }
 0x21c   : > { %v2648_v52 = vadd.f32 %v8493_v61, %v2477_v16  ;;  %v2479_v36 = vpop.f32.mrb[1].mxu0 }
 0x21d   : > { %v2649_v46 = vadd.f32 %v8497_v4, %v2479_v36  ;;  %v2481_v53 = vpop.f32.mrb[2].mxu0 }
 0x21e   : > { %v2684_v43 = vmax.f32 %v2648_v52, 0.0  ;;  %v2651_v6 = vadd.f32 %v8493_v61, %v2481_v53  ;;  %v2483_v22 = vpop.f32.mrb[3].mxu0 }
 0x21f   : > { %v2685_v10 = vmax.f32 %v2649_v46, 0.0  ;;  %v2652_v11 = vadd.f32 %v8497_v4, %v2483_v22 }
 0x220   : > { %v2709_v38 = vsel %vm2669_vm3, 0.0, %v2684_v43  ;;  %v2687_v27 = vmax.f32 %v2651_v6, 0.0 }
 0x221   : > { %v2710_v59 = vsel %vm2669_vm3, 0.0, %v2685_v10  ;;  %v2688_v2 = vmax.f32 %v2652_v11, 0.0 }
 0x222   : > { %v2724_v14 = vpack.c.bf16 %v2687_v27, %v2709_v38  ;;  %v5819_v1 = vpack.c.bf16 %v2687_v27, %v2684_v43 }
 0x223   : > { %v2725_v5 = vpack.c.bf16 %v2688_v2, %v2710_v59  ;;  %v5815_v9 = vpack.c.bf16 %v2688_v2, %v2685_v10  ;;  %v2487_v12 = vpop.f32.mrb[4].mxu0  ;;  %v6922_v59 = vld [vmem:[%s9299_s3 + $0x250] ss:$8 sps:$4 sm:$0xff]  }
 0x224   : > { %v2654_v56 = vadd.f32 %v8493_v61, %v2487_v12  ;;  %v2489_v17 = vpop.f32.mrb[5].mxu0  ;;  %v2805_v54 = vshll.u32 %v2724_v14, 16  ;;  %v2803_v39 = vshrl.u32 %v2724_v14, 16  ;;  %v3473_v58 = vrot.slane %v2724_v14, 1 }
 0x225   : > { %v2655_v20 = vadd.f32 %v8497_v4, %v2489_v17  ;;  %v2491_v29 = vpop.f32.mrb[6].mxu0  ;;  %5816 = vmatprep.mubr.msk.bf16.mxu0 %vm5814_vm7, %v5815_v9  ;;  %v2817_v34 = vshll.u32 %v2725_v5, 16  ;;  %v2815_v47 = vshrl.u32 %v2725_v5, 16  ;;  %v3476_v53 = vrot.slane %v2725_v5, 1  ;;  %v6925_v5 = vld [vmem:[%s9299_s3 + $0x210] ss:$8 sps:$4 sm:$0xff]  }
 0x226   : > { %v2657_v33 = vadd.f32 %v8493_v61, %v2491_v29  ;;  %v2493_v35 = vpop.f32.mrb[7].mxu0  ;;  %5820 = vmatmul.mubr.msk.bf16.vlgmr.msra.gmra.mrb[44].mxu0 %vm5814_vm7, %v5819_v1  ;;  %v2690_v26 = vmax.f32 %v2654_v56, 0.0  ;;  %v2807_v3 = vrot.slane %v2805_v54, 1  ;;  %v6928_v17 = vld [vmem:[%s9299_s3 + $0x260] ss:$8 sps:$4 sm:$0xff]  }
 0x227   : > { %v2658_v41 = vadd.f32 %v8497_v4, %v2493_v35  ;;  %3669 = vmatpush1.bf16.msra.mxu0 %v6904_v45  ;;  %v2691_v62 = vmax.f32 %v2655_v20, 0.0  ;;  %v2819_v40 = vrot.slane %v2817_v34, 1 }
 0x228   : > { %v2693_v21 = vmax.f32 %v2657_v33, 0.0  ;;  %3670 = vmatprep.subr.bf16.mxu0 %v6912_v28  ;;  %v2808_v6 = vor.u32 %v2807_v3, %v2803_v39  ;;  %v6931_v33 = vld [vmem:[%s9299_s3 + $0x270] ss:$8 sps:$4 sm:$0xff]  }
 0x229   : > { %v2694_v30 = vmax.f32 %v2658_v41, 0.0  ;;  %v2820_v2 = vor.u32 %v2819_v40, %v2815_v47  ;;  %v6945_v47 = vld [vmem:[%s9299_s3 + $0x2a4] ss:$8 sps:$4 sm:$0xff]  }
 0x22a   : > { %v8525_v57 = vpack.c.bf16 %v2693_v21, %v2690_v26 }
 0x22b   : > { %v8527_v15 = vpack.c.bf16 %v2694_v30, %v2691_v62  ;;  %3671 = vmatpush1.bf16.msra.mxu0 %v6910_v23  ;;  %v2497_v42 = vpop.f32.mrb[40].mxu0 }
 0x22c   : > { %v2498_v55 = vadd.f32 %v2497_v42, %v2436_v48  ;;  %v2499_v49 = vpop.f32.mrb[41].mxu0  ;;  %3672 = vmatprep.subr.bf16.mxu0 %v6918_v37  ;;  %v2810_v16 = vshll.u32 %v8525_v57, 16  ;;  %v3474_v52 = vrot.slane %v8525_v57, 1  ;;  %v2838_v35 = vshrl.u32 %v8525_v57, 16  ;;  %v6939_v42 = vld [vmem:[%s9299_s3 + $0x294] ss:$8 sps:$4 sm:$0xff]  }
 0x22d   : > { %v2500_v36 = vadd.f32 %v2499_v49, %v8483_v31  ;;  %v2501_v46 = vpop.f32.mrb[42].mxu0  ;;  %3365 = vmatprep.mubr.bf16.mxu0 %v8527_v15  ;;  %v3477_v43 = vrot.slane %v8527_v15, 1  ;;  %v2822_v48 = vshll.u32 %v8527_v15, 16  ;;  %v2846_v23 = vshrl.u32 %v8527_v15, 16  ;;  %v6943_v49 = vld [vmem:[%s9299_s3 + $0x2a0] ss:$8 sps:$4 sm:$0xff]  }
 0x22e   : > { %v2628_v22 = vadd.f32 %v2498_v55, %v8479_v19  ;;  %v2502_v10 = vpop.f32.mrb[43].mxu0  ;;  %3366 = vmatmul.mubr.bf16.gmra.mrb[48].mxu0 %v8525_v57  ;;  %v2812_v11 = vrot.slane %v2810_v16, 1  ;;  %v8544_v38 = vsel %vm1973_vm2, %v3473_v58, %v3474_v52  ;;  %v6934_v58 = vld [vmem:[%s9299_s3 + $0x280] ss:$8 sps:$4 sm:$0xff]   ;;  %v6960_v16 = vld [vmem:[%s9299_s3 + $0x324] ss:$8 sps:$4 sm:$0xff]  }
 0x22f   : > { %v2629_v31 = vadd.f32 %v2500_v36, %v8481_v8  ;;  %3673 = vmatpush1.bf16.msra.mxu0 %v6916_v60  ;;  %v3478_v27 = vsel %vm1973_vm2, %v3476_v53, %v3477_v43  ;;  %v2824_v14 = vrot.slane %v2822_v48, 1  ;;  %v6930_v8 = vld [vmem:[%s9299_s3 + $0x264] ss:$8 sps:$4 sm:$0xff]   ;;  %v6937_v60 = vld [vmem:[%s9299_s3 + $0x290] ss:$8 sps:$4 sm:$0xff]  }
 0x230   : > { %v2660_v19 = vadd.f32 %v8493_v61, %v2628_v22  ;;  %3700 = vmatprep.mubr.bf16.mxu0 %v3478_v27  ;;  %3674 = vmatprep.subr.bf16.mxu0 %v6924_v50  ;;  %v2813_v1 = vsel %vm552_vm1, %v2808_v6, %v2812_v11  ;;  %v6942_v61 = vld [vmem:[%s9299_s3 + $0x104] ss:$8 sps:$4 sm:$0xff]   ;;  %v2840_v37 = vor.u32 %v2838_v35, %v2812_v11  ;;  %v6940_v55 = vld [vmem:[%s9299_s3 + $0x100] ss:$8 sps:$4 sm:$0xff]   ;;  %v6948_v50 = vld [vmem:[%s9299_s3 + $0x2b4] ss:$8 sps:$4 sm:$0xff]  }
 0x231   : > { %v2661_v9 = vadd.f32 %v8497_v4, %v2629_v31  ;;  %v2825_v12 = vsel %vm552_vm1, %v2820_v2, %v2824_v14  ;;  %v6933_v4 = vld [vmem:[%s9299_s3 + $0x274] ss:$8 sps:$4 sm:$0xff]   ;;  %v2848_v3 = vor.u32 %v2846_v23, %v2824_v14  ;;  %v6951_v36 = vld [vmem:[%s9299_s3 + $0x2c4] ss:$8 sps:$4 sm:$0xff]   ;;  %v6949_v46 = vld [vmem:[%s9299_s3 + $0x2c0] ss:$8 sps:$4 sm:$0xff]  }
 0x232   : > { %v2696_v45 = vmax.f32 %v2660_v19, 0.0  ;;  %3075 = vmatprep.mubr.bf16.mxu1 %v2825_v12  ;;  %v6952_v53 = vld [vmem:[%s9299_s3 + $0x2d0] ss:$8 sps:$4 sm:$0xff]   ;;  %v6955_v48 = vld [vmem:[%s9299_s3 + $0x2e0] ss:$8 sps:$4 sm:$0xff]  }
 0x233   : > { %v2697_v56 = vmax.f32 %v2661_v9, 0.0  ;;  %3675 = vmatpush1.bf16.msra.mxu0 %v6922_v59  ;;  %3076 = vmatmul.mubr.bf16.vlgmr.msra.gmra.mrb[60].mxu1 %v2813_v1  ;;  %v6963_v6 = vld [vmem:[%s9299_s3 + $0x2f4] ss:$8 sps:$4 sm:$0xff]   ;;  %v6975_v22 = vld [vmem:[%s9301_s5 + $0x284] ss:$8 sps:$4 sm:$0xff]  }
 0x234   : > { %v2721_v28 = vsel %vm2678_vm4, 0.0, %v2696_v45  ;;  %3676 = vmatprep.subr.bf16.mxu0 %v6930_v8  ;;  %3097 = vmatpush1.bf16.msra.mxu1 %v6925_v5  ;;  %v6961_v10 = vld [vmem:[%s9299_s3 + $0x2f0] ss:$8 sps:$4 sm:$0xff]   ;;  %v6966_v11 = vld [vmem:[%s9299_s3 + $0x304] ss:$8 sps:$4 sm:$0xff]  }
 0x235   : > { %v2730_v20 = vpack.c.bf16 %v2721_v28, %v2721_v28  ;;  %v2722_v29 = vsel %vm2678_vm4, 0.0, %v2697_v56  ;;  %3376 = vmatprep.subr.bf16.mxu1 %v6942_v61  ;;  %v6964_v31 = vld [vmem:[%s9299_s3 + $0x300] ss:$8 sps:$4 sm:$0xff]   ;;  %v6967_v27 = vld [vmem:[%s9299_s3 + $0x310] ss:$8 sps:$4 sm:$0xff]  }
 0x236   : > { %v2731_v54 = vpack.c.bf16 %v2722_v29, %v2722_v29  ;;  %v6972_v59 = vld [vmem:[%s9301_s5 + $0x184] ss:$8 sps:$4 sm:$0xff]   ;;  %v6970_v2 = vld [vmem:[%s9301_s5 + $0x180] ss:$8 sps:$4 sm:$0xff]   ;;  %v6978_v14 = vld [vmem:[%s9301_s5 + $0x194] ss:$8 sps:$4 sm:$0xff]  }
 0x237   : > { %3677 = vmatpush1.bf16.msra.mxu0 %v6928_v17  ;;  %v2842_v34 = vshll.u32 %v2730_v20, 16  ;;  %v3482_v41 = vrot.slane %v2730_v20, 1  ;;  %v6981_v19 = vld [vmem:[%s9301_s5 + $0x294] ss:$8 sps:$4 sm:$0xff]   ;;  %v8691_v1 = vld [vmem:[%s7356_s21] sm:$0xff]  ;;  %v8694_v5 = vld [vmem:[%s7356_s21 + $0xc] sm:$0xff] }
 0x238   : > { %3678 = vmatprep.subr.bf16.mxu0 %v6933_v4  ;;  %v2850_v26 = vshll.u32 %v2731_v54, 16  ;;  %v3484_v21 = vrot.slane %v2731_v54, 1  ;;  %v8698_v8 = vcombine.high %v8691_v1, %v8694_v5  ;;  %v8701_v9 = vld [vmem:[%s7356_s21 + $0x18] sm:$0xff]  ;;  %v8704_v12 = vld [vmem:[%s7356_s21 + $0x24] sm:$0xff] }
 0x239   : > { %v2844_v62 = vrot.slane %v2842_v34, 1  ;;  %v8583_v30 = vsel %vm1973_vm2, %v3474_v52, %v3482_v41  ;;  %v6946_v52 = vld [vmem:[%s9299_s3 + $0x2b0] ss:$8 sps:$4 sm:$0xff]   ;;  %v8708_v61 = vcombine.high %v8701_v9, %v8704_v12  ;;  %v6984_v45 = vld [vmem:[%s9301_s5 + $0x1a4] ss:$8 sps:$4 sm:$0xff]  }
 0x23a   : > { %v2852_v39 = vrot.slane %v2850_v26, 1  ;;  %v8586_v57 = vsel %vm1973_vm2, %v3477_v43, %v3484_v21  ;;  %v6957_v43 = vld [vmem:[%s9299_s3 + $0x2e4] ss:$8 sps:$4 sm:$0xff]   ;;  %v3936_v17 = vrot.slane %v8698_v8, 1  ;;  %v6982_v4 = vld [vmem:[%s9301_s5 + $0x1a0] ss:$8 sps:$4 sm:$0xff]  }
 0x23b   : > { %3679 = vmatpush1.bf16.msra.mxu0 %v6931_v33  ;;  %v2845_v40 = vsel %vm552_vm1, %v2840_v37, %v2844_v62  ;;  %v6987_v56 = vld [vmem:[%s9301_s5 + $0x2a4] ss:$8 sps:$4 sm:$0xff]   ;;  %v3937_v28 = vrot.slane %v8708_v61, 1  ;;  %v6985_v20 = vld [vmem:[%s9301_s5 + $0x2a0] ss:$8 sps:$4 sm:$0xff]  }
 0x23c   : > { %v2853_v15 = vsel %vm552_vm1, %v2848_v3, %v2852_v39  ;;  %3680 = vmatprep.subr.bf16.mxu0 %v6936_v25  ;;  %v6990_v29 = vld [vmem:[%s9301_s5 + $0x1b4] ss:$8 sps:$4 sm:$0xff]   ;;  %v6988_v35 = vld [vmem:[%s9301_s5 + $0x1b0] ss:$8 sps:$4 sm:$0xff]   ;;  %v6999_v41 = vld [vmem:[%s9301_s5 + $0x2c4] ss:$8 sps:$4 sm:$0xff]  }
 0x23d   : > { %3085 = vmatprep.mubr.bf16.mxu1 %v2853_v15  ;;  %v6993_v54 = vld [vmem:[%s9301_s5 + $0x2b4] ss:$8 sps:$4 sm:$0xff]   ;;  %v3938_v33 = vsel %vm1973_vm2, %v3936_v17, %v3937_v28  ;;  %v6991_v34 = vld [vmem:[%s9301_s5 + $0x2b0] ss:$8 sps:$4 sm:$0xff]   ;;  %v6994_v23 = vld [vmem:[%s9301_s5 + $0x1c0] ss:$8 sps:$4 sm:$0xff]  }
 0x23e   : > { %3086 = vmatmul.mubr.bf16.gmra.mrb[64].mxu1 %v2845_v40  ;;  %v6997_v26 = vld [vmem:[%s9301_s5 + $0x2c0] ss:$8 sps:$4 sm:$0xff]   ;;  %v7002_v25 = vld [vmem:[%s9301_s5 + $0x1d4] ss:$8 sps:$4 sm:$0xff]   ;;  %v7000_v37 = vld [vmem:[%s9301_s5 + $0x1d0] ss:$8 sps:$4 sm:$0xff]  }
 0x23f   : > { %3681 = vmatpush1.bf16.msra.mxu0 %v6934_v58  ;;  %3128 = vmatprep.mubr.bf16.mxu1 %v7231_v24  ;;  %v7005_v21 = vld [vmem:[%s9301_s5 + $0x2d4] ss:$8 sps:$4 sm:$0xff]   ;;  %v7003_v62 = vld [vmem:[%s9301_s5 + $0x2d0] ss:$8 sps:$4 sm:$0xff]   ;;  %v7011_v3 = vld [vmem:[%s9301_s5 + $0x2e4] ss:$8 sps:$4 sm:$0xff]  }
 0x240   : > { %3682 = vmatprep.subr.bf16.mxu0 %v6939_v42  ;;  %v7006_v39 = vld [vmem:[%s9301_s5 + $0x1e0] ss:$8 sps:$4 sm:$0xff]   ;;  %v7014_v58 = vld [vmem:[%s9301_s5 + $0x1f4] ss:$8 sps:$4 sm:$0xff]  }
 0x241   : > { %v7199_v40 = vld [vmem:[%s7356_s21 + $0x8] sm:$0xf]  ;;  %v7200_v15 = vld [vmem:[%s7356_s21 + $0x14] sm:$0xf] }
 0x242   : > { %v8792_v42 = vcombine.low %v7199_v40, %v7200_v15  ;;  %v7040_v17 = vld [vmem:[%s9301_s5 + $0x234] ss:$8 sps:$4 sm:$0xff]  }
 0x243   : > { %3683 = vmatpush1.bf16.msra.mxu0 %v6937_v60  ;;  %v7201_v60 = vld [vmem:[%s7356_s21 + $0x20] sm:$0xf]  ;;  %v7204_v40 = vld [vmem:[%s7356_s21 + $0x30] sm:$0x33] }
 0x244   : > { %3684 = vmatprep.subr.bf16.mxu0 %v6945_v47  ;;  %v7202_v47 = vld [vmem:[%s7356_s21 + $0x2c] sm:$0xf]  ;;  %v8925_v15 = vcombine.high %v7204_v40, %v7204_v40 }
 0x246   : > { %5777 = vmatmul.mubr.msk.bf16.vlgmr.msra.gmra.mrb[60].mxu1 %vm3036_vm8, %v8415_v0  ;;  %v6954_v0 = vld [vmem:[%s9299_s3 + $0x2d4] ss:$8 sps:$4 sm:$0xff]  }
 0x247   : > { %3377 = vmatpush1.bf16.msra.mxu1 %v6940_v55  ;;  %3685 = vmatpush1.bf16.msra.mxu0 %v6943_v49  ;;  %v8796_v55 = vcombine.low %v7201_v60, %v7202_v47  ;;  %v7017_v49 = vld [vmem:[%s9301_s5 + $0x2f4] ss:$8 sps:$4 sm:$0xff]   ;;  %v7065_v60 = vld [vmem:[%s9301_s5 + $0x70] ss:$8 sps:$4 sm:$0xff]   ;;  %v3944_v47 = vrot.slane %v8925_v15, 1 }
 0x248   : > { %3686 = vmatprep.subr.bf16.mxu0 %v6948_v50  ;;  %3138 = vmatprep.mubr.bf16.mxu1 %v7231_v24  ;;  %v7012_v50 = vld [vmem:[%s9301_s5 + $0x1f0] ss:$8 sps:$4 sm:$0xff]  }
 0x249   : > { %3721 = vmatprep.subr.bf16.mxu1 %v6960_v16  ;;  %v7015_v16 = vld [vmem:[%s9301_s5 + $0x2f0] ss:$8 sps:$4 sm:$0xff]  }
 0x24b   : > { %3687 = vmatpush1.bf16.msra.mxu0 %v6946_v52  ;;  %v7020_v52 = vld [vmem:[%s9301_s5 + $0x204] ss:$8 sps:$4 sm:$0xff]  }
 0x24c   : > { %3688 = vmatprep.subr.bf16.mxu0 %v6951_v36  ;;  %v3939_v36 = vrot.slane %v8792_v42, 1 }
 0x24e   : > { %5778 = vmatmul.mubr.msk.bf16.gmra.mrb[64].mxu1 %vm3036_vm8, %v8427_v13  ;;  %v6958_v13 = vld [vmem:[%s9299_s3 + $0x320] ss:$8 sps:$4 sm:$0xff]  }
 0x24f   : > { %3689 = vmatpush1.bf16.msra.mxu0 %v6949_v46  ;;  %3408 = vmatprep.mubr.bf16.mxu1 %v7231_v24  ;;  %v3940_v46 = vrot.slane %v8796_v55, 1 }
 0x250   : > { %3690 = vmatprep.subr.bf16.mxu0 %v6954_v0  ;;  %v7023_v0 = vld [vmem:[%s9301_s5 + $0x4] ss:$8 sps:$4 sm:$0xff]  }
 0x253   : > { %3691 = vmatpush1.bf16.msra.mxu0 %v6952_v53  ;;  %v4315_v53 = vshll.u32 %v8698_v8, 16 }
 0x254   : > { %3692 = vmatprep.subr.bf16.mxu0 %v6957_v43  ;;  %v7018_v43 = vld [vmem:[%s9301_s5 + $0x200] ss:$8 sps:$4 sm:$0xff]  }
 0x256   : > { %5821 = vmatmul.mubr.msk.bf16.vlgmr.msra.gmra.mrb[68].mxu1 %vm3036_vm8, %v8364_v18  ;;  %v6969_v18 = vld [vmem:[%s9299_s3 + $0x314] ss:$8 sps:$4 sm:$0xff]  }
 0x257   : > { %3693 = vmatpush1.bf16.msra.mxu0 %v6955_v48  ;;  %3722 = vmatpush1.bf16.msra.mxu1 %v6958_v13  ;;  %v7021_v48 = vld [vmem:[%s9301_s5] ss:$8 sps:$4 sm:$0xff]   ;;  %v3941_v13 = vsel %vm1973_vm2, %v3939_v36, %v3940_v46  ;;  %v3945_v36 = vsel %vm1973_vm2, %v3937_v28, %v3944_v47 }
 0x258   : > { %3694 = vmatprep.subr.bf16.mxu0 %v6963_v6  ;;  %3418 = vmatprep.mubr.bf16.mxu1 %v7231_v24  ;;  %v7028_v6 = vld [vmem:[%s9301_s5 + $0x214] ss:$8 sps:$4 sm:$0xff]  }
 0x259   : > { %4247 = vmatprep.subr.bf16.mxu1 %v6975_v22  ;;  %v7203_v22 = vld [vmem:[%s7356_s21 + $0x38] sm:$0x3] }
 0x25b   : > { %3695 = vmatpush1.bf16.msra.mxu0 %v6961_v10  ;;  %v8827_v10 = vcombine.low %v7203_v22, %v7203_v22  ;;  %v7083_v22 = vld [vmem:[%s9301_s5 + $0xb0] ss:$8 sps:$4 sm:$0xff]  }
 0x25c   : > { %3696 = vmatprep.subr.bf16.mxu0 %v6966_v11  ;;  %v7031_v11 = vld [vmem:[%s9301_s5 + $0x14] ss:$8 sps:$4 sm:$0xff]  }
 0x25e   : > { %5822 = vmatmul.mubr.msk.bf16.gmra.mrb[72].mxu1 %vm3036_vm8, %v8377_v44  ;;  %v6973_v44 = vld [vmem:[%s9301_s5 + $0x280] ss:$8 sps:$4 sm:$0xff]  }
 0x25f   : > { %3697 = vmatpush1.bf16.msra.mxu0 %v6964_v31  ;;  %3753 = vmatprep.mubr.bf16.mxu1 %v7231_v24  ;;  %v4313_v31 = vshrl.u32 %v8698_v8, 16  ;;  %v7131_v8 = vld [vmem:[%s9301_s5 + $0x324] ss:$8 sps:$4 sm:$0xff]  }
 0x260   : > { %3698 = vmatprep.subr.bf16.mxu0 %v6969_v18  ;;  %v4317_v18 = vrot.slane %v4315_v53, 1 }
 0x263   : > { %3699 = vmatpush1.bf16.msra.mxu0 %v6967_v27  ;;  %v4320_v27 = vshll.u32 %v8708_v61, 16 }
 0x264   : > { %4194 = vmatprep.subr.bf16.mxu0 %v6972_v59  ;;  %v7026_v59 = vld [vmem:[%s9301_s5 + $0x210] ss:$8 sps:$4 sm:$0xff]  }
 0x266   : > { %3701 = vmatmul.mubr.bf16.vlgmr.msra.gmra.mrb[52].mxu0 %v8544_v38  ;;  %5891 = vmatmul.mubr.msk.bf16.vlgmr.msra.gmra.mrb[76].mxu1 %vm3036_vm8, %v8412_v7  ;;  %v6976_v7 = vld [vmem:[%s9301_s5 + $0x190] ss:$8 sps:$4 sm:$0xff]  }
 0x267   : > { %3710 = vmatprep.mubr.bf16.mxu0 %v8586_v57  ;;  %4195 = vmatpush1.bf16.msra.mxu0 %v6970_v2  ;;  %v6979_v38 = vld [vmem:[%s9301_s5 + $0x290] ss:$8 sps:$4 sm:$0xff]   ;;  %v7009_v57 = vld [vmem:[%s9301_s5 + $0x2e0] ss:$8 sps:$4 sm:$0xff]  }
 0x268   : > { %4248 = vmatpush1.bf16.msra.mxu1 %v6973_v44  ;;  %4196 = vmatprep.subr.bf16.mxu0 %v6978_v14  ;;  %v7029_v2 = vld [vmem:[%s9301_s5 + $0x10] ss:$8 sps:$4 sm:$0xff]   ;;  %v7034_v44 = vld [vmem:[%s9301_s5 + $0x224] ss:$8 sps:$4 sm:$0xff]   ;;  %v3946_v14 = vrot.slane %v8827_v10, 1 }
 0x269   : > { %4249 = vmatprep.subr.bf16.mxu1 %v6981_v19  ;;  %3763 = vmatprep.mubr.bf16.mxu1 %v7231_v24  ;;  %v7037_v19 = vld [vmem:[%s9301_s5 + $0x24] ss:$8 sps:$4 sm:$0xff]  }
 0x26b   : > { %4197 = vmatpush1.bf16.msra.mxu0 %v6976_v7  ;;  %v4318_v7 = vor.u32 %v4317_v18, %v4313_v31  ;;  %v7086_v18 = vld [vmem:[%s9301_s5 + $0xc0] ss:$8 sps:$4 sm:$0xff]  }
 0x26c   : > { %4250 = vmatpush1.bf16.msra.mxu1 %v6979_v38  ;;  %4198 = vmatprep.subr.bf16.mxu0 %v6984_v45  ;;  %v8854_v38 = vrot.slane %v4320_v27, 1  ;;  %v7032_v45 = vld [vmem:[%s9301_s5 + $0x220] ss:$8 sps:$4 sm:$0xff]  }
 0x26d   : > { %4251 = vmatprep.subr.bf16.mxu1 %v6987_v56  ;;  %v7035_v56 = vld [vmem:[%s9301_s5 + $0x20] ss:$8 sps:$4 sm:$0xff]  }
 0x26e   : > { %3711 = vmatmul.mubr.bf16.gmra.mrb[56].mxu0 %v8583_v30  ;;  %5892 = vmatmul.mubr.msk.bf16.gmra.mrb[80].mxu1 %vm3036_vm8, %v8418_v51  ;;  %v6996_v51 = vld [vmem:[%s9301_s5 + $0x1c4] ss:$8 sps:$4 sm:$0xff]  }
 0x26f   : > { %4199 = vmatpush1.bf16.msra.mxu0 %v6982_v4  ;;  %4279 = vmatprep.mubr.bf16.mxu1 %v7231_v24  ;;  %v7008_v30 = vld [vmem:[%s9301_s5 + $0x1e4] ss:$8 sps:$4 sm:$0xff]   ;;  %v3947_v4 = vsel %vm1973_vm2, %v3940_v46, %v3946_v14  ;;  %v7077_v46 = vld [vmem:[%s9301_s5 + $0x94] ss:$8 sps:$4 sm:$0xff]  }
 0x270   : > { %4252 = vmatpush1.bf16.msra.mxu1 %v6985_v20  ;;  %4200 = vmatprep.subr.bf16.mxu0 %v6990_v29  ;;  %v7043_v20 = vld [vmem:[%s9301_s5 + $0x34] ss:$8 sps:$4 sm:$0xff]   ;;  %v4323_v29 = vsel %vm552_vm1, %v4318_v7, %v8854_v38  ;;  %v7094_v14 = vld [vmem:[%s9301_s5 + $0xe4] ss:$8 sps:$4 sm:$0xff]  }
 0x271   : > { %4253 = vmatprep.subr.bf16.mxu1 %v6993_v54  ;;  %4226 = vmatprep.mubr.bf16.mxu0 %v3938_v33  ;;  %v7038_v54 = vld [vmem:[%s9301_s5 + $0x230] ss:$8 sps:$4 sm:$0xff]  }
 0x272   : > { %v7041_v33 = vld [vmem:[%s9301_s5 + $0x30] ss:$8 sps:$4 sm:$0xff]  }
 0x273   : > { %4201 = vmatpush1.bf16.msra.mxu0 %v6988_v35  ;;  %v7046_v35 = vld [vmem:[%s9301_s5 + $0x244] ss:$8 sps:$4 sm:$0xff]  }
 0x274   : > { %4254 = vmatpush1.bf16.msra.mxu1 %v6991_v34  ;;  %4202 = vmatprep.subr.bf16.mxu0 %v6996_v51  ;;  %v7049_v34 = vld [vmem:[%s9301_s5 + $0x44] ss:$8 sps:$4 sm:$0xff]   ;;  %v7044_v51 = vld [vmem:[%s9301_s5 + $0x240] ss:$8 sps:$4 sm:$0xff]  }
 0x275   : > { %4255 = vmatprep.subr.bf16.mxu1 %v6999_v41  ;;  %v7047_v41 = vld [vmem:[%s9301_s5 + $0x40] ss:$8 sps:$4 sm:$0xff]  }
 0x277   : > { %4203 = vmatpush1.bf16.msra.mxu0 %v6994_v23  ;;  %v7052_v23 = vld [vmem:[%s9301_s5 + $0x254] ss:$8 sps:$4 sm:$0xff]  }
 0x278   : > { %4256 = vmatpush1.bf16.msra.mxu1 %v6997_v26  ;;  %4204 = vmatprep.subr.bf16.mxu0 %v7002_v25  ;;  %v7055_v26 = vld [vmem:[%s9301_s5 + $0x54] ss:$8 sps:$4 sm:$0xff]   ;;  %v7050_v25 = vld [vmem:[%s9301_s5 + $0x250] ss:$8 sps:$4 sm:$0xff]  }
 0x279   : > { %4257 = vmatprep.subr.bf16.mxu1 %v7005_v21  ;;  %v7053_v21 = vld [vmem:[%s9301_s5 + $0x50] ss:$8 sps:$4 sm:$0xff]  }
 0x27b   : > { %4205 = vmatpush1.bf16.msra.mxu0 %v7000_v37  ;;  %v7058_v37 = vld [vmem:[%s9301_s5 + $0x264] ss:$8 sps:$4 sm:$0xff]  }
 0x27c   : > { %4258 = vmatpush1.bf16.msra.mxu1 %v7003_v62  ;;  %4206 = vmatprep.subr.bf16.mxu0 %v7008_v30  ;;  %v7061_v62 = vld [vmem:[%s9301_s5 + $0x64] ss:$8 sps:$4 sm:$0xff]   ;;  %v7056_v30 = vld [vmem:[%s9301_s5 + $0x260] ss:$8 sps:$4 sm:$0xff]  }
 0x27d   : > { %4259 = vmatprep.subr.bf16.mxu1 %v7011_v3  ;;  %v8912_v3 = vcombine.low %v8691_v1, %v8694_v5  ;;  %v7067_v1 = vld [vmem:[%s9301_s5 + $0x74] ss:$8 sps:$4 sm:$0xff]   ;;  %v7062_v5 = vld [vmem:[%s9301_s5 + $0x270] ss:$8 sps:$4 sm:$0xff]  }
 0x27f   : > { %4207 = vmatpush1.bf16.msra.mxu0 %v7006_v39  ;;  %v8916_v39 = vcombine.low %v8701_v9, %v8704_v12  ;;  %v3933_v9 = vrot.slane %v8912_v3, 1 }
 0x280   : > { %4260 = vmatpush1.bf16.msra.mxu1 %v7009_v57  ;;  %4208 = vmatprep.subr.bf16.mxu0 %v7014_v58  ;;  %v7059_v57 = vld [vmem:[%s9301_s5 + $0x60] ss:$8 sps:$4 sm:$0xff]   ;;  %v7064_v58 = vld [vmem:[%s9301_s5 + $0x274] ss:$8 sps:$4 sm:$0xff]  }
 0x281   : > { %4261 = vmatprep.subr.bf16.mxu1 %v7017_v49  ;;  %v3934_v12 = vrot.slane %v8916_v39, 1  ;;  %v7074_v49 = vld [vmem:[%s9301_s5 + $0x84] ss:$8 sps:$4 sm:$0xff]  }
 0x283   : > { %4209 = vmatpush1.bf16.msra.mxu0 %v7012_v50  ;;  %v3935_v50 = vsel %vm1973_vm2, %v3933_v9, %v3934_v12  ;;  %v7104_v9 = vld [vmem:[%s9301_s5 + $0x114] ss:$8 sps:$4 sm:$0xff]  }
 0x284   : > { %4262 = vmatpush1.bf16.msra.mxu1 %v7015_v16  ;;  %4210 = vmatprep.subr.bf16.mxu0 %v7020_v52  ;;  %v8943_v16 = vcombine.low %v7204_v40, %v7204_v40  ;;  %v7072_v52 = vld [vmem:[%s9301_s5 + $0x80] ss:$8 sps:$4 sm:$0xff]   ;;  %v4336_v40 = vshrl.u32 %v8916_v39, 16 }
 0x285   : > { %4606 = vmatprep.subr.bf16.mxu1 %v7023_v0 }
 0x286   : > { %v3942_v0 = vrot.slane %v8943_v16, 1 }
 0x287   : > { %4211 = vmatpush1.bf16.msra.mxu0 %v7018_v43  ;;  %4280 = vmatmul.mubr.bf16.vlgmr.msra.gmra.mrb[84].mxu1 %v3941_v13  ;;  %v7075_v43 = vld [vmem:[%s9301_s5 + $0x90] ss:$8 sps:$4 sm:$0xff]   ;;  %v7080_v13 = vld [vmem:[%s9301_s5 + $0xa0] ss:$8 sps:$4 sm:$0xff]  }
 0x288   : > { %4607 = vmatpush1.bf16.msra.mxu1 %v7021_v48  ;;  %4212 = vmatprep.subr.bf16.mxu0 %v7028_v6  ;;  %v7082_v48 = vld [vmem:[%s9301_s5 + $0xa4] ss:$8 sps:$4 sm:$0xff]   ;;  %v3943_v28 = vsel %vm1973_vm2, %v3934_v12, %v3942_v0  ;;  %v7085_v6 = vld [vmem:[%s9301_s5 + $0xb4] ss:$8 sps:$4 sm:$0xff]  }
 0x289   : > { %4608 = vmatprep.subr.bf16.mxu1 %v7031_v11  ;;  %4289 = vmatprep.mubr.bf16.mxu1 %v7231_v24  ;;  %v7088_v11 = vld [vmem:[%s9301_s5 + $0xc4] ss:$8 sps:$4 sm:$0xff]  }
 0x28a   : > { %v7107_v0 = vld [vmem:[%s9301_s5 + $0x124] ss:$8 sps:$4 sm:$0xff]  }
 0x28b   : > { %4213 = vmatpush1.bf16.msra.mxu0 %v7026_v59  ;;  %v7091_v59 = vld [vmem:[%s9301_s5 + $0xd4] ss:$8 sps:$4 sm:$0xff]  }
 0x28c   : > { %4609 = vmatpush1.bf16.msra.mxu1 %v7029_v2  ;;  %4214 = vmatprep.subr.bf16.mxu0 %v7034_v44  ;;  %v4303_v2 = vshll.u32 %v8912_v3, 16  ;;  %v7089_v44 = vld [vmem:[%s9301_s5 + $0xd0] ss:$8 sps:$4 sm:$0xff]  }
 0x28d   : > { %4610 = vmatprep.subr.bf16.mxu1 %v7037_v19  ;;  %v4301_v19 = vshrl.u32 %v8912_v3, 16 }
 0x28e   : > { %v4305_v7 = vrot.slane %v4303_v2, 1 }
 0x28f   : > { %4215 = vmatpush1.bf16.msra.mxu0 %v7032_v45  ;;  %4290 = vmatmul.mubr.bf16.gmra.mrb[88].mxu1 %v3947_v4  ;;  %v4308_v45 = vshll.u32 %v8916_v39, 16  ;;  %v4344_v4 = vshrl.u32 %v8708_v61, 16  ;;  %v4783_v39 = vshrl.u32 %v8943_v16, 16 }
 0x290   : > { %4611 = vmatpush1.bf16.msra.mxu1 %v7035_v56  ;;  %4216 = vmatprep.subr.bf16.mxu0 %v7040_v17  ;;  %v7092_v56 = vld [vmem:[%s9301_s5 + $0xe0] ss:$8 sps:$4 sm:$0xff]   ;;  %v7098_v17 = vld [vmem:[%s9301_s5 + $0xf4] ss:$8 sps:$4 sm:$0xff]  }
 0x291   : > { %4612 = vmatprep.subr.bf16.mxu1 %v7043_v20  ;;  %4638 = vmatprep.mubr.bf16.mxu1 %v4323_v29  ;;  %v4348_v20 = vshll.u32 %v8925_v15, 16  ;;  %v4352_v29 = vshrl.u32 %v8796_v55, 16 }
 0x293   : > { %4217 = vmatpush1.bf16.msra.mxu0 %v7038_v54  ;;  %v4306_v54 = vor.u32 %v4305_v7, %v4301_v19  ;;  %v7117_v7 = vld [vmem:[%s9301_s5 + $0x160] ss:$8 sps:$4 sm:$0xff]  }
 0x294   : > { %4613 = vmatpush1.bf16.msra.mxu1 %v7041_v33  ;;  %4218 = vmatprep.subr.bf16.mxu0 %v7046_v35  ;;  %v4310_v33 = vrot.slane %v4308_v45, 1  ;;  %v7096_v35 = vld [vmem:[%s9301_s5 + $0xf0] ss:$8 sps:$4 sm:$0xff]  }
 0x295   : > { %4614 = vmatprep.subr.bf16.mxu1 %v7049_v34  ;;  %v4325_v34 = vshrl.u32 %v8792_v42, 16 }
 0x297   : > { %4219 = vmatpush1.bf16.msra.mxu0 %v7044_v51  ;;  %v4327_v51 = vshll.u32 %v8792_v42, 16  ;;  %v4769_v42 = vrot.slane %v4313_v31, 1 }
 0x298   : > { %4615 = vmatpush1.bf16.msra.mxu1 %v7047_v41  ;;  %4220 = vmatprep.subr.bf16.mxu0 %v7052_v23  ;;  %v4332_v41 = vshll.u32 %v8796_v55, 16  ;;  %v4779_v23 = vrot.slane %v4352_v29, 1  ;;  %v7134_v55 = vld [vmem:[%s9301_s5 + $0x334] ss:$8 sps:$4 sm:$0xff]  }
 0x299   : > { %4616 = vmatprep.subr.bf16.mxu1 %v7055_v26  ;;  %v7101_v26 = vld [vmem:[%s9301_s5 + $0x104] ss:$8 sps:$4 sm:$0xff]  }
 0x29b   : > { %4221 = vmatpush1.bf16.msra.mxu0 %v7050_v25  ;;  %v4346_v25 = vor.u32 %v4344_v4, %v8854_v38 }
 0x29c   : > { %4617 = vmatpush1.bf16.msra.mxu1 %v7053_v21  ;;  %4222 = vmatprep.subr.bf16.mxu0 %v7058_v37  ;;  %v4350_v21 = vrot.slane %v4348_v20, 1  ;;  %v4776_v37 = vrot.slane %v4325_v34, 1 }
 0x29d   : > { %4618 = vmatprep.subr.bf16.mxu1 %v7061_v62  ;;  %v4777_v62 = vrot.slane %v4327_v51, 2 }
 0x29e   : > { %v4351_v12 = vsel %vm552_vm1, %v4346_v25, %v4350_v21  ;;  %v7128_v25 = vld [vmem:[%s9301_s5 + $0x314] ss:$8 sps:$4 sm:$0xff]   ;;  %v4773_v21 = vrot.slane %v4320_v27, 2  ;;  %v7129_v27 = vld [vmem:[%s9301_s5 + $0x320] ss:$8 sps:$4 sm:$0xff]  }
 0x29f   : > { %4223 = vmatpush1.bf16.msra.mxu0 %v7056_v30  ;;  %v4780_v30 = vrot.slane %v4332_v41, 2  ;;  %v4778_v38 = vor.u32 %v4777_v62, %v4776_v37  ;;  %v7126_v37 = vld [vmem:[%s9301_s5 + $0x310] ss:$8 sps:$4 sm:$0xff]  }
 0x2a0   : > { %4619 = vmatpush1.bf16.msra.mxu1 %v7059_v57  ;;  %4224 = vmatprep.subr.bf16.mxu0 %v7064_v58  ;;  %v4311_v57 = vsel %vm552_vm1, %v4306_v54, %v4310_v33  ;;  %v7099_v58 = vld [vmem:[%s9301_s5 + $0x100] ss:$8 sps:$4 sm:$0xff]   ;;  %v7120_v54 = vld [vmem:[%s9301_s5 + $0x170] ss:$8 sps:$4 sm:$0xff]  }
 0x2a1   : > { %4620 = vmatprep.subr.bf16.mxu1 %v7067_v1  ;;  %v4340_v1 = vshll.u32 %v8943_v16, 16 }
 0x2a3   : > { %4225 = vmatpush1.bf16.msra.mxu0 %v7062_v5  ;;  %v4781_v5 = vor.u32 %v4780_v30, %v4779_v23  ;;  %v7125_v23 = vld [vmem:[%s9301_s5 + $0x304] ss:$8 sps:$4 sm:$0xff]   ;;  %v7132_v30 = vld [vmem:[%s9301_s5 + $0x330] ss:$8 sps:$4 sm:$0xff]  }
 0x2a4   : > { %4621 = vmatpush1.bf16.msra.mxu1 %v7065_v60  ;;  %v4356_v60 = vshll.u32 %v8827_v10, 16 }
 0x2a5   : > { %4622 = vmatprep.subr.bf16.mxu1 %v7074_v49  ;;  %v9034_v47 = vsel %vm4761_vm9, %v4778_v38, %v4781_v5  ;;  %v7102_v49 = vld [vmem:[%s9301_s5 + $0x110] ss:$8 sps:$4 sm:$0xff]   ;;  %v7140_v38 = vld [vmem:[%s9301_s5 + $0x354] ss:$8 sps:$4 sm:$0xff]  }
 0x2a6   : > { %4227 = vmatmul.mubr.bf16.vlgmr.msra.gmra.mrb[60].mxu0 %v3935_v50  ;;  %v4338_v50 = vor.u32 %v4336_v40, %v4310_v33  ;;  %v4358_v62 = vrot.slane %v4356_v60, 1 }
 0x2a7   : > { %4236 = vmatprep.mubr.bf16.mxu0 %v3945_v36  ;;  %v4795_v36 = vshrl.u32 %v8827_v10, 16  ;;  %v7110_v10 = vld [vmem:[%s9301_s5 + $0x134] ss:$8 sps:$4 sm:$0xff]  }
 0x2a8   : > { %4623 = vmatpush1.bf16.msra.mxu1 %v7072_v52  ;;  %v4342_v52 = vrot.slane %v4340_v1, 1 }
 0x2a9   : > { %4624 = vmatprep.subr.bf16.mxu1 %v7077_v46  ;;  %v4798_v46 = vrot.slane %v4356_v60, 2 }
 0x2ac   : > { %4625 = vmatpush1.bf16.msra.mxu1 %v7075_v43  ;;  %v4797_v43 = vrot.slane %v4795_v36, 1  ;;  %v7146_v36 = vld [vmem:[%s9301_s5 + $0x374] ss:$8 sps:$4 sm:$0xff]  }
 0x2ad   : > { %4626 = vmatprep.subr.bf16.mxu1 %v7082_v48  ;;  %v7105_v48 = vld [vmem:[%s9301_s5 + $0x120] ss:$8 sps:$4 sm:$0xff]  }
 0x2ae   : > { %4237 = vmatmul.mubr.bf16.gmra.mrb[64].mxu0 %v3943_v28  ;;  %v4343_v28 = vsel %vm552_vm1, %v4338_v50, %v4342_v52  ;;  %v7141_v52 = vld [vmem:[%s9301_s5 + $0x360] ss:$8 sps:$4 sm:$0xff]  }
 0x2b0   : > { %4627 = vmatpush1.bf16.msra.mxu1 %v7080_v13  ;;  %v4799_v13 = vor.u32 %v4798_v46, %v4797_v43  ;;  %v7144_v46 = vld [vmem:[%s9301_s5 + $0x370] ss:$8 sps:$4 sm:$0xff]   ;;  %v7149_v43 = vld [vmem:[%s9301_s5 + $0x384] ss:$8 sps:$4 sm:$0xff]  }
 0x2b1   : > { %4628 = vmatprep.subr.bf16.mxu1 %v7085_v6 }
 0x2b2   : > { %v9055_v6 = vsel %vm4761_vm9, %v4781_v5, %v4799_v13  ;;  %v7138_v5 = vld [vmem:[%s9301_s5 + $0x350] ss:$8 sps:$4 sm:$0xff]  }
 0x2b4   : > { %4629 = vmatpush1.bf16.msra.mxu1 %v7083_v22  ;;  %v7108_v22 = vld [vmem:[%s9301_s5 + $0x130] ss:$8 sps:$4 sm:$0xff]  }
 0x2b5   : > { %4630 = vmatprep.subr.bf16.mxu1 %v7088_v11  ;;  %v7113_v11 = vld [vmem:[%s9301_s5 + $0x144] ss:$8 sps:$4 sm:$0xff]  }
 0x2b8   : > { %4631 = vmatpush1.bf16.msra.mxu1 %v7086_v18  ;;  %v7111_v18 = vld [vmem:[%s9301_s5 + $0x140] ss:$8 sps:$4 sm:$0xff]  }
 0x2b9   : > { %4632 = vmatprep.subr.bf16.mxu1 %v7091_v59  ;;  %v7116_v59 = vld [vmem:[%s9301_s5 + $0x154] ss:$8 sps:$4 sm:$0xff]  }
 0x2bc   : > { %4633 = vmatpush1.bf16.msra.mxu1 %v7089_v44  ;;  %v7114_v44 = vld [vmem:[%s9301_s5 + $0x150] ss:$8 sps:$4 sm:$0xff]  }
 0x2bd   : > { %4634 = vmatprep.subr.bf16.mxu1 %v7094_v14  ;;  %v7119_v14 = vld [vmem:[%s9301_s5 + $0x164] ss:$8 sps:$4 sm:$0xff]  }
 0x2c0   : > { %4635 = vmatpush1.bf16.msra.mxu1 %v7092_v56  ;;  %v4329_v56 = vrot.slane %v4327_v51, 1  ;;  %v7123_v51 = vld [vmem:[%s9301_s5 + $0x300] ss:$8 sps:$4 sm:$0xff]  }
 0x2c1   : > { %4636 = vmatprep.subr.bf16.mxu1 %v7098_v17  ;;  %v7122_v17 = vld [vmem:[%s9301_s5 + $0x174] ss:$8 sps:$4 sm:$0xff]  }
 0x2c2   : > { %v4330_v33 = vor.u32 %v4329_v56, %v4325_v34  ;;  %v4770_v34 = vrot.slane %v4315_v53, 2  ;;  %v7159_v56 = vld [vmem:[%s9301_s5 + $0x3c0] ss:$8 sps:$4 sm:$0xff]  }
 0x2c4   : > { %4637 = vmatpush1.bf16.msra.mxu1 %v7096_v35  ;;  %v4334_v35 = vrot.slane %v4332_v41, 1  ;;  %v4772_v41 = vrot.slane %v4344_v4, 1  ;;  %v4771_v53 = vor.u32 %v4770_v34, %v4769_v42 }
 0x2c5   : > { %4659 = vmatprep.subr.bf16.mxu1 %v7101_v26 }
 0x2c6   : > { %v4335_v26 = vsel %vm552_vm1, %v4330_v33, %v4334_v35  ;;  %v4354_v31 = vor.u32 %v4352_v29, %v4334_v35  ;;  %v9114_v61 = vor.u32 %v4773_v21, %v4772_v41  ;;  %v7167_v35 = vld [vmem:[%s9301_s5 + $0x3e4] ss:$8 sps:$4 sm:$0xff]  }
 0x2c7   : > { %4639 = vmatmul.mubr.bf16.vlgmr.msra.gmra.mrb[84].mxu1 %v4311_v57  ;;  %v7137_v57 = vld [vmem:[%s9301_s5 + $0x344] ss:$8 sps:$4 sm:$0xff]  }
 0x2c8   : > { %4660 = vmatpush1.bf16.msra.mxu1 %v7099_v58  ;;  %4648 = vmatprep.mubr.bf16.mxu1 %v4351_v12  ;;  %v4359_v4 = vsel %vm552_vm1, %v4354_v31, %v4358_v62  ;;  %v4775_v29 = vsel %vm4761_vm9, %v4771_v53, %v9114_v61  ;;  %v7135_v58 = vld [vmem:[%s9301_s5 + $0x340] ss:$8 sps:$4 sm:$0xff]   ;;  %v7143_v12 = vld [vmem:[%s9301_s5 + $0x364] ss:$8 sps:$4 sm:$0xff]   ;;  %v4762_v31 = vrot.slane %v4301_v19, 1  ;;  %v4763_v62 = vrot.slane %v4303_v2, 2 }
 0x2c9   : > { %4661 = vmatprep.subr.bf16.mxu1 %v7104_v9  ;;  %v7168_v19 = vld [vmem:[%s9301_s5 + $0x3f0] ss:$8 sps:$4 sm:$0xff]  }
 0x2ca   : > { %v4764_v3 = vor.u32 %v4763_v62, %v4762_v31 }
 0x2cc   : > { %4662 = vmatpush1.bf16.msra.mxu1 %v7102_v49 }
 0x2cd   : > { %4663 = vmatprep.subr.bf16.mxu1 %v7107_v0 }
 0x2cf   : > { %4649 = vmatmul.mubr.bf16.gmra.mrb[88].mxu1 %v4343_v28 }
 0x2d0   : > { %4664 = vmatpush1.bf16.msra.mxu1 %v7105_v48  ;;  %4691 = vmatprep.mubr.bf16.mxu1 %v7231_v24 }
 0x2d1   : > { %4665 = vmatprep.subr.bf16.mxu1 %v7110_v10  ;;  %v7147_v10 = vld [vmem:[%s9301_s5 + $0x380] ss:$8 sps:$4 sm:$0xff]  }
 0x2d4   : > { %4666 = vmatpush1.bf16.msra.mxu1 %v7108_v22  ;;  %v7152_v22 = vld [vmem:[%s9301_s5 + $0x394] ss:$8 sps:$4 sm:$0xff]  }
 0x2d5   : > { %4667 = vmatprep.subr.bf16.mxu1 %v7113_v11  ;;  %v7150_v11 = vld [vmem:[%s9301_s5 + $0x390] ss:$8 sps:$4 sm:$0xff]  }
 0x2d8   : > { %4668 = vmatpush1.bf16.msra.mxu1 %v7111_v18  ;;  %v7155_v18 = vld [vmem:[%s9301_s5 + $0x3a4] ss:$8 sps:$4 sm:$0xff]  }
 0x2d9   : > { %4669 = vmatprep.subr.bf16.mxu1 %v7116_v59  ;;  %v7153_v59 = vld [vmem:[%s9301_s5 + $0x3a0] ss:$8 sps:$4 sm:$0xff]  }
 0x2dc   : > { %4670 = vmatpush1.bf16.msra.mxu1 %v7114_v44  ;;  %v7158_v44 = vld [vmem:[%s9301_s5 + $0x3b4] ss:$8 sps:$4 sm:$0xff]  }
 0x2dd   : > { %4671 = vmatprep.subr.bf16.mxu1 %v7119_v14  ;;  %v7156_v14 = vld [vmem:[%s9301_s5 + $0x3b0] ss:$8 sps:$4 sm:$0xff]  }
 0x2e0   : > { %4672 = vmatpush1.bf16.msra.mxu1 %v7117_v7  ;;  %v7161_v7 = vld [vmem:[%s9301_s5 + $0x3c4] ss:$8 sps:$4 sm:$0xff]  }
 0x2e1   : > { %4673 = vmatprep.subr.bf16.mxu1 %v7122_v17  ;;  %v7164_v17 = vld [vmem:[%s9301_s5 + $0x3d4] ss:$8 sps:$4 sm:$0xff]  }
 0x2e4   : > { %4674 = vmatpush1.bf16.msra.mxu1 %v7120_v54  ;;  %v7162_v54 = vld [vmem:[%s9301_s5 + $0x3d0] ss:$8 sps:$4 sm:$0xff]  }
 0x2e5   : > { %5047 = vmatprep.subr.bf16.mxu1 %v7125_v23  ;;  %v4789_v23 = vshrl.u32 %v8925_v15, 16 }
 0x2e7   : > { %4692 = vmatmul.mubr.bf16.vlgmr.msra.gmra.mrb[84].mxu1 %v4335_v26 }
 0x2e8   : > { %5048 = vmatpush1.bf16.msra.mxu1 %v7123_v51  ;;  %4701 = vmatprep.mubr.bf16.mxu1 %v7231_v24 }
 0x2e9   : > { %5049 = vmatprep.subr.bf16.mxu1 %v7128_v25  ;;  %v4765_v25 = vrot.slane %v4336_v40, 1  ;;  %v7170_v40 = vld [vmem:[%s9301_s5 + $0x3f4] ss:$8 sps:$4 sm:$0xff]  }
 0x2ec   : > { %5050 = vmatpush1.bf16.msra.mxu1 %v7126_v37  ;;  %v7165_v37 = vld [vmem:[%s9301_s5 + $0x3e0] ss:$8 sps:$4 sm:$0xff]  }
 0x2ed   : > { %5051 = vmatprep.subr.bf16.mxu1 %v7131_v8  ;;  %v4766_v8 = vrot.slane %v4308_v45, 2 }
 0x2ef   : > { %4702 = vmatmul.mubr.bf16.gmra.mrb[88].mxu1 %v4359_v4  ;;  %v4792_v4 = vrot.slane %v4348_v20, 2  ;;  %v4767_v2 = vor.u32 %v4766_v8, %v4765_v25  ;;  %v7186_v25 = vld [vmem:[%s9301_s5 + $0x450] ss:$8 sps:$4 sm:$0xff]  }
 0x2f0   : > { %5052 = vmatpush1.bf16.msra.mxu1 %v7129_v27  ;;  %5079 = vmatprep.mubr.bf16.mxu1 %v4775_v29  ;;  %v4791_v27 = vrot.slane %v4789_v23, 1  ;;  %v7183_v23 = vld [vmem:[%s9301_s5 + $0x440] ss:$8 sps:$4 sm:$0xff]  }
 0x2f1   : > { %5053 = vmatprep.subr.bf16.mxu1 %v7134_v55  ;;  %v7173_v55 = vld [vmem:[%s9301_s5 + $0x404] ss:$8 sps:$4 sm:$0xff]  }
 0x2f2   : > { %v4793_v29 = vor.u32 %v4792_v4, %v4791_v27 }
 0x2f4   : > { %5054 = vmatpush1.bf16.msra.mxu1 %v7132_v30 }
 0x2f5   : > { %5055 = vmatprep.subr.bf16.mxu1 %v7137_v57 }
 0x2f8   : > { %5056 = vmatpush1.bf16.msra.mxu1 %v7135_v58 }
 0x2f9   : > { %v3357_v9 = vpop.f32.mrb[44].mxu0  ;;  %5057 = vmatprep.subr.bf16.mxu1 %v7140_v38 }
 0x2fa   : > { %v3359_v60 = vpop.f32.mrb[45].mxu0 }
 0x2fb   : > { %v3361_v49 = vpop.f32.mrb[46].mxu0 }
 0x2fc   : > { %5058 = vmatpush1.bf16.msra.mxu1 %v7138_v5  ;;  %v3363_v50 = vpop.f32.mrb[47].mxu0  ;;  %v7171_v5 = vld [vmem:[%s9301_s5 + $0x400] ss:$8 sps:$4 sm:$0xff]  }
 0x2fd   : > { %5059 = vmatprep.subr.bf16.mxu1 %v7143_v12  ;;  %v4785_v12 = vrot.slane %v4783_v39, 1 }
 0x300   : > { %5060 = vmatpush1.bf16.msra.mxu1 %v7141_v52  ;;  %v4794_v52 = vsel %vm4761_vm9, %v9114_v61, %v4793_v29 }
 0x301   : > { %v3367_v0 = vpop.f32.mrb[48].mxu0  ;;  %5061 = vmatprep.subr.bf16.mxu1 %v7146_v36  ;;  %v7174_v36 = vld [vmem:[%s9301_s5 + $0x410] ss:$8 sps:$4 sm:$0xff]  }
 0x302   : > { %v3369_v48 = vpop.f32.mrb[49].mxu0 }
 0x303   : > { %v3371_v28 = vpop.f32.mrb[50].mxu0 }
 0x304   : > { %5062 = vmatpush1.bf16.msra.mxu1 %v7144_v46  ;;  %v9155_v13 = vpop.f32.mrb[51].mxu0 }
 0x305   : > { %5063 = vmatprep.subr.bf16.mxu1 %v7149_v43 }
 0x308   : > { %5064 = vmatpush1.bf16.msra.mxu1 %v7147_v10  ;;  %v7177_v10 = vld [vmem:[%s9301_s5 + $0x420] ss:$8 sps:$4 sm:$0xff]  }
 0x309   : > { %5065 = vmatprep.subr.bf16.mxu1 %v7152_v22 }
 0x30c   : > { %5066 = vmatpush1.bf16.msra.mxu1 %v7150_v11 }
 0x30d   : > { %5067 = vmatprep.subr.bf16.mxu1 %v7155_v18  ;;  %v7182_v18 = vld [vmem:[%s9301_s5 + $0x434] ss:$8 sps:$4 sm:$0xff]  }
 0x310   : > { %5068 = vmatpush1.bf16.msra.mxu1 %v7153_v59  ;;  %v7180_v59 = vld [vmem:[%s9301_s5 + $0x430] ss:$8 sps:$4 sm:$0xff]  }
 0x311   : > { %5069 = vmatprep.subr.bf16.mxu1 %v7158_v44 }
 0x314   : > { %5070 = vmatpush1.bf16.msra.mxu1 %v7156_v14  ;;  %v7185_v14 = vld [vmem:[%s9301_s5 + $0x444] ss:$8 sps:$4 sm:$0xff]  }
 0x315   : > { %5071 = vmatprep.subr.bf16.mxu1 %v7161_v7 }
 0x318   : > { %5072 = vmatpush1.bf16.msra.mxu1 %v7159_v56 }
 0x319   : > { %v3130_v33 = vpop.f32.mrb[60].mxu1  ;;  %5073 = vmatprep.subr.bf16.mxu1 %v7164_v17 }
 0x31a   : > { %v6364_v51 = vadd.f32 %v3357_v9, %v3130_v33  ;;  %v3132_v26 = vpop.f32.mrb[61].mxu1  ;;  %v4768_v9 = vsel %vm4761_vm9, %v4764_v3, %v4767_v2  ;;  %v7189_v3 = vld [vmem:[%s9301_s5 + $0x460] ss:$8 sps:$4 sm:$0xff]  }
 0x31b   : > { %v6371_v42 = vadd.f32 %v3359_v60, %v3132_v26  ;;  %v3134_v34 = vpop.f32.mrb[62].mxu1  ;;  %v4786_v60 = vrot.slane %v4340_v1, 2  ;;  %v7179_v1 = vld [vmem:[%s9301_s5 + $0x424] ss:$8 sps:$4 sm:$0xff]   ;;  %v7188_v26 = vld [vmem:[%s9301_s5 + $0x454] ss:$8 sps:$4 sm:$0xff]  }
 0x31c   : > { %5074 = vmatpush1.bf16.msra.mxu1 %v7162_v54  ;;  %v6378_v41 = vadd.f32 %v3361_v49, %v3134_v34  ;;  %v3136_v21 = vpop.f32.mrb[63].mxu1 }
 0x31d   : > { %v6385_v53 = vadd.f32 %v3363_v50, %v3136_v21  ;;  %5075 = vmatprep.subr.bf16.mxu1 %v7167_v35  ;;  %v7176_v50 = vld [vmem:[%s9301_s5 + $0x414] ss:$8 sps:$4 sm:$0xff]   ;;  %v4787_v46 = vor.u32 %v4786_v60, %v4785_v12 }
 0x31f   : > { %v4788_v22 = vsel %vm4761_vm9, %v4767_v2, %v4787_v46 }
 0x320   : > { %5076 = vmatpush1.bf16.msra.mxu1 %v7165_v37 }
 0x321   : > { %v3140_v45 = vpop.f32.mrb[64].mxu1  ;;  %5077 = vmatprep.subr.bf16.mxu1 %v7170_v40 }
 0x322   : > { %v6392_v30 = vadd.f32 %v3367_v0, %v3140_v45  ;;  %v3142_v57 = vpop.f32.mrb[65].mxu1  ;;  %v7194_v45 = vld [vmem:[%s9301_s5 + $0x474] ss:$8 sps:$4 sm:$0xff]  }
 0x323   : > { %v6399_v15 = vadd.f32 %v3369_v48, %v3142_v57  ;;  %v3144_v20 = vpop.f32.mrb[66].mxu1 }
 0x324   : > { %5078 = vmatpush1.bf16.msra.mxu1 %v7168_v19  ;;  %v6406_v58 = vadd.f32 %v3371_v28, %v3144_v20  ;;  %v3146_v38 = vpop.f32.mrb[67].mxu1 }
 0x325   : > { %v6413_v49 = vadd.f32 %v9155_v13, %v3146_v38  ;;  %5100 = vmatprep.subr.bf16.mxu1 %v7173_v55 }
 0x327   : > { %5080 = vmatmul.mubr.bf16.vlgmr.msra.gmra.mrb[84].mxu1 %v4768_v9 }
 0x328   : > { %5101 = vmatpush1.bf16.msra.mxu1 %v7171_v5  ;;  %5089 = vmatprep.mubr.bf16.mxu1 %v4794_v52 }
 0x329   : > { %v3410_v16 = vpop.f32.mrb[68].mxu1  ;;  %5102 = vmatprep.subr.bf16.mxu1 %v7176_v50 }
 0x32a   : > { %v6365_v0 = vadd.f32 %v6364_v51, %v3410_v16  ;;  %v3412_v43 = vpop.f32.mrb[69].mxu1 }
 0x32b   : > { %v6372_v48 = vadd.f32 %v6371_v42, %v3412_v43  ;;  %v3414_v28 = vpop.f32.mrb[70].mxu1 }
 0x32c   : > { %5103 = vmatpush1.bf16.msra.mxu1 %v7174_v36  ;;  %v6379_v61 = vadd.f32 %v6378_v41, %v3414_v28  ;;  %v3416_v13 = vpop.f32.mrb[71].mxu1  ;;  %v7191_v41 = vld [vmem:[%s9301_s5 + $0x464] ss:$8 sps:$4 sm:$0xff]  }
 0x32d   : > { %v6386_v11 = vadd.f32 %v6385_v53, %v3416_v13  ;;  %5104 = vmatprep.subr.bf16.mxu1 %v7179_v1 }
 0x32f   : > { %5090 = vmatmul.mubr.bf16.gmra.mrb[88].mxu1 %v4788_v22 }
 0x330   : > { %5105 = vmatpush1.bf16.msra.mxu1 %v7177_v10  ;;  %5132 = vmatprep.mubr.bf16.mxu1 %v7231_v24 }
 0x331   : > { %v3420_v44 = vpop.f32.mrb[72].mxu1  ;;  %5106 = vmatprep.subr.bf16.mxu1 %v7182_v18 }
 0x332   : > { %v6393_v7 = vadd.f32 %v6392_v30, %v3420_v44  ;;  %v3422_v56 = vpop.f32.mrb[73].mxu1  ;;  %v7192_v30 = vld [vmem:[%s9301_s5 + $0x470] ss:$8 sps:$4 sm:$0xff]  }
 0x333   : > { %v6400_v17 = vadd.f32 %v6399_v15, %v3422_v56  ;;  %v3424_v54 = vpop.f32.mrb[74].mxu1 }
 0x334   : > { %5107 = vmatpush1.bf16.msra.mxu1 %v7180_v59  ;;  %v6407_v33 = vadd.f32 %v6406_v58, %v3424_v54  ;;  %v3426_v35 = vpop.f32.mrb[75].mxu1 }
 0x335   : > { %v6414_v51 = vadd.f32 %v6413_v49, %v3426_v35  ;;  %5108 = vmatprep.subr.bf16.mxu1 %v7185_v14 }
 0x338   : > { %5109 = vmatpush1.bf16.msra.mxu1 %v7183_v23 }
 0x339   : > { %v3702_v42 = vpop.f32.mrb[52].mxu0  ;;  %v3755_v34 = vpop.f32.mrb[76].mxu1  ;;  %5110 = vmatprep.subr.bf16.mxu1 %v7188_v26 }
 0x33a   : > { %v6366_v21 = vadd.f32 %v6365_v0, %v3702_v42  ;;  %v3704_v37 = vpop.f32.mrb[53].mxu0  ;;  %v3757_v31 = vpop.f32.mrb[77].mxu1  ;;  %v3782_v0 = vld [vmem:[%s9300_s4] sm:$0x3] }
 0x33b   : > { %v6373_v62 = vadd.f32 %v6372_v48, %v3704_v37  ;;  %v3706_v8 = vpop.f32.mrb[54].mxu0  ;;  %v3759_v53 = vpop.f32.mrb[78].mxu1  ;;  %v3787_v43 = vrot.slane %v3782_v0, %v8486_v63  ;;  %v3791_v48 = vrot.slane %v3782_v0, %v8489_v32 }
 0x33c   : > { %v6367_v40 = vadd.f32 %v6366_v21, %v3755_v34  ;;  %v6380_v27 = vadd.f32 %v6379_v61, %v3706_v8  ;;  %5111 = vmatpush1.bf16.msra.mxu1 %v7186_v25  ;;  %v3708_v4 = vpop.f32.mrb[55].mxu0  ;;  %v3761_v19 = vpop.f32.mrb[79].mxu1  ;;  %v5169_v34 = vld [vmem:[%s9302_s6] sm:$0x3] }
 0x33d   : > { %v6374_v2 = vadd.f32 %v6373_v62, %v3757_v31  ;;  %v6387_v39 = vadd.f32 %v6386_v11, %v3708_v4  ;;  %5112 = vmatprep.subr.bf16.mxu1 %v7191_v41  ;;  %v5174_v41 = vrot.slane %v5169_v34, %v8486_v63  ;;  %v5178_v37 = vrot.slane %v5169_v34, %v8489_v32 }
 0x33e   : > { %v6381_v55 = vadd.f32 %v6380_v27, %v3759_v53  ;;  %v6368_v28 = vadd.f32 %v6367_v40, %v3787_v43 }
 0x33f   : > { %v6388_v29 = vadd.f32 %v6387_v39, %v3761_v19  ;;  %v6375_v13 = vadd.f32 %v6374_v2, %v3791_v48 }
 0x340   : > { %5113 = vmatpush1.bf16.msra.mxu1 %v7189_v3  ;;  %v6382_v11 = vadd.f32 %v6381_v55, %v3787_v43 }
 0x341   : > { %v3712_v57 = vpop.f32.mrb[56].mxu0  ;;  %v3765_v15 = vpop.f32.mrb[80].mxu1  ;;  %5114 = vmatprep.subr.bf16.mxu1 %v7194_v45  ;;  %v6389_v59 = vadd.f32 %v6388_v29, %v3791_v48 }
 0x342   : > { %v6394_v20 = vadd.f32 %v6393_v7, %v3712_v57  ;;  %v3714_v58 = vpop.f32.mrb[57].mxu0  ;;  %v3767_v38 = vpop.f32.mrb[81].mxu1 }
 0x343   : > { %v6401_v5 = vadd.f32 %v6400_v17, %v3714_v58  ;;  %v3716_v9 = vpop.f32.mrb[58].mxu0  ;;  %v3769_v12 = vpop.f32.mrb[82].mxu1 }
 0x344   : > { %v6395_v60 = vadd.f32 %v6394_v20, %v3765_v15  ;;  %v6408_v49 = vadd.f32 %v6407_v33, %v3716_v9  ;;  %5115 = vmatpush1.bf16.msra.mxu1 %v7192_v30  ;;  %v3718_v50 = vpop.f32.mrb[59].mxu0  ;;  %v3771_v52 = vpop.f32.mrb[83].mxu1 }
 0x345   : > { %v6402_v36 = vadd.f32 %v6401_v5, %v3767_v38  ;;  %v6415_v46 = vadd.f32 %v6414_v51, %v3718_v50 }
 0x346   : > { %v6409_v16 = vadd.f32 %v6408_v49, %v3769_v12  ;;  %v6396_v14 = vadd.f32 %v6395_v60, %v3787_v43 }
 0x347   : > { %v6416_v1 = vadd.f32 %v6415_v46, %v3771_v52  ;;  %5133 = vmatmul.mubr.bf16.vlgmr.msra.gmra.mrb[84].mxu1 %v9034_v47  ;;  %v6403_v56 = vadd.f32 %v6402_v36, %v3791_v48 }
 0x348   : > { %5142 = vmatprep.mubr.bf16.mxu1 %v7231_v24  ;;  %v6410_v33 = vadd.f32 %v6409_v16, %v3787_v43 }
 0x349   : > { %v6417_v51 = vadd.f32 %v6416_v1, %v3791_v48 }
 0x34f   : > { %5143 = vmatmul.mubr.bf16.gmra.mrb[88].mxu1 %v9055_v6 }
 0x379   : > { %v4228_v61 = vpop.f32.mrb[60].mxu0 }
 0x37a   : > { %v6369_v10 = vadd.f32 %v6368_v28, %v4228_v61  ;;  %v4230_v22 = vpop.f32.mrb[61].mxu0 }
 0x37b   : > { %v6376_v18 = vadd.f32 %v6375_v13, %v4230_v22  ;;  %v4232_v47 = vpop.f32.mrb[62].mxu0 }
 0x37c   : > { %v6383_v24 = vadd.f32 %v6382_v11, %v4232_v47  ;;  %v4234_v6 = vpop.f32.mrb[63].mxu0 }
 0x37d   : > { %v6390_v44 = vadd.f32 %v6389_v59, %v4234_v6 }
 0x381   : > { %v4238_v7 = vpop.f32.mrb[64].mxu0 }
 0x382   : > { %v6397_v17 = vadd.f32 %v6396_v14, %v4238_v7  ;;  %v4240_v54 = vpop.f32.mrb[65].mxu0 }
 0x383   : > { %v6404_v35 = vadd.f32 %v6403_v56, %v4240_v54  ;;  %v4242_v23 = vpop.f32.mrb[66].mxu0 }
 0x384   : > { %v6411_v26 = vadd.f32 %v6410_v33, %v4242_v23  ;;  %v4244_v25 = vpop.f32.mrb[67].mxu0 }
 0x385   : > { %v6418_v42 = vadd.f32 %v6417_v51, %v4244_v25 }
 0x41a   : > { %v5134_v21 = vpop.f32.mrb[84].mxu1 }
 0x41b   : > { %v6370_v31 = vadd.f32 %v6369_v10, %v5134_v21  ;;  %v5136_v62 = vpop.f32.mrb[85].mxu1 }
 0x41c   : > { %v6377_v8 = vadd.f32 %v6376_v18, %v5136_v62  ;;  %v5138_v53 = vpop.f32.mrb[86].mxu1 }
 0x41d   : > { %v5181_v40 = vadd.f32 %v6370_v31, %v5174_v41  ;;  %v6384_v27 = vadd.f32 %v6383_v24, %v5138_v53  ;;  %v5140_v4 = vpop.f32.mrb[87].mxu1 }
 0x41e   : > { %v5182_v19 = vadd.f32 %v6377_v8, %v5178_v37  ;;  %v6391_v3 = vadd.f32 %v6390_v44, %v5140_v4 }
 0x41f   : > { %5189 = vst [vmem:[%s302_s13] sm:$0xff] %v5181_v40  ;;  %v5183_v2 = vadd.f32 %v6384_v27, %v5174_v41 }
 0x420   : > { %5190 = vst [vmem:[%s302_s13 + $0x8] sm:$0xff] %v5182_v19  ;;  %v5184_v63 = vadd.f32 %v6391_v3, %v5178_v37 }
 0x421   : > { %5191 = vst [vmem:[%s302_s13 + $0x10] sm:$0xff] %v5183_v2 }
 0x422   : > { %5192 = vst [vmem:[%s302_s13 + $0x18] sm:$0xff] %v5184_v63  ;;  %v5144_v32 = vpop.f32.mrb[88].mxu1 }
 0x423   : > { %v6398_v39 = vadd.f32 %v6397_v17, %v5144_v32  ;;  %v5146_v45 = vpop.f32.mrb[89].mxu1 }
 0x424   : > { %v6405_v55 = vadd.f32 %v6404_v35, %v5146_v45  ;;  %v5148_v29 = vpop.f32.mrb[90].mxu1 }
 0x425   : > { %v5185_v30 = vadd.f32 %v6398_v39, %v5174_v41  ;;  %v6412_v57 = vadd.f32 %v6411_v26, %v5148_v29  ;;  %v5150_v15 = vpop.f32.mrb[91].mxu1 }
 0x426   : > { %v5186_v20 = vadd.f32 %v6405_v55, %v5178_v37  ;;  %v6419_v58 = vadd.f32 %v6418_v42, %v5150_v15 }
 0x427   : > { %5193 = vst [vmem:[%s302_s13 + $0x20] sm:$0xff] %v5185_v30  ;;  %v5187_v38 = vadd.f32 %v6412_v57, %v5174_v41 }
 0x428   : > { %5194 = vst [vmem:[%s302_s13 + $0x28] sm:$0xff] %v5186_v20  ;;  %v5188_v5 = vadd.f32 %v6419_v58, %v5178_v37 }
 0x429   : > { %5195 = vst [vmem:[%s302_s13 + $0x30] sm:$0xff] %v5187_v38 }
 0x42a   : > { %5196 = vst [vmem:[%s302_s13 + $0x38] sm:$0xff] %v5188_v5 }
 0x42b PF: > { %s17_s26 = sadd.s32 1, %s7227_s26   ;;  %s9304_s24 = smov %s7223_s25 }
 0x42c   : > { %p14_p5 = scmp.ge.s32.totalorder %s17_s26, 4   ;;  %s9305_s25 = smov %s9307_s27 }
 0x42e   :  { %16 = sbr.rel (!%p14_p5) target bundleno = 2 (0x2), region = 84 }

</bundles_post_ra>
